<compile_context>
chip_gen: v7x
topology: tpu7x:2x2x1
jax: 0.10.0
libtpu: 0.0.40
codegen_flags: <defaults>
</compile_context>

<pallas_src>
import functools
import math

import jax
import jax.numpy as jnp
from jax.experimental import pallas as pl
from jax.experimental.pallas import tpu as pltpu


LN_EPS = 1e-5           # torch.nn.LayerNorm default
NEG_INF = -1e9          # matches `mask * -1000000000.0` in the reference
VMEM_LIMIT = 32 * 1024 * 1024


def _mosaic(n_par):
    return pltpu.CompilerParams(
        dimension_semantics=("parallel",) * n_par,
        vmem_limit_bytes=VMEM_LIMIT)


def _tm_cap():
    """Row-tile cap: 256 on small-VMEM chips (v7x 64MiB), 512 on 128MiB chips."""
    try:
        vmem = pltpu.get_tpu_info().vmem_capacity_bytes
        return 256 if vmem <= 64 * 1024 * 1024 else 512
    except Exception:
        return 256


def _choose_tm(M, cap):
    """Largest multiple-of-8 divisor of M <= cap that leaves >=2 grid steps
    when possible (keeps both v7x TensorCores busy)."""
    best = 8
    t = 8
    while t <= min(M, cap):
        if M % t == 0 and (M // t >= 2 or M <= 8):
            best = t
        t += 8
    return best


def _const_specs(arrays):
    """Constant-index BlockSpecs (full array) for weights / biases / LN params."""
    specs = []
    for a in arrays:
        nd = a.ndim
        specs.append(pl.BlockSpec(a.shape, lambda b, nd=nd: (0,) * nd))
    return specs


# ------------------------- in-kernel helpers -------------------------

def _layernorm(z, g, b):
    mean = jnp.mean(z, axis=-1, keepdims=True)
    var = jnp.mean(jnp.square(z - mean), axis=-1, keepdims=True)
    return (z - mean) * jax.lax.rsqrt(var + LN_EPS) * g + b


def _softmax(logits):
    logits = logits - jnp.max(logits, axis=-1, keepdims=True)
    p = jnp.exp(logits)
    return p * pl.reciprocal(jnp.sum(p, axis=-1, keepdims=True), approx=True)


def _mha_from_qkv(q_all, k_all, v_all, add_mask, num_heads, depth):
    """q_all: (Sq, H*D) f32, k_all/v_all: (Sk, H*D) f32.
    add_mask: (Sq,Sk) or (1,Sk) additive f32 mask, or None. Scale is already
    folded into the Q projection. Mask is hoisted out of the per-head loop."""
    # TODO(synk): per-head depth-deep contractions underfill the 256-wide MXU
    # on v6e/v7x; acceptable at this model size (block fusion dominates).
    outs = []
    for h in range(num_heads):
        sl = slice(h * depth, (h + 1) * depth)
        q = q_all[:, sl].astype(jnp.bfloat16)
        k = k_all[:, sl].astype(jnp.bfloat16)
        v = v_all[:, sl].astype(jnp.bfloat16)
        logits = jax.lax.dot_general(                      # q @ k^T, no transpose
            q, k, (((1,), (1,)), ((), ())),
            preferred_element_type=jnp.float32)            # (Sq, Sk) f32
        if add_mask is not None:
            logits = logits + add_mask
        w = _softmax(logits).astype(jnp.bfloat16)
        outs.append(jnp.dot(w, v, preferred_element_type=jnp.float32))
    return jnp.concatenate(outs, axis=-1)                  # (Sq, H*D) f32


# ------------------------- fused encoder layer -------------------------

def _encoder_layer_kernel(*refs, num_heads, depth, has_mask):
    if has_mask:
        (x_ref, mask_ref, w_qkv, b_qkv, w_o, b_o, g1, be1,
         w1, b1, w2, b2, g2, be2, o_ref) = refs
    else:
        (x_ref, w_qkv, b_qkv, w_o, b_o, g1, be1,
         w1, b1, w2, b2, g2, be2, o_ref) = refs
    dm = num_heads * depth

    x = x_ref[0]                                           # (S, dm)
    x_f32 = x.astype(jnp.float32)
    x_bf = x.astype(jnp.bfloat16)

    # fused QKV projection (scale folded into Q columns at init)
    qkv = jnp.dot(x_bf, w_qkv[...],
                  preferred_element_type=jnp.float32) + b_qkv[...]   # (S, 3*dm)

    add_mask = mask_ref[0] * NEG_INF if has_mask else None           # (1, S)
    attn = _mha_from_qkv(qkv[:, :dm], qkv[:, dm:2 * dm], qkv[:, 2 * dm:],
                         add_mask, num_heads, depth)

    proj = jnp.dot(attn.astype(jnp.bfloat16), w_o[...],
                   preferred_element_type=jnp.float32) + b_o[...]
    out1 = _layernorm(x_f32 + proj, g1[...], be1[...])

    h = jnp.dot(out1.astype(jnp.bfloat16), w1[...],
                preferred_element_type=jnp.float32) + b1[...]
    h = jnp.maximum(h, 0.0)
    ffn = jnp.dot(h.astype(jnp.bfloat16), w2[...],
                  preferred_element_type=jnp.float32) + b2[...]
    out2 = _layernorm(out1 + ffn, g2[...], be2[...])

    o_ref[0] = out2.astype(o_ref.dtype)


def pallas_encoder_layer(x, pad_mask, p, num_heads):
    B, S, dm = x.shape
    depth = dm // num_heads
    has_mask = pad_mask is not None
    kern = functools.partial(_encoder_layer_kernel, num_heads=num_heads,
                             depth=depth, has_mask=has_mask)

    in_specs = [pl.BlockSpec((1, S, dm), lambda b: (b, 0, 0))]
    args = [x]
    if has_mask:                                  # pad_mask: (B, 1, S), 1 == pad
        in_specs.append(pl.BlockSpec((1, 1, S), lambda b: (b, 0, 0)))
        args.append(pad_mask)

    weights = [
        p["attn"]["w_qkv"], p["attn"]["b_qkv"], p["attn"]["w_o"], p["attn"]["b_o"],
        p["ln1"]["g"], p["ln1"]["b"],
        p["ffn"]["w1"], p["ffn"]["b1"], p["ffn"]["w2"], p["ffn"]["b2"],
        p["ln2"]["g"], p["ln2"]["b"],
    ]
    in_specs += _const_specs(weights)
    args += weights

    return pl.pallas_call(
        kern,
        out_shape=jax.ShapeDtypeStruct((B, S, dm), jnp.bfloat16),
        grid=(B,),
        in_specs=in_specs,
        out_specs=pl.BlockSpec((1, S, dm), lambda b: (b, 0, 0)),
        compiler_params=_mosaic(1),
    )(*args)


# ------------------------- fused decoder layer -------------------------

def _decoder_layer_kernel(*refs, num_heads, depth, has_pad_mask):
    if has_pad_mask:
        x_ref, enc_ref, pad_ref, *w, o_ref = refs
    else:
        x_ref, enc_ref, *w, o_ref = refs
    (w_qkv1, b_qkv1, wo1, bo1, g1, be1,
     w_q2, b_q2, w_kv2, b_kv2, wo2, bo2, g2, be2,
     w1, b1, w2, b2, g3, be3) = w
    dm = num_heads * depth
    Sq = x_ref.shape[1]

    x = x_ref[0]
    x_f32 = x.astype(jnp.float32)
    x_bf = x.astype(jnp.bfloat16)
    enc_bf = enc_ref[0].astype(jnp.bfloat16)

    # --- masked self-attention; look-ahead mask generated in-kernel ---
    row = jax.lax.broadcasted_iota(jnp.int32, (Sq, Sq), 0)
    col = jax.lax.broadcasted_iota(jnp.int32, (Sq, Sq), 1)
    causal_add = jnp.where(col > row, NEG_INF, 0.0).astype(jnp.float32)

    qkv = jnp.dot(x_bf, w_qkv1[...],
                  preferred_element_type=jnp.float32) + b_qkv1[...]
    attn1 = _mha_from_qkv(qkv[:, :dm], qkv[:, dm:2 * dm], qkv[:, 2 * dm:],
                          causal_add, num_heads, depth)
    proj1 = jnp.dot(attn1.astype(jnp.bfloat16), wo1[...],
                    preferred_element_type=jnp.float32) + bo1[...]
    out1 = _layernorm(x_f32 + proj1, g1[...], be1[...])

    # --- cross-attention: queries from out1, keys/values from encoder output ---
    q2 = jnp.dot(out1.astype(jnp.bfloat16), w_q2[...],
                 preferred_element_type=jnp.float32) + b_q2[...]
    kv2 = jnp.dot(enc_bf, w_kv2[...],
                  preferred_element_type=jnp.float32) + b_kv2[...]
    pad_add = pad_ref[0] * NEG_INF if has_pad_mask else None     # (1, Sk)
    attn2 = _mha_from_qkv(q2, kv2[:, :dm], kv2[:, dm:],
                          pad_add, num_heads, depth)
    proj2 = jnp.dot(attn2.astype(jnp.bfloat16), wo2[...],
                    preferred_element_type=jnp.float32) + bo2[...]
    out2 = _layernorm(out1 + proj2, g2[...], be2[...])

    # --- FFN (hidden stays in VMEM) ---
    h = jnp.dot(out2.astype(jnp.bfloat16), w1[...],
                preferred_element_type=jnp.float32) + b1[...]
    h = jnp.maximum(h, 0.0)
    ffn = jnp.dot(h.astype(jnp.bfloat16), w2[...],
                  preferred_element_type=jnp.float32) + b2[...]
    out3 = _layernorm(out2 + ffn, g3[...], be3[...])

    o_ref[0] = out3.astype(o_ref.dtype)


def pallas_decoder_layer(x, enc_out, pad_mask, p, num_heads):
    B, Sq, dm = x.shape
    Sk = enc_out.shape[1]
    depth = dm // num_heads
    has_pad = pad_mask is not None
    kern = functools.partial(_decoder_layer_kernel, num_heads=num_heads,
                             depth=depth, has_pad_mask=has_pad)

    in_specs = [pl.BlockSpec((1, Sq, dm), lambda b: (b, 0, 0)),
                pl.BlockSpec((1, Sk, dm), lambda b: (b, 0, 0))]
    args = [x, enc_out]
    if has_pad:                                  # (B, 1, Sk), 1 == pad
        in_specs.append(pl.BlockSpec((1, 1, Sk), lambda b: (b, 0, 0)))
        args.append(pad_mask)

    weights = [
        p["attn1"]["w_qkv"], p["attn1"]["b_qkv"], p["attn1"]["w_o"], p["attn1"]["b_o"],
        p["ln1"]["g"], p["ln1"]["b"],
        p["attn2"]["w_q"], p["attn2"]["b_q"], p["attn2"]["w_kv"], p["attn2"]["b_kv"],
        p["attn2"]["w_o"], p["attn2"]["b_o"],
        p["ln2"]["g"], p["ln2"]["b"],
        p["ffn"]["w1"], p["ffn"]["b1"], p["ffn"]["w2"], p["ffn"]["b2"],
        p["ln3"]["g"], p["ln3"]["b"],
    ]
    in_specs += _const_specs(weights)
    args += weights

    return pl.pallas_call(
        kern,
        out_shape=jax.ShapeDtypeStruct((B, Sq, dm), jnp.bfloat16),
        grid=(B,),
        in_specs=in_specs,
        out_specs=pl.BlockSpec((1, Sq, dm), lambda b: (b, 0, 0)),
        compiler_params=_mosaic(1),
    )(*args)


# ------------------------- final vocab projection -------------------------

def _linear_kernel(x_ref, w_ref, b_ref, o_ref):
    x = x_ref[...].astype(jnp.bfloat16)                 # cast in-kernel (VPU)
    y = jnp.dot(x, w_ref[...], preferred_element_type=jnp.float32) + b_ref[...]
    o_ref[...] = y.astype(o_ref.dtype)


def pallas_linear(x2d, w, b2d, out_dtype=jnp.float32):
    M, K = x2d.shape
    N = w.shape[1]
    Mpad = ((M + 7) // 8) * 8                           # robust (8,*) tiling
    if Mpad != M:
        x2d = jnp.pad(x2d, ((0, Mpad - M), (0, 0)))
    tm = _choose_tm(Mpad, _tm_cap())
    out = pl.pallas_call(
        _linear_kernel,
        out_shape=jax.ShapeDtypeStruct((Mpad, N), out_dtype),
        grid=(Mpad // tm,),
        in_specs=[pl.BlockSpec((tm, K), lambda i: (i, 0)),
                  pl.BlockSpec((K, N), lambda i: (0, 0)),
                  pl.BlockSpec((1, N), lambda i: (0, 0))],
        out_specs=pl.BlockSpec((tm, N), lambda i: (i, 0)),
        compiler_params=_mosaic(1),
    )(x2d, w, b2d)
    return out[:M] if Mpad != M else out


# ------------------------- model glue -------------------------

def positional_encoding_table(d_model, max_len):
    position = jnp.arange(max_len, dtype=jnp.float32)[:, None]
    div_term = jnp.exp(jnp.arange(0, d_model, 2, dtype=jnp.float32)
                       * (-math.log(10000.0) / d_model))
    enc = jnp.zeros((max_len, d_model), jnp.float32)
    enc = enc.at[:, 0::2].set(jnp.sin(position * div_term))
    enc = enc.at[:, 1::2].set(jnp.cos(position * div_term))
    return enc


def transformer_forward(params, encoder_input, decoder_input, *, num_heads,
                        encoder_mask=None, decoder_mask=None):
    # NOTE: decoder_mask is accepted for signature parity with the reference,
    # which never uses it.  Mask convention (matches `mask * -1e9`): 1 == pad.
    del decoder_mask
    emb = params["embedding"]
    pe = params["pos_enc"]
    d_model = emb.shape[1]

    enc_pad = None
    if encoder_mask is not None:                      # (B, Sk) -> (B, 1, Sk) f32
        enc_pad = encoder_mask.astype(jnp.float32).reshape(
            encoder_mask.shape[0], 1, encoder_mask.shape[-1])

    # TODO(synk): embedding gather + positional-encoding add are plain-JAX glue.
    enc_x = jnp.take(emb, encoder_input, axis=0) + pe[None, :encoder_input.shape[1], :]
    enc_out = enc_x
    for lp in params["encoder_layers"]:
        enc_out = pallas_encoder_layer(enc_out, enc_pad, lp, num_heads)

    dec_x = jnp.take(emb, decoder_input, axis=0) + pe[None, :decoder_input.shape[1], :]
    dec_out = dec_x
    for lp in params["decoder_layers"]:
        dec_out = pallas_decoder_layer(dec_out, enc_out, enc_pad, lp, num_heads)

    B, Sd, _ = dec_out.shape
    vocab = params["fc"]["w"].shape[1]
    logits = pallas_linear(dec_out.reshape(B * Sd, d_model),
                           params["fc"]["w"], params["fc"]["b"],
                           out_dtype=jnp.float32)
    return logits.reshape(B, Sd, vocab)


# ------------------------- parameter init -------------------------

class _KeyGen:
    def __init__(self, key):
        self._key = key

    def __call__(self):
        self._key, sub = jax.random.split(self._key)
        return sub


def _init_dense(kg, d_in, d_out):
    w = 0.05 * jax.random.normal(kg(), (d_in, d_out), jnp.float32)
    b = 0.05 * jax.random.normal(kg(), (d_out,), jnp.float32)
    return w, b


def init_mha(kg, d_model, num_heads, cross=False):
    depth = d_model // num_heads
    scale = 1.0 / math.sqrt(depth)
    wq, bq = _init_dense(kg, d_model, d_model)
    wk, bk = _init_dense(kg, d_model, d_model)
    wv, bv = _init_dense(kg, d_model, d_model)
    wo, bo = _init_dense(kg, d_model, d_model)
    wq, bq = wq * scale, bq * scale           # fold 1/sqrt(depth) into Q proj
    p = {"w_o": wo.astype(jnp.bfloat16), "b_o": bo.reshape(1, d_model)}
    if cross:                                  # pre-split q / kv for cross-attn
        p["w_q"] = wq.astype(jnp.bfloat16)
        p["b_q"] = bq.reshape(1, d_model)
        p["w_kv"] = jnp.concatenate([wk, wv], axis=1).astype(jnp.bfloat16)
        p["b_kv"] = jnp.concatenate([bk, bv]).reshape(1, 2 * d_model)
    else:
        p["w_qkv"] = jnp.concatenate([wq, wk, wv], axis=1).astype(jnp.bfloat16)
        p["b_qkv"] = jnp.concatenate([bq, bk, bv]).reshape(1, 3 * d_model)
    return p


def init_ffn(kg, d_model, ffn_units):
    w1, b1 = _init_dense(kg, d_model, ffn_units)
    w2, b2 = _init_dense(kg, ffn_units, d_model)
    return {"w1": w1.astype(jnp.bfloat16), "b1": b1.reshape(1, ffn_units),
            "w2": w2.astype(jnp.bfloat16), "b2": b2.reshape(1, d_model)}


def init_layernorm(d):
    return {"g": jnp.ones((1, d), jnp.float32), "b": jnp.zeros((1, d), jnp.float32)}


def init_params(key, vocab_size, d_model, num_heads, ffn_units, num_layers,
                max_len):
    kg = _KeyGen(key)
    fw, fb = _init_dense(kg, d_model, vocab_size)
    params = {
        "embedding": 0.05 * jax.random.normal(kg(), (vocab_size, d_model),
                                              jnp.float32),
        "pos_enc": positional_encoding_table(d_model, max_len),
        "encoder_layers": [],
        "decoder_layers": [],
        "fc": {"w": fw.astype(jnp.bfloat16), "b": fb.reshape(1, vocab_size)},
    }
    for _ in range(num_layers):
        params["encoder_layers"].append({
            "attn": init_mha(kg, d_model, num_heads),
            "ffn": init_ffn(kg, d_model, ffn_units),
            "ln1": init_layernorm(d_model),
            "ln2": init_layernorm(d_model),
        })
    for _ in range(num_layers):
        params["decoder_layers"].append({
            "attn1": init_mha(kg, d_model, num_heads),
            "attn2": init_mha(kg, d_model, num_heads, cross=True),
            "ffn": init_ffn(kg, d_model, ffn_units),
            "ln1": init_layernorm(d_model),
            "ln2": init_layernorm(d_model),
            "ln3": init_layernorm(d_model),
        })
    return params


# ------------------------- main -------------------------

if __name__ == "__main__":
    vocab_size = 32
    d_model = 32
    num_heads = 4
    ffn_units = 64
    num_layers = 2
    max_len = 16
    batch = 2
    enc_seq = 8
    dec_seq = 8

    root = jax.random.PRNGKey(0)
    k_params, k_enc, k_dec = jax.random.split(root, 3)

    params = init_params(k_params, vocab_size, d_model, num_heads,
                         ffn_units, num_layers, max_len)

    encoder_input = jax.random.randint(k_enc, (batch, enc_seq), 0, vocab_size,
                                       dtype=jnp.int32)
    decoder_input = jax.random.randint(k_dec, (batch, dec_seq), 0, vocab_size,
                                       dtype=jnp.int32)

    fwd = jax.jit(functools.partial(transformer_forward, num_heads=num_heads))
    out = fwd(params, encoder_input, decoder_input)
    out = jax.block_until_ready(out)

    assert out.shape == (batch, dec_seq, vocab_size), out.shape
    assert jnp.all(jnp.isfinite(out)), "non-finite output"
    print("KERNEL_OK")
</pallas_src>

<mosaic_0001>
module attributes {stable_mosaic.version = 11 : i64} {
  func.func @_encoder_layer_kernel(%arg0: i32, %arg1: memref<1x8x32xbf16, #tpu.memory_space<vmem>>, %arg2: memref<32x96xbf16, #tpu.memory_space<vmem>>, %arg3: memref<1x96xf32, #tpu.memory_space<vmem>>, %arg4: memref<32x32xbf16, #tpu.memory_space<vmem>>, %arg5: memref<1x32xf32, #tpu.memory_space<vmem>>, %arg6: memref<1x32xf32, #tpu.memory_space<vmem>>, %arg7: memref<1x32xf32, #tpu.memory_space<vmem>>, %arg8: memref<32x64xbf16, #tpu.memory_space<vmem>>, %arg9: memref<1x64xf32, #tpu.memory_space<vmem>>, %arg10: memref<64x32xbf16, #tpu.memory_space<vmem>>, %arg11: memref<1x32xf32, #tpu.memory_space<vmem>>, %arg12: memref<1x32xf32, #tpu.memory_space<vmem>>, %arg13: memref<1x32xf32, #tpu.memory_space<vmem>>, %arg14: memref<1x8x32xbf16, #tpu.memory_space<vmem>>) attributes {dimension_semantics = [#tpu.dimension_semantics<parallel>], iteration_bounds = array<i64: 2>, scalar_prefetch = 0 : i64, scratch_operands = 0 : i64, tpu.core_type = #tpu.core_type<tc>, window_params = [{transform_indices = @transform_0, window_bounds = array<i64: 1, 8, 32>}, {pipeline_mode = #tpu.pipeline_mode<synchronous>, transform_indices = @transform_1, window_bounds = array<i64: 32, 96>}, {pipeline_mode = #tpu.pipeline_mode<synchronous>, transform_indices = @transform_2, window_bounds = array<i64: 1, 96>}, {pipeline_mode = #tpu.pipeline_mode<synchronous>, transform_indices = @transform_3, window_bounds = array<i64: 32, 32>}, {pipeline_mode = #tpu.pipeline_mode<synchronous>, transform_indices = @transform_4, window_bounds = array<i64: 1, 32>}, {pipeline_mode = #tpu.pipeline_mode<synchronous>, transform_indices = @transform_5, window_bounds = array<i64: 1, 32>}, {pipeline_mode = #tpu.pipeline_mode<synchronous>, transform_indices = @transform_6, window_bounds = array<i64: 1, 32>}, {pipeline_mode = #tpu.pipeline_mode<synchronous>, transform_indices = @transform_7, window_bounds = array<i64: 32, 64>}, {pipeline_mode = #tpu.pipeline_mode<synchronous>, transform_indices = @transform_8, window_bounds = array<i64: 1, 64>}, {pipeline_mode = #tpu.pipeline_mode<synchronous>, transform_indices = @transform_9, window_bounds = array<i64: 64, 32>}, {pipeline_mode = #tpu.pipeline_mode<synchronous>, transform_indices = @transform_10, window_bounds = array<i64: 1, 32>}, {pipeline_mode = #tpu.pipeline_mode<synchronous>, transform_indices = @transform_11, window_bounds = array<i64: 1, 32>}, {pipeline_mode = #tpu.pipeline_mode<synchronous>, transform_indices = @transform_12, window_bounds = array<i64: 1, 32>}, {transform_indices = @transform_13, window_bounds = array<i64: 1, 8, 32>}]} {
    %c0 = arith.constant 0 : index
    %c0_0 = arith.constant 0 : index
    %c0_1 = arith.constant 0 : index
    %0 = vector.load %arg1[%c0, %c0_0, %c0_1] : memref<1x8x32xbf16, #tpu.memory_space<vmem>>, vector<1x8x32xbf16>
    %1 = vector.shape_cast %0 : vector<1x8x32xbf16> to vector<8x32xbf16>
    %2 = arith.extf %1 : vector<8x32xbf16> to vector<8x32xf32>
    %c0_2 = arith.constant 0 : index
    %c0_3 = arith.constant 0 : index
    %3 = vector.load %arg2[%c0_2, %c0_3] : memref<32x96xbf16, #tpu.memory_space<vmem>>, vector<32x96xbf16>
    %cst = arith.constant dense<0.000000e+00> : vector<8x96xf32>
    %4 = tpu.matmul %1, %3, %cst {dimension_numbers = #tpu.dot_dimension_numbers<[1], [0], [0], [1], [0, 0, 1, 1], [], []>} : vector<8x32xbf16>, vector<32x96xbf16>, vector<8x96xf32> -> vector<8x96xf32>
    %c0_4 = arith.constant 0 : index
    %c0_5 = arith.constant 0 : index
    %5 = vector.load %arg3[%c0_4, %c0_5] : memref<1x96xf32, #tpu.memory_space<vmem>>, vector<1x96xf32>
    %6 = vector.broadcast %5 : vector<1x96xf32> to vector<8x96xf32>
    %7 = arith.addf %4, %6 : vector<8x96xf32>
    %8 = vector.extract_strided_slice %7 {offsets = [0, 0], sizes = [8, 32], strides = [1, 1]} : vector<8x96xf32> to vector<8x32xf32>
    %9 = vector.extract_strided_slice %7 {offsets = [0, 32], sizes = [8, 32], strides = [1, 1]} : vector<8x96xf32> to vector<8x32xf32>
    %10 = vector.extract_strided_slice %7 {offsets = [0, 64], sizes = [8, 32], strides = [1, 1]} : vector<8x96xf32> to vector<8x32xf32>
    %11 = vector.extract_strided_slice %8 {offsets = [0, 0], sizes = [8, 8], strides = [1, 1]} : vector<8x32xf32> to vector<8x8xf32>
    %12 = arith.truncf %11 : vector<8x8xf32> to vector<8x8xbf16>
    %13 = vector.extract_strided_slice %9 {offsets = [0, 0], sizes = [8, 8], strides = [1, 1]} : vector<8x32xf32> to vector<8x8xf32>
    %14 = arith.truncf %13 : vector<8x8xf32> to vector<8x8xbf16>
    %15 = vector.extract_strided_slice %10 {offsets = [0, 0], sizes = [8, 8], strides = [1, 1]} : vector<8x32xf32> to vector<8x8xf32>
    %16 = arith.truncf %15 : vector<8x8xf32> to vector<8x8xbf16>
    %cst_6 = arith.constant dense<0.000000e+00> : vector<8x8xf32>
    %17 = tpu.matmul %12, %14, %cst_6 {dimension_numbers = #tpu.dot_dimension_numbers<[1], [1], [0], [0], [0, 0, 1, 0], [], []>} : vector<8x8xbf16>, vector<8x8xbf16>, vector<8x8xf32> -> vector<8x8xf32>
    %cst_7 = arith.constant dense<0xFF800000> : vector<8xf32>
    %18 = vector.multi_reduction <maximumf>, %17, %cst_7 [1] : vector<8x8xf32> to vector<8xf32>
    %19 = vector.shape_cast %18 : vector<8xf32> to vector<8x1xf32>
    %20 = vector.broadcast %19 : vector<8x1xf32> to vector<8x8xf32>
    %21 = arith.subf %17, %20 : vector<8x8xf32>
    %22 = math.exp %21 : vector<8x8xf32>
    %cst_8 = arith.constant dense<0.000000e+00> : vector<8xf32>
    %23 = vector.multi_reduction <add>, %22, %cst_8 [1] : vector<8x8xf32> to vector<8xf32>
    %24 = vector.shape_cast %23 : vector<8xf32> to vector<8x1xf32>
    %25 = tpu.reciprocal %24 {approx = true} : vector<8x1xf32> -> vector<8x1xf32>
    %26 = vector.broadcast %25 : vector<8x1xf32> to vector<8x8xf32>
    %27 = arith.mulf %22, %26 : vector<8x8xf32>
    %28 = arith.truncf %27 : vector<8x8xf32> to vector<8x8xbf16>
    %cst_9 = arith.constant dense<0.000000e+00> : vector<8x8xf32>
    %29 = tpu.matmul %28, %16, %cst_9 {dimension_numbers = #tpu.dot_dimension_numbers<[1], [0], [0], [1], [0, 0, 1, 1], [], []>} : vector<8x8xbf16>, vector<8x8xbf16>, vector<8x8xf32> -> vector<8x8xf32>
    %30 = vector.extract_strided_slice %8 {offsets = [0, 8], sizes = [8, 8], strides = [1, 1]} : vector<8x32xf32> to vector<8x8xf32>
    %31 = arith.truncf %30 : vector<8x8xf32> to vector<8x8xbf16>
    %32 = vector.extract_strided_slice %9 {offsets = [0, 8], sizes = [8, 8], strides = [1, 1]} : vector<8x32xf32> to vector<8x8xf32>
    %33 = arith.truncf %32 : vector<8x8xf32> to vector<8x8xbf16>
    %34 = vector.extract_strided_slice %10 {offsets = [0, 8], sizes = [8, 8], strides = [1, 1]} : vector<8x32xf32> to vector<8x8xf32>
    %35 = arith.truncf %34 : vector<8x8xf32> to vector<8x8xbf16>
    %cst_10 = arith.constant dense<0.000000e+00> : vector<8x8xf32>
    %36 = tpu.matmul %31, %33, %cst_10 {dimension_numbers = #tpu.dot_dimension_numbers<[1], [1], [0], [0], [0, 0, 1, 0], [], []>} : vector<8x8xbf16>, vector<8x8xbf16>, vector<8x8xf32> -> vector<8x8xf32>
    %cst_11 = arith.constant dense<0xFF800000> : vector<8xf32>
    %37 = vector.multi_reduction <maximumf>, %36, %cst_11 [1] : vector<8x8xf32> to vector<8xf32>
    %38 = vector.shape_cast %37 : vector<8xf32> to vector<8x1xf32>
    %39 = vector.broadcast %38 : vector<8x1xf32> to vector<8x8xf32>
    %40 = arith.subf %36, %39 : vector<8x8xf32>
    %41 = math.exp %40 : vector<8x8xf32>
    %cst_12 = arith.constant dense<0.000000e+00> : vector<8xf32>
    %42 = vector.multi_reduction <add>, %41, %cst_12 [1] : vector<8x8xf32> to vector<8xf32>
    %43 = vector.shape_cast %42 : vector<8xf32> to vector<8x1xf32>
    %44 = tpu.reciprocal %43 {approx = true} : vector<8x1xf32> -> vector<8x1xf32>
    %45 = vector.broadcast %44 : vector<8x1xf32> to vector<8x8xf32>
    %46 = arith.mulf %41, %45 : vector<8x8xf32>
    %47 = arith.truncf %46 : vector<8x8xf32> to vector<8x8xbf16>
    %cst_13 = arith.constant dense<0.000000e+00> : vector<8x8xf32>
    %48 = tpu.matmul %47, %35, %cst_13 {dimension_numbers = #tpu.dot_dimension_numbers<[1], [0], [0], [1], [0, 0, 1, 1], [], []>} : vector<8x8xbf16>, vector<8x8xbf16>, vector<8x8xf32> -> vector<8x8xf32>
    %49 = vector.extract_strided_slice %8 {offsets = [0, 16], sizes = [8, 8], strides = [1, 1]} : vector<8x32xf32> to vector<8x8xf32>
    %50 = arith.truncf %49 : vector<8x8xf32> to vector<8x8xbf16>
    %51 = vector.extract_strided_slice %9 {offsets = [0, 16], sizes = [8, 8], strides = [1, 1]} : vector<8x32xf32> to vector<8x8xf32>
    %52 = arith.truncf %51 : vector<8x8xf32> to vector<8x8xbf16>
    %53 = vector.extract_strided_slice %10 {offsets = [0, 16], sizes = [8, 8], strides = [1, 1]} : vector<8x32xf32> to vector<8x8xf32>
    %54 = arith.truncf %53 : vector<8x8xf32> to vector<8x8xbf16>
    %cst_14 = arith.constant dense<0.000000e+00> : vector<8x8xf32>
    %55 = tpu.matmul %50, %52, %cst_14 {dimension_numbers = #tpu.dot_dimension_numbers<[1], [1], [0], [0], [0, 0, 1, 0], [], []>} : vector<8x8xbf16>, vector<8x8xbf16>, vector<8x8xf32> -> vector<8x8xf32>
    %cst_15 = arith.constant dense<0xFF800000> : vector<8xf32>
    %56 = vector.multi_reduction <maximumf>, %55, %cst_15 [1] : vector<8x8xf32> to vector<8xf32>
    %57 = vector.shape_cast %56 : vector<8xf32> to vector<8x1xf32>
    %58 = vector.broadcast %57 : vector<8x1xf32> to vector<8x8xf32>
    %59 = arith.subf %55, %58 : vector<8x8xf32>
    %60 = math.exp %59 : vector<8x8xf32>
    %cst_16 = arith.constant dense<0.000000e+00> : vector<8xf32>
    %61 = vector.multi_reduction <add>, %60, %cst_16 [1] : vector<8x8xf32> to vector<8xf32>
    %62 = vector.shape_cast %61 : vector<8xf32> to vector<8x1xf32>
    %63 = tpu.reciprocal %62 {approx = true} : vector<8x1xf32> -> vector<8x1xf32>
    %64 = vector.broadcast %63 : vector<8x1xf32> to vector<8x8xf32>
    %65 = arith.mulf %60, %64 : vector<8x8xf32>
    %66 = arith.truncf %65 : vector<8x8xf32> to vector<8x8xbf16>
    %cst_17 = arith.constant dense<0.000000e+00> : vector<8x8xf32>
    %67 = tpu.matmul %66, %54, %cst_17 {dimension_numbers = #tpu.dot_dimension_numbers<[1], [0], [0], [1], [0, 0, 1, 1], [], []>} : vector<8x8xbf16>, vector<8x8xbf16>, vector<8x8xf32> -> vector<8x8xf32>
    %68 = vector.extract_strided_slice %8 {offsets = [0, 24], sizes = [8, 8], strides = [1, 1]} : vector<8x32xf32> to vector<8x8xf32>
    %69 = arith.truncf %68 : vector<8x8xf32> to vector<8x8xbf16>
    %70 = vector.extract_strided_slice %9 {offsets = [0, 24], sizes = [8, 8], strides = [1, 1]} : vector<8x32xf32> to vector<8x8xf32>
    %71 = arith.truncf %70 : vector<8x8xf32> to vector<8x8xbf16>
    %72 = vector.extract_strided_slice %10 {offsets = [0, 24], sizes = [8, 8], strides = [1, 1]} : vector<8x32xf32> to vector<8x8xf32>
    %73 = arith.truncf %72 : vector<8x8xf32> to vector<8x8xbf16>
    %cst_18 = arith.constant dense<0.000000e+00> : vector<8x8xf32>
    %74 = tpu.matmul %69, %71, %cst_18 {dimension_numbers = #tpu.dot_dimension_numbers<[1], [1], [0], [0], [0, 0, 1, 0], [], []>} : vector<8x8xbf16>, vector<8x8xbf16>, vector<8x8xf32> -> vector<8x8xf32>
    %cst_19 = arith.constant dense<0xFF800000> : vector<8xf32>
    %75 = vector.multi_reduction <maximumf>, %74, %cst_19 [1] : vector<8x8xf32> to vector<8xf32>
    %76 = vector.shape_cast %75 : vector<8xf32> to vector<8x1xf32>
    %77 = vector.broadcast %76 : vector<8x1xf32> to vector<8x8xf32>
    %78 = arith.subf %74, %77 : vector<8x8xf32>
    %79 = math.exp %78 : vector<8x8xf32>
    %cst_20 = arith.constant dense<0.000000e+00> : vector<8xf32>
    %80 = vector.multi_reduction <add>, %79, %cst_20 [1] : vector<8x8xf32> to vector<8xf32>
    %81 = vector.shape_cast %80 : vector<8xf32> to vector<8x1xf32>
    %82 = tpu.reciprocal %81 {approx = true} : vector<8x1xf32> -> vector<8x1xf32>
    %83 = vector.broadcast %82 : vector<8x1xf32> to vector<8x8xf32>
    %84 = arith.mulf %79, %83 : vector<8x8xf32>
    %85 = arith.truncf %84 : vector<8x8xf32> to vector<8x8xbf16>
    %cst_21 = arith.constant dense<0.000000e+00> : vector<8x8xf32>
    %86 = tpu.matmul %85, %73, %cst_21 {dimension_numbers = #tpu.dot_dimension_numbers<[1], [0], [0], [1], [0, 0, 1, 1], [], []>} : vector<8x8xbf16>, vector<8x8xbf16>, vector<8x8xf32> -> vector<8x8xf32>
    %87 = tpu.concatenate %29, %48, %67, %86 in 1 : vector<8x8xf32>, vector<8x8xf32>, vector<8x8xf32>, vector<8x8xf32> -> vector<8x32xf32>
    %88 = arith.truncf %87 : vector<8x32xf32> to vector<8x32xbf16>
    %c0_22 = arith.constant 0 : index
    %c0_23 = arith.constant 0 : index
    %89 = vector.load %arg4[%c0_22, %c0_23] : memref<32x32xbf16, #tpu.memory_space<vmem>>, vector<32x32xbf16>
    %cst_24 = arith.constant dense<0.000000e+00> : vector<8x32xf32>
    %90 = tpu.matmul %88, %89, %cst_24 {dimension_numbers = #tpu.dot_dimension_numbers<[1], [0], [0], [1], [0, 0, 1, 1], [], []>} : vector<8x32xbf16>, vector<32x32xbf16>, vector<8x32xf32> -> vector<8x32xf32>
    %c0_25 = arith.constant 0 : index
    %c0_26 = arith.constant 0 : index
    %91 = vector.load %arg5[%c0_25, %c0_26] : memref<1x32xf32, #tpu.memory_space<vmem>>, vector<1x32xf32>
    %92 = vector.broadcast %91 : vector<1x32xf32> to vector<8x32xf32>
    %93 = arith.addf %90, %92 : vector<8x32xf32>
    %94 = arith.addf %2, %93 : vector<8x32xf32>
    %c0_27 = arith.constant 0 : index
    %c0_28 = arith.constant 0 : index
    %95 = vector.load %arg6[%c0_27, %c0_28] : memref<1x32xf32, #tpu.memory_space<vmem>>, vector<1x32xf32>
    %c0_29 = arith.constant 0 : index
    %c0_30 = arith.constant 0 : index
    %96 = vector.load %arg7[%c0_29, %c0_30] : memref<1x32xf32, #tpu.memory_space<vmem>>, vector<1x32xf32>
    %cst_31 = arith.constant dense<0.000000e+00> : vector<8xf32>
    %97 = vector.multi_reduction <add>, %94, %cst_31 [1] : vector<8x32xf32> to vector<8xf32>
    %98 = vector.shape_cast %97 : vector<8xf32> to vector<8x1xf32>
    %cst_32 = arith.constant 3.200000e+01 : f32
    %99 = vector.broadcast %cst_32 : f32 to vector<8x1xf32>
    %100 = arith.divf %98, %99 : vector<8x1xf32>
    %101 = vector.broadcast %100 : vector<8x1xf32> to vector<8x32xf32>
    %102 = arith.subf %94, %101 : vector<8x32xf32>
    %103 = arith.mulf %102, %102 : vector<8x32xf32>
    %cst_33 = arith.constant dense<0.000000e+00> : vector<8xf32>
    %104 = vector.multi_reduction <add>, %103, %cst_33 [1] : vector<8x32xf32> to vector<8xf32>
    %105 = vector.shape_cast %104 : vector<8xf32> to vector<8x1xf32>
    %cst_34 = arith.constant 3.200000e+01 : f32
    %106 = vector.broadcast %cst_34 : f32 to vector<8x1xf32>
    %107 = arith.divf %105, %106 : vector<8x1xf32>
    %108 = vector.broadcast %100 : vector<8x1xf32> to vector<8x32xf32>
    %109 = arith.subf %94, %108 : vector<8x32xf32>
    %cst_35 = arith.constant 9.99999974E-6 : f32
    %110 = vector.broadcast %cst_35 : f32 to vector<8x1xf32>
    %111 = arith.addf %107, %110 : vector<8x1xf32>
    %112 = math.rsqrt %111 : vector<8x1xf32>
    %113 = vector.broadcast %112 : vector<8x1xf32> to vector<8x32xf32>
    %114 = arith.mulf %109, %113 : vector<8x32xf32>
    %115 = vector.broadcast %95 : vector<1x32xf32> to vector<8x32xf32>
    %116 = arith.mulf %114, %115 : vector<8x32xf32>
    %117 = vector.broadcast %96 : vector<1x32xf32> to vector<8x32xf32>
    %118 = arith.addf %116, %117 : vector<8x32xf32>
    %119 = arith.truncf %118 : vector<8x32xf32> to vector<8x32xbf16>
    %c0_36 = arith.constant 0 : index
    %c0_37 = arith.constant 0 : index
    %120 = vector.load %arg8[%c0_36, %c0_37] : memref<32x64xbf16, #tpu.memory_space<vmem>>, vector<32x64xbf16>
    %cst_38 = arith.constant dense<0.000000e+00> : vector<8x64xf32>
    %121 = tpu.matmul %119, %120, %cst_38 {dimension_numbers = #tpu.dot_dimension_numbers<[1], [0], [0], [1], [0, 0, 1, 1], [], []>} : vector<8x32xbf16>, vector<32x64xbf16>, vector<8x64xf32> -> vector<8x64xf32>
    %c0_39 = arith.constant 0 : index
    %c0_40 = arith.constant 0 : index
    %122 = vector.load %arg9[%c0_39, %c0_40] : memref<1x64xf32, #tpu.memory_space<vmem>>, vector<1x64xf32>
    %123 = vector.broadcast %122 : vector<1x64xf32> to vector<8x64xf32>
    %124 = arith.addf %121, %123 : vector<8x64xf32>
    %cst_41 = arith.constant 0.000000e+00 : f32
    %125 = vector.broadcast %cst_41 : f32 to vector<8x64xf32>
    %126 = arith.maximumf %124, %125 : vector<8x64xf32>
    %127 = arith.truncf %126 : vector<8x64xf32> to vector<8x64xbf16>
    %c0_42 = arith.constant 0 : index
    %c0_43 = arith.constant 0 : index
    %128 = vector.load %arg10[%c0_42, %c0_43] : memref<64x32xbf16, #tpu.memory_space<vmem>>, vector<64x32xbf16>
    %cst_44 = arith.constant dense<0.000000e+00> : vector<8x32xf32>
    %129 = tpu.matmul %127, %128, %cst_44 {dimension_numbers = #tpu.dot_dimension_numbers<[1], [0], [0], [1], [0, 0, 1, 1], [], []>} : vector<8x64xbf16>, vector<64x32xbf16>, vector<8x32xf32> -> vector<8x32xf32>
    %c0_45 = arith.constant 0 : index
    %c0_46 = arith.constant 0 : index
    %130 = vector.load %arg11[%c0_45, %c0_46] : memref<1x32xf32, #tpu.memory_space<vmem>>, vector<1x32xf32>
    %131 = vector.broadcast %130 : vector<1x32xf32> to vector<8x32xf32>
    %132 = arith.addf %129, %131 : vector<8x32xf32>
    %133 = arith.addf %118, %132 : vector<8x32xf32>
    %c0_47 = arith.constant 0 : index
    %c0_48 = arith.constant 0 : index
    %134 = vector.load %arg12[%c0_47, %c0_48] : memref<1x32xf32, #tpu.memory_space<vmem>>, vector<1x32xf32>
    %c0_49 = arith.constant 0 : index
    %c0_50 = arith.constant 0 : index
    %135 = vector.load %arg13[%c0_49, %c0_50] : memref<1x32xf32, #tpu.memory_space<vmem>>, vector<1x32xf32>
    %cst_51 = arith.constant dense<0.000000e+00> : vector<8xf32>
    %136 = vector.multi_reduction <add>, %133, %cst_51 [1] : vector<8x32xf32> to vector<8xf32>
    %137 = vector.shape_cast %136 : vector<8xf32> to vector<8x1xf32>
    %cst_52 = arith.constant 3.200000e+01 : f32
    %138 = vector.broadcast %cst_52 : f32 to vector<8x1xf32>
    %139 = arith.divf %137, %138 : vector<8x1xf32>
    %140 = vector.broadcast %139 : vector<8x1xf32> to vector<8x32xf32>
    %141 = arith.subf %133, %140 : vector<8x32xf32>
    %142 = arith.mulf %141, %141 : vector<8x32xf32>
    %cst_53 = arith.constant dense<0.000000e+00> : vector<8xf32>
    %143 = vector.multi_reduction <add>, %142, %cst_53 [1] : vector<8x32xf32> to vector<8xf32>
    %144 = vector.shape_cast %143 : vector<8xf32> to vector<8x1xf32>
    %cst_54 = arith.constant 3.200000e+01 : f32
    %145 = vector.broadcast %cst_54 : f32 to vector<8x1xf32>
    %146 = arith.divf %144, %145 : vector<8x1xf32>
    %147 = vector.broadcast %139 : vector<8x1xf32> to vector<8x32xf32>
    %148 = arith.subf %133, %147 : vector<8x32xf32>
    %cst_55 = arith.constant 9.99999974E-6 : f32
    %149 = vector.broadcast %cst_55 : f32 to vector<8x1xf32>
    %150 = arith.addf %146, %149 : vector<8x1xf32>
    %151 = math.rsqrt %150 : vector<8x1xf32>
    %152 = vector.broadcast %151 : vector<8x1xf32> to vector<8x32xf32>
    %153 = arith.mulf %148, %152 : vector<8x32xf32>
    %154 = vector.broadcast %134 : vector<1x32xf32> to vector<8x32xf32>
    %155 = arith.mulf %153, %154 : vector<8x32xf32>
    %156 = vector.broadcast %135 : vector<1x32xf32> to vector<8x32xf32>
    %157 = arith.addf %155, %156 : vector<8x32xf32>
    %158 = arith.truncf %157 : vector<8x32xf32> to vector<8x32xbf16>
    %c0_56 = arith.constant 0 : index
    %c0_57 = arith.constant 0 : index
    %c0_58 = arith.constant 0 : index
    %159 = vector.load %arg14[%c0_56, %c0_57, %c0_58] : memref<1x8x32xbf16, #tpu.memory_space<vmem>>, vector<1x8x32xbf16>
    %160 = vector.shape_cast %159 : vector<1x8x32xbf16> to vector<8x32xbf16>
    %161 = vector.shape_cast %158 : vector<8x32xbf16> to vector<1x8x32xbf16>
    tpu.vector_store %arg14[%c0_56, %c0_57, %c0_58], %161 {strides = array<i32>} : memref<1x8x32xbf16, #tpu.memory_space<vmem>>, vector<1x8x32xbf16>,
    return
  }
  func.func @transform_0(%arg0: i32) -> (i32, i32, i32) {
    %c0_i32 = arith.constant 0 : i32
    %c0_i32_0 = arith.constant 0 : i32
    %c0_i32_1 = arith.constant 0 : i32
    return %arg0, %c0_i32, %c0_i32_0 : i32, i32, i32
  }
  func.func @transform_1(%arg0: i32) -> (i32, i32) {
    %c0_i32 = arith.constant 0 : i32
    %c0_i32_0 = arith.constant 0 : i32
    %c0_i32_1 = arith.constant 0 : i32
    return %c0_i32, %c0_i32_0 : i32, i32
  }
  func.func @transform_2(%arg0: i32) -> (i32, i32) {
    %c0_i32 = arith.constant 0 : i32
    %c0_i32_0 = arith.constant 0 : i32
    %c0_i32_1 = arith.constant 0 : i32
    return %c0_i32, %c0_i32_0 : i32, i32
  }
  func.func @transform_3(%arg0: i32) -> (i32, i32) {
    %c0_i32 = arith.constant 0 : i32
    %c0_i32_0 = arith.constant 0 : i32
    %c0_i32_1 = arith.constant 0 : i32
    return %c0_i32, %c0_i32_0 : i32, i32
  }
  func.func @transform_4(%arg0: i32) -> (i32, i32) {
    %c0_i32 = arith.constant 0 : i32
    %c0_i32_0 = arith.constant 0 : i32
    %c0_i32_1 = arith.constant 0 : i32
    return %c0_i32, %c0_i32_0 : i32, i32
  }
  func.func @transform_5(%arg0: i32) -> (i32, i32) {
    %c0_i32 = arith.constant 0 : i32
    %c0_i32_0 = arith.constant 0 : i32
    %c0_i32_1 = arith.constant 0 : i32
    return %c0_i32, %c0_i32_0 : i32, i32
  }
  func.func @transform_6(%arg0: i32) -> (i32, i32) {
    %c0_i32 = arith.constant 0 : i32
    %c0_i32_0 = arith.constant 0 : i32
    %c0_i32_1 = arith.constant 0 : i32
    return %c0_i32, %c0_i32_0 : i32, i32
  }
  func.func @transform_7(%arg0: i32) -> (i32, i32) {
    %c0_i32 = arith.constant 0 : i32
    %c0_i32_0 = arith.constant 0 : i32
    %c0_i32_1 = arith.constant 0 : i32
    return %c0_i32, %c0_i32_0 : i32, i32
  }
  func.func @transform_8(%arg0: i32) -> (i32, i32) {
    %c0_i32 = arith.constant 0 : i32
    %c0_i32_0 = arith.constant 0 : i32
    %c0_i32_1 = arith.constant 0 : i32
    return %c0_i32, %c0_i32_0 : i32, i32
  }
  func.func @transform_9(%arg0: i32) -> (i32, i32) {
    %c0_i32 = arith.constant 0 : i32
    %c0_i32_0 = arith.constant 0 : i32
    %c0_i32_1 = arith.constant 0 : i32
    return %c0_i32, %c0_i32_0 : i32, i32
  }
  func.func @transform_10(%arg0: i32) -> (i32, i32) {
    %c0_i32 = arith.constant 0 : i32
    %c0_i32_0 = arith.constant 0 : i32
    %c0_i32_1 = arith.constant 0 : i32
    return %c0_i32, %c0_i32_0 : i32, i32
  }
  func.func @transform_11(%arg0: i32) -> (i32, i32) {
    %c0_i32 = arith.constant 0 : i32
    %c0_i32_0 = arith.constant 0 : i32
    %c0_i32_1 = arith.constant 0 : i32
    return %c0_i32, %c0_i32_0 : i32, i32
  }
  func.func @transform_12(%arg0: i32) -> (i32, i32) {
    %c0_i32 = arith.constant 0 : i32
    %c0_i32_0 = arith.constant 0 : i32
    %c0_i32_1 = arith.constant 0 : i32
    return %c0_i32, %c0_i32_0 : i32, i32
  }
  func.func @transform_13(%arg0: i32) -> (i32, i32, i32) {
    %c0_i32 = arith.constant 0 : i32
    %c0_i32_0 = arith.constant 0 : i32
    %c0_i32_1 = arith.constant 0 : i32
    return %arg0, %c0_i32, %c0_i32_0 : i32, i32, i32
  }
}

module attributes {stable_mosaic.version = 11 : i64} {
  func.func @_encoder_layer_kernel(%arg0: i32, %arg1: memref<1x8x32xf32, #tpu.memory_space<vmem>>, %arg2: memref<32x96xbf16, #tpu.memory_space<vmem>>, %arg3: memref<1x96xf32, #tpu.memory_space<vmem>>, %arg4: memref<32x32xbf16, #tpu.memory_space<vmem>>, %arg5: memref<1x32xf32, #tpu.memory_space<vmem>>, %arg6: memref<1x32xf32, #tpu.memory_space<vmem>>, %arg7: memref<1x32xf32, #tpu.memory_space<vmem>>, %arg8: memref<32x64xbf16, #tpu.memory_space<vmem>>, %arg9: memref<1x64xf32, #tpu.memory_space<vmem>>, %arg10: memref<64x32xbf16, #tpu.memory_space<vmem>>, %arg11: memref<1x32xf32, #tpu.memory_space<vmem>>, %arg12: memref<1x32xf32, #tpu.memory_space<vmem>>, %arg13: memref<1x32xf32, #tpu.memory_space<vmem>>, %arg14: memref<1x8x32xbf16, #tpu.memory_space<vmem>>) attributes {dimension_semantics = [#tpu.dimension_semantics<parallel>], iteration_bounds = array<i64: 2>, scalar_prefetch = 0 : i64, scratch_operands = 0 : i64, tpu.core_type = #tpu.core_type<tc>, window_params = [{transform_indices = @transform_0, window_bounds = array<i64: 1, 8, 32>}, {pipeline_mode = #tpu.pipeline_mode<synchronous>, transform_indices = @transform_1, window_bounds = array<i64: 32, 96>}, {pipeline_mode = #tpu.pipeline_mode<synchronous>, transform_indices = @transform_2, window_bounds = array<i64: 1, 96>}, {pipeline_mode = #tpu.pipeline_mode<synchronous>, transform_indices = @transform_3, window_bounds = array<i64: 32, 32>}, {pipeline_mode = #tpu.pipeline_mode<synchronous>, transform_indices = @transform_4, window_bounds = array<i64: 1, 32>}, {pipeline_mode = #tpu.pipeline_mode<synchronous>, transform_indices = @transform_5, window_bounds = array<i64: 1, 32>}, {pipeline_mode = #tpu.pipeline_mode<synchronous>, transform_indices = @transform_6, window_bounds = array<i64: 1, 32>}, {pipeline_mode = #tpu.pipeline_mode<synchronous>, transform_indices = @transform_7, window_bounds = array<i64: 32, 64>}, {pipeline_mode = #tpu.pipeline_mode<synchronous>, transform_indices = @transform_8, window_bounds = array<i64: 1, 64>}, {pipeline_mode = #tpu.pipeline_mode<synchronous>, transform_indices = @transform_9, window_bounds = array<i64: 64, 32>}, {pipeline_mode = #tpu.pipeline_mode<synchronous>, transform_indices = @transform_10, window_bounds = array<i64: 1, 32>}, {pipeline_mode = #tpu.pipeline_mode<synchronous>, transform_indices = @transform_11, window_bounds = array<i64: 1, 32>}, {pipeline_mode = #tpu.pipeline_mode<synchronous>, transform_indices = @transform_12, window_bounds = array<i64: 1, 32>}, {transform_indices = @transform_13, window_bounds = array<i64: 1, 8, 32>}]} {
    %c0 = arith.constant 0 : index
    %c0_0 = arith.constant 0 : index
    %c0_1 = arith.constant 0 : index
    %0 = vector.load %arg1[%c0, %c0_0, %c0_1] : memref<1x8x32xf32, #tpu.memory_space<vmem>>, vector<1x8x32xf32>
    %1 = vector.shape_cast %0 : vector<1x8x32xf32> to vector<8x32xf32>
    %2 = arith.truncf %1 : vector<8x32xf32> to vector<8x32xbf16>
    %c0_2 = arith.constant 0 : index
    %c0_3 = arith.constant 0 : index
    %3 = vector.load %arg2[%c0_2, %c0_3] : memref<32x96xbf16, #tpu.memory_space<vmem>>, vector<32x96xbf16>
    %cst = arith.constant dense<0.000000e+00> : vector<8x96xf32>
    %4 = tpu.matmul %2, %3, %cst {dimension_numbers = #tpu.dot_dimension_numbers<[1], [0], [0], [1], [0, 0, 1, 1], [], []>} : vector<8x32xbf16>, vector<32x96xbf16>, vector<8x96xf32> -> vector<8x96xf32>
    %c0_4 = arith.constant 0 : index
    %c0_5 = arith.constant 0 : index
    %5 = vector.load %arg3[%c0_4, %c0_5] : memref<1x96xf32, #tpu.memory_space<vmem>>, vector<1x96xf32>
    %6 = vector.broadcast %5 : vector<1x96xf32> to vector<8x96xf32>
    %7 = arith.addf %4, %6 : vector<8x96xf32>
    %8 = vector.extract_strided_slice %7 {offsets = [0, 0], sizes = [8, 32], strides = [1, 1]} : vector<8x96xf32> to vector<8x32xf32>
    %9 = vector.extract_strided_slice %7 {offsets = [0, 32], sizes = [8, 32], strides = [1, 1]} : vector<8x96xf32> to vector<8x32xf32>
    %10 = vector.extract_strided_slice %7 {offsets = [0, 64], sizes = [8, 32], strides = [1, 1]} : vector<8x96xf32> to vector<8x32xf32>
    %11 = vector.extract_strided_slice %8 {offsets = [0, 0], sizes = [8, 8], strides = [1, 1]} : vector<8x32xf32> to vector<8x8xf32>
    %12 = arith.truncf %11 : vector<8x8xf32> to vector<8x8xbf16>
    %13 = vector.extract_strided_slice %9 {offsets = [0, 0], sizes = [8, 8], strides = [1, 1]} : vector<8x32xf32> to vector<8x8xf32>
    %14 = arith.truncf %13 : vector<8x8xf32> to vector<8x8xbf16>
    %15 = vector.extract_strided_slice %10 {offsets = [0, 0], sizes = [8, 8], strides = [1, 1]} : vector<8x32xf32> to vector<8x8xf32>
    %16 = arith.truncf %15 : vector<8x8xf32> to vector<8x8xbf16>
    %cst_6 = arith.constant dense<0.000000e+00> : vector<8x8xf32>
    %17 = tpu.matmul %12, %14, %cst_6 {dimension_numbers = #tpu.dot_dimension_numbers<[1], [1], [0], [0], [0, 0, 1, 0], [], []>} : vector<8x8xbf16>, vector<8x8xbf16>, vector<8x8xf32> -> vector<8x8xf32>
    %cst_7 = arith.constant dense<0xFF800000> : vector<8xf32>
    %18 = vector.multi_reduction <maximumf>, %17, %cst_7 [1] : vector<8x8xf32> to vector<8xf32>
    %19 = vector.shape_cast %18 : vector<8xf32> to vector<8x1xf32>
    %20 = vector.broadcast %19 : vector<8x1xf32> to vector<8x8xf32>
    %21 = arith.subf %17, %20 : vector<8x8xf32>
    %22 = math.exp %21 : vector<8x8xf32>
    %cst_8 = arith.constant dense<0.000000e+00> : vector<8xf32>
    %23 = vector.multi_reduction <add>, %22, %cst_8 [1] : vector<8x8xf32> to vector<8xf32>
    %24 = vector.shape_cast %23 : vector<8xf32> to vector<8x1xf32>
    %25 = tpu.reciprocal %24 {approx = true} : vector<8x1xf32> -> vector<8x1xf32>
    %26 = vector.broadcast %25 : vector<8x1xf32> to vector<8x8xf32>
    %27 = arith.mulf %22, %26 : vector<8x8xf32>
    %28 = arith.truncf %27 : vector<8x8xf32> to vector<8x8xbf16>
    %cst_9 = arith.constant dense<0.000000e+00> : vector<8x8xf32>
    %29 = tpu.matmul %28, %16, %cst_9 {dimension_numbers = #tpu.dot_dimension_numbers<[1], [0], [0], [1], [0, 0, 1, 1], [], []>} : vector<8x8xbf16>, vector<8x8xbf16>, vector<8x8xf32> -> vector<8x8xf32>
    %30 = vector.extract_strided_slice %8 {offsets = [0, 8], sizes = [8, 8], strides = [1, 1]} : vector<8x32xf32> to vector<8x8xf32>
    %31 = arith.truncf %30 : vector<8x8xf32> to vector<8x8xbf16>
    %32 = vector.extract_strided_slice %9 {offsets = [0, 8], sizes = [8, 8], strides = [1, 1]} : vector<8x32xf32> to vector<8x8xf32>
    %33 = arith.truncf %32 : vector<8x8xf32> to vector<8x8xbf16>
    %34 = vector.extract_strided_slice %10 {offsets = [0, 8], sizes = [8, 8], strides = [1, 1]} : vector<8x32xf32> to vector<8x8xf32>
    %35 = arith.truncf %34 : vector<8x8xf32> to vector<8x8xbf16>
    %cst_10 = arith.constant dense<0.000000e+00> : vector<8x8xf32>
    %36 = tpu.matmul %31, %33, %cst_10 {dimension_numbers = #tpu.dot_dimension_numbers<[1], [1], [0], [0], [0, 0, 1, 0], [], []>} : vector<8x8xbf16>, vector<8x8xbf16>, vector<8x8xf32> -> vector<8x8xf32>
    %cst_11 = arith.constant dense<0xFF800000> : vector<8xf32>
    %37 = vector.multi_reduction <maximumf>, %36, %cst_11 [1] : vector<8x8xf32> to vector<8xf32>
    %38 = vector.shape_cast %37 : vector<8xf32> to vector<8x1xf32>
    %39 = vector.broadcast %38 : vector<8x1xf32> to vector<8x8xf32>
    %40 = arith.subf %36, %39 : vector<8x8xf32>
    %41 = math.exp %40 : vector<8x8xf32>
    %cst_12 = arith.constant dense<0.000000e+00> : vector<8xf32>
    %42 = vector.multi_reduction <add>, %41, %cst_12 [1] : vector<8x8xf32> to vector<8xf32>
    %43 = vector.shape_cast %42 : vector<8xf32> to vector<8x1xf32>
    %44 = tpu.reciprocal %43 {approx = true} : vector<8x1xf32> -> vector<8x1xf32>
    %45 = vector.broadcast %44 : vector<8x1xf32> to vector<8x8xf32>
    %46 = arith.mulf %41, %45 : vector<8x8xf32>
    %47 = arith.truncf %46 : vector<8x8xf32> to vector<8x8xbf16>
    %cst_13 = arith.constant dense<0.000000e+00> : vector<8x8xf32>
    %48 = tpu.matmul %47, %35, %cst_13 {dimension_numbers = #tpu.dot_dimension_numbers<[1], [0], [0], [1], [0, 0, 1, 1], [], []>} : vector<8x8xbf16>, vector<8x8xbf16>, vector<8x8xf32> -> vector<8x8xf32>
    %49 = vector.extract_strided_slice %8 {offsets = [0, 16], sizes = [8, 8], strides = [1, 1]} : vector<8x32xf32> to vector<8x8xf32>
    %50 = arith.truncf %49 : vector<8x8xf32> to vector<8x8xbf16>
    %51 = vector.extract_strided_slice %9 {offsets = [0, 16], sizes = [8, 8], strides = [1, 1]} : vector<8x32xf32> to vector<8x8xf32>
    %52 = arith.truncf %51 : vector<8x8xf32> to vector<8x8xbf16>
    %53 = vector.extract_strided_slice %10 {offsets = [0, 16], sizes = [8, 8], strides = [1, 1]} : vector<8x32xf32> to vector<8x8xf32>
    %54 = arith.truncf %53 : vector<8x8xf32> to vector<8x8xbf16>
    %cst_14 = arith.constant dense<0.000000e+00> : vector<8x8xf32>
    %55 = tpu.matmul %50, %52, %cst_14 {dimension_numbers = #tpu.dot_dimension_numbers<[1], [1], [0], [0], [0, 0, 1, 0], [], []>} : vector<8x8xbf16>, vector<8x8xbf16>, vector<8x8xf32> -> vector<8x8xf32>
    %cst_15 = arith.constant dense<0xFF800000> : vector<8xf32>
    %56 = vector.multi_reduction <maximumf>, %55, %cst_15 [1] : vector<8x8xf32> to vector<8xf32>
    %57 = vector.shape_cast %56 : vector<8xf32> to vector<8x1xf32>
    %58 = vector.broadcast %57 : vector<8x1xf32> to vector<8x8xf32>
    %59 = arith.subf %55, %58 : vector<8x8xf32>
    %60 = math.exp %59 : vector<8x8xf32>
    %cst_16 = arith.constant dense<0.000000e+00> : vector<8xf32>
    %61 = vector.multi_reduction <add>, %60, %cst_16 [1] : vector<8x8xf32> to vector<8xf32>
    %62 = vector.shape_cast %61 : vector<8xf32> to vector<8x1xf32>
    %63 = tpu.reciprocal %62 {approx = true} : vector<8x1xf32> -> vector<8x1xf32>
    %64 = vector.broadcast %63 : vector<8x1xf32> to vector<8x8xf32>
    %65 = arith.mulf %60, %64 : vector<8x8xf32>
    %66 = arith.truncf %65 : vector<8x8xf32> to vector<8x8xbf16>
    %cst_17 = arith.constant dense<0.000000e+00> : vector<8x8xf32>
    %67 = tpu.matmul %66, %54, %cst_17 {dimension_numbers = #tpu.dot_dimension_numbers<[1], [0], [0], [1], [0, 0, 1, 1], [], []>} : vector<8x8xbf16>, vector<8x8xbf16>, vector<8x8xf32> -> vector<8x8xf32>
    %68 = vector.extract_strided_slice %8 {offsets = [0, 24], sizes = [8, 8], strides = [1, 1]} : vector<8x32xf32> to vector<8x8xf32>
    %69 = arith.truncf %68 : vector<8x8xf32> to vector<8x8xbf16>
    %70 = vector.extract_strided_slice %9 {offsets = [0, 24], sizes = [8, 8], strides = [1, 1]} : vector<8x32xf32> to vector<8x8xf32>
    %71 = arith.truncf %70 : vector<8x8xf32> to vector<8x8xbf16>
    %72 = vector.extract_strided_slice %10 {offsets = [0, 24], sizes = [8, 8], strides = [1, 1]} : vector<8x32xf32> to vector<8x8xf32>
    %73 = arith.truncf %72 : vector<8x8xf32> to vector<8x8xbf16>
    %cst_18 = arith.constant dense<0.000000e+00> : vector<8x8xf32>
    %74 = tpu.matmul %69, %71, %cst_18 {dimension_numbers = #tpu.dot_dimension_numbers<[1], [1], [0], [0], [0, 0, 1, 0], [], []>} : vector<8x8xbf16>, vector<8x8xbf16>, vector<8x8xf32> -> vector<8x8xf32>
    %cst_19 = arith.constant dense<0xFF800000> : vector<8xf32>
    %75 = vector.multi_reduction <maximumf>, %74, %cst_19 [1] : vector<8x8xf32> to vector<8xf32>
    %76 = vector.shape_cast %75 : vector<8xf32> to vector<8x1xf32>
    %77 = vector.broadcast %76 : vector<8x1xf32> to vector<8x8xf32>
    %78 = arith.subf %74, %77 : vector<8x8xf32>
    %79 = math.exp %78 : vector<8x8xf32>
    %cst_20 = arith.constant dense<0.000000e+00> : vector<8xf32>
    %80 = vector.multi_reduction <add>, %79, %cst_20 [1] : vector<8x8xf32> to vector<8xf32>
    %81 = vector.shape_cast %80 : vector<8xf32> to vector<8x1xf32>
    %82 = tpu.reciprocal %81 {approx = true} : vector<8x1xf32> -> vector<8x1xf32>
    %83 = vector.broadcast %82 : vector<8x1xf32> to vector<8x8xf32>
    %84 = arith.mulf %79, %83 : vector<8x8xf32>
    %85 = arith.truncf %84 : vector<8x8xf32> to vector<8x8xbf16>
    %cst_21 = arith.constant dense<0.000000e+00> : vector<8x8xf32>
    %86 = tpu.matmul %85, %73, %cst_21 {dimension_numbers = #tpu.dot_dimension_numbers<[1], [0], [0], [1], [0, 0, 1, 1], [], []>} : vector<8x8xbf16>, vector<8x8xbf16>, vector<8x8xf32> -> vector<8x8xf32>
    %87 = tpu.concatenate %29, %48, %67, %86 in 1 : vector<8x8xf32>, vector<8x8xf32>, vector<8x8xf32>, vector<8x8xf32> -> vector<8x32xf32>
    %88 = arith.truncf %87 : vector<8x32xf32> to vector<8x32xbf16>
    %c0_22 = arith.constant 0 : index
    %c0_23 = arith.constant 0 : index
    %89 = vector.load %arg4[%c0_22, %c0_23] : memref<32x32xbf16, #tpu.memory_space<vmem>>, vector<32x32xbf16>
    %cst_24 = arith.constant dense<0.000000e+00> : vector<8x32xf32>
    %90 = tpu.matmul %88, %89, %cst_24 {dimension_numbers = #tpu.dot_dimension_numbers<[1], [0], [0], [1], [0, 0, 1, 1], [], []>} : vector<8x32xbf16>, vector<32x32xbf16>, vector<8x32xf32> -> vector<8x32xf32>
    %c0_25 = arith.constant 0 : index
    %c0_26 = arith.constant 0 : index
    %91 = vector.load %arg5[%c0_25, %c0_26] : memref<1x32xf32, #tpu.memory_space<vmem>>, vector<1x32xf32>
    %92 = vector.broadcast %91 : vector<1x32xf32> to vector<8x32xf32>
    %93 = arith.addf %90, %92 : vector<8x32xf32>
    %94 = arith.addf %1, %93 : vector<8x32xf32>
    %c0_27 = arith.constant 0 : index
    %c0_28 = arith.constant 0 : index
    %95 = vector.load %arg6[%c0_27, %c0_28] : memref<1x32xf32, #tpu.memory_space<vmem>>, vector<1x32xf32>
    %c0_29 = arith.constant 0 : index
    %c0_30 = arith.constant 0 : index
    %96 = vector.load %arg7[%c0_29, %c0_30] : memref<1x32xf32, #tpu.memory_space<vmem>>, vector<1x32xf32>
    %cst_31 = arith.constant dense<0.000000e+00> : vector<8xf32>
    %97 = vector.multi_reduction <add>, %94, %cst_31 [1] : vector<8x32xf32> to vector<8xf32>
    %98 = vector.shape_cast %97 : vector<8xf32> to vector<8x1xf32>
    %cst_32 = arith.constant 3.200000e+01 : f32
    %99 = vector.broadcast %cst_32 : f32 to vector<8x1xf32>
    %100 = arith.divf %98, %99 : vector<8x1xf32>
    %101 = vector.broadcast %100 : vector<8x1xf32> to vector<8x32xf32>
    %102 = arith.subf %94, %101 : vector<8x32xf32>
    %103 = arith.mulf %102, %102 : vector<8x32xf32>
    %cst_33 = arith.constant dense<0.000000e+00> : vector<8xf32>
    %104 = vector.multi_reduction <add>, %103, %cst_33 [1] : vector<8x32xf32> to vector<8xf32>
    %105 = vector.shape_cast %104 : vector<8xf32> to vector<8x1xf32>
    %cst_34 = arith.constant 3.200000e+01 : f32
    %106 = vector.broadcast %cst_34 : f32 to vector<8x1xf32>
    %107 = arith.divf %105, %106 : vector<8x1xf32>
    %108 = vector.broadcast %100 : vector<8x1xf32> to vector<8x32xf32>
    %109 = arith.subf %94, %108 : vector<8x32xf32>
    %cst_35 = arith.constant 9.99999974E-6 : f32
    %110 = vector.broadcast %cst_35 : f32 to vector<8x1xf32>
    %111 = arith.addf %107, %110 : vector<8x1xf32>
    %112 = math.rsqrt %111 : vector<8x1xf32>
    %113 = vector.broadcast %112 : vector<8x1xf32> to vector<8x32xf32>
    %114 = arith.mulf %109, %113 : vector<8x32xf32>
    %115 = vector.broadcast %95 : vector<1x32xf32> to vector<8x32xf32>
    %116 = arith.mulf %114, %115 : vector<8x32xf32>
    %117 = vector.broadcast %96 : vector<1x32xf32> to vector<8x32xf32>
    %118 = arith.addf %116, %117 : vector<8x32xf32>
    %119 = arith.truncf %118 : vector<8x32xf32> to vector<8x32xbf16>
    %c0_36 = arith.constant 0 : index
    %c0_37 = arith.constant 0 : index
    %120 = vector.load %arg8[%c0_36, %c0_37] : memref<32x64xbf16, #tpu.memory_space<vmem>>, vector<32x64xbf16>
    %cst_38 = arith.constant dense<0.000000e+00> : vector<8x64xf32>
    %121 = tpu.matmul %119, %120, %cst_38 {dimension_numbers = #tpu.dot_dimension_numbers<[1], [0], [0], [1], [0, 0, 1, 1], [], []>} : vector<8x32xbf16>, vector<32x64xbf16>, vector<8x64xf32> -> vector<8x64xf32>
    %c0_39 = arith.constant 0 : index
    %c0_40 = arith.constant 0 : index
    %122 = vector.load %arg9[%c0_39, %c0_40] : memref<1x64xf32, #tpu.memory_space<vmem>>, vector<1x64xf32>
    %123 = vector.broadcast %122 : vector<1x64xf32> to vector<8x64xf32>
    %124 = arith.addf %121, %123 : vector<8x64xf32>
    %cst_41 = arith.constant 0.000000e+00 : f32
    %125 = vector.broadcast %cst_41 : f32 to vector<8x64xf32>
    %126 = arith.maximumf %124, %125 : vector<8x64xf32>
    %127 = arith.truncf %126 : vector<8x64xf32> to vector<8x64xbf16>
    %c0_42 = arith.constant 0 : index
    %c0_43 = arith.constant 0 : index
    %128 = vector.load %arg10[%c0_42, %c0_43] : memref<64x32xbf16, #tpu.memory_space<vmem>>, vector<64x32xbf16>
    %cst_44 = arith.constant dense<0.000000e+00> : vector<8x32xf32>
    %129 = tpu.matmul %127, %128, %cst_44 {dimension_numbers = #tpu.dot_dimension_numbers<[1], [0], [0], [1], [0, 0, 1, 1], [], []>} : vector<8x64xbf16>, vector<64x32xbf16>, vector<8x32xf32> -> vector<8x32xf32>
    %c0_45 = arith.constant 0 : index
    %c0_46 = arith.constant 0 : index
    %130 = vector.load %arg11[%c0_45, %c0_46] : memref<1x32xf32, #tpu.memory_space<vmem>>, vector<1x32xf32>
    %131 = vector.broadcast %130 : vector<1x32xf32> to vector<8x32xf32>
    %132 = arith.addf %129, %131 : vector<8x32xf32>
    %133 = arith.addf %118, %132 : vector<8x32xf32>
    %c0_47 = arith.constant 0 : index
    %c0_48 = arith.constant 0 : index
    %134 = vector.load %arg12[%c0_47, %c0_48] : memref<1x32xf32, #tpu.memory_space<vmem>>, vector<1x32xf32>
    %c0_49 = arith.constant 0 : index
    %c0_50 = arith.constant 0 : index
    %135 = vector.load %arg13[%c0_49, %c0_50] : memref<1x32xf32, #tpu.memory_space<vmem>>, vector<1x32xf32>
    %cst_51 = arith.constant dense<0.000000e+00> : vector<8xf32>
    %136 = vector.multi_reduction <add>, %133, %cst_51 [1] : vector<8x32xf32> to vector<8xf32>
    %137 = vector.shape_cast %136 : vector<8xf32> to vector<8x1xf32>
    %cst_52 = arith.constant 3.200000e+01 : f32
    %138 = vector.broadcast %cst_52 : f32 to vector<8x1xf32>
    %139 = arith.divf %137, %138 : vector<8x1xf32>
    %140 = vector.broadcast %139 : vector<8x1xf32> to vector<8x32xf32>
    %141 = arith.subf %133, %140 : vector<8x32xf32>
    %142 = arith.mulf %141, %141 : vector<8x32xf32>
    %cst_53 = arith.constant dense<0.000000e+00> : vector<8xf32>
    %143 = vector.multi_reduction <add>, %142, %cst_53 [1] : vector<8x32xf32> to vector<8xf32>
    %144 = vector.shape_cast %143 : vector<8xf32> to vector<8x1xf32>
    %cst_54 = arith.constant 3.200000e+01 : f32
    %145 = vector.broadcast %cst_54 : f32 to vector<8x1xf32>
    %146 = arith.divf %144, %145 : vector<8x1xf32>
    %147 = vector.broadcast %139 : vector<8x1xf32> to vector<8x32xf32>
    %148 = arith.subf %133, %147 : vector<8x32xf32>
    %cst_55 = arith.constant 9.99999974E-6 : f32
    %149 = vector.broadcast %cst_55 : f32 to vector<8x1xf32>
    %150 = arith.addf %146, %149 : vector<8x1xf32>
    %151 = math.rsqrt %150 : vector<8x1xf32>
    %152 = vector.broadcast %151 : vector<8x1xf32> to vector<8x32xf32>
    %153 = arith.mulf %148, %152 : vector<8x32xf32>
    %154 = vector.broadcast %134 : vector<1x32xf32> to vector<8x32xf32>
    %155 = arith.mulf %153, %154 : vector<8x32xf32>
    %156 = vector.broadcast %135 : vector<1x32xf32> to vector<8x32xf32>
    %157 = arith.addf %155, %156 : vector<8x32xf32>
    %158 = arith.truncf %157 : vector<8x32xf32> to vector<8x32xbf16>
    %c0_56 = arith.constant 0 : index
    %c0_57 = arith.constant 0 : index
    %c0_58 = arith.constant 0 : index
    %159 = vector.load %arg14[%c0_56, %c0_57, %c0_58] : memref<1x8x32xbf16, #tpu.memory_space<vmem>>, vector<1x8x32xbf16>
    %160 = vector.shape_cast %159 : vector<1x8x32xbf16> to vector<8x32xbf16>
    %161 = vector.shape_cast %158 : vector<8x32xbf16> to vector<1x8x32xbf16>
    tpu.vector_store %arg14[%c0_56, %c0_57, %c0_58], %161 {strides = array<i32>} : memref<1x8x32xbf16, #tpu.memory_space<vmem>>, vector<1x8x32xbf16>,
    return
  }
  func.func @transform_0(%arg0: i32) -> (i32, i32, i32) {
    %c0_i32 = arith.constant 0 : i32
    %c0_i32_0 = arith.constant 0 : i32
    %c0_i32_1 = arith.constant 0 : i32
    return %arg0, %c0_i32, %c0_i32_0 : i32, i32, i32
  }
  func.func @transform_1(%arg0: i32) -> (i32, i32) {
    %c0_i32 = arith.constant 0 : i32
    %c0_i32_0 = arith.constant 0 : i32
    %c0_i32_1 = arith.constant 0 : i32
    return %c0_i32, %c0_i32_0 : i32, i32
  }
  func.func @transform_2(%arg0: i32) -> (i32, i32) {
    %c0_i32 = arith.constant 0 : i32
    %c0_i32_0 = arith.constant 0 : i32
    %c0_i32_1 = arith.constant 0 : i32
    return %c0_i32, %c0_i32_0 : i32, i32
  }
  func.func @transform_3(%arg0: i32) -> (i32, i32) {
    %c0_i32 = arith.constant 0 : i32
    %c0_i32_0 = arith.constant 0 : i32
    %c0_i32_1 = arith.constant 0 : i32
    return %c0_i32, %c0_i32_0 : i32, i32
  }
  func.func @transform_4(%arg0: i32) -> (i32, i32) {
    %c0_i32 = arith.constant 0 : i32
    %c0_i32_0 = arith.constant 0 : i32
    %c0_i32_1 = arith.constant 0 : i32
    return %c0_i32, %c0_i32_0 : i32, i32
  }
  func.func @transform_5(%arg0: i32) -> (i32, i32) {
    %c0_i32 = arith.constant 0 : i32
    %c0_i32_0 = arith.constant 0 : i32
    %c0_i32_1 = arith.constant 0 : i32
    return %c0_i32, %c0_i32_0 : i32, i32
  }
  func.func @transform_6(%arg0: i32) -> (i32, i32) {
    %c0_i32 = arith.constant 0 : i32
    %c0_i32_0 = arith.constant 0 : i32
    %c0_i32_1 = arith.constant 0 : i32
    return %c0_i32, %c0_i32_0 : i32, i32
  }
  func.func @transform_7(%arg0: i32) -> (i32, i32) {
    %c0_i32 = arith.constant 0 : i32
    %c0_i32_0 = arith.constant 0 : i32
    %c0_i32_1 = arith.constant 0 : i32
    return %c0_i32, %c0_i32_0 : i32, i32
  }
  func.func @transform_8(%arg0: i32) -> (i32, i32) {
    %c0_i32 = arith.constant 0 : i32
    %c0_i32_0 = arith.constant 0 : i32
    %c0_i32_1 = arith.constant 0 : i32
    return %c0_i32, %c0_i32_0 : i32, i32
  }
  func.func @transform_9(%arg0: i32) -> (i32, i32) {
    %c0_i32 = arith.constant 0 : i32
    %c0_i32_0 = arith.constant 0 : i32
    %c0_i32_1 = arith.constant 0 : i32
    return %c0_i32, %c0_i32_0 : i32, i32
  }
  func.func @transform_10(%arg0: i32) -> (i32, i32) {
    %c0_i32 = arith.constant 0 : i32
    %c0_i32_0 = arith.constant 0 : i32
    %c0_i32_1 = arith.constant 0 : i32
    return %c0_i32, %c0_i32_0 : i32, i32
  }
  func.func @transform_11(%arg0: i32) -> (i32, i32) {
    %c0_i32 = arith.constant 0 : i32
    %c0_i32_0 = arith.constant 0 : i32
    %c0_i32_1 = arith.constant 0 : i32
    return %c0_i32, %c0_i32_0 : i32, i32
  }
  func.func @transform_12(%arg0: i32) -> (i32, i32) {
    %c0_i32 = arith.constant 0 : i32
    %c0_i32_0 = arith.constant 0 : i32
    %c0_i32_1 = arith.constant 0 : i32
    return %c0_i32, %c0_i32_0 : i32, i32
  }
  func.func @transform_13(%arg0: i32) -> (i32, i32, i32) {
    %c0_i32 = arith.constant 0 : i32
    %c0_i32_0 = arith.constant 0 : i32
    %c0_i32_1 = arith.constant 0 : i32
    return %arg0, %c0_i32, %c0_i32_0 : i32, i32, i32
  }
}

module attributes {stable_mosaic.version = 11 : i64} {
  func.func @_decoder_layer_kernel(%arg0: i32, %arg1: memref<1x8x32xbf16, #tpu.memory_space<vmem>>, %arg2: memref<1x8x32xbf16, #tpu.memory_space<vmem>>, %arg3: memref<32x96xbf16, #tpu.memory_space<vmem>>, %arg4: memref<1x96xf32, #tpu.memory_space<vmem>>, %arg5: memref<32x32xbf16, #tpu.memory_space<vmem>>, %arg6: memref<1x32xf32, #tpu.memory_space<vmem>>, %arg7: memref<1x32xf32, #tpu.memory_space<vmem>>, %arg8: memref<1x32xf32, #tpu.memory_space<vmem>>, %arg9: memref<32x32xbf16, #tpu.memory_space<vmem>>, %arg10: memref<1x32xf32, #tpu.memory_space<vmem>>, %arg11: memref<32x64xbf16, #tpu.memory_space<vmem>>, %arg12: memref<1x64xf32, #tpu.memory_space<vmem>>, %arg13: memref<32x32xbf16, #tpu.memory_space<vmem>>, %arg14: memref<1x32xf32, #tpu.memory_space<vmem>>, %arg15: memref<1x32xf32, #tpu.memory_space<vmem>>, %arg16: memref<1x32xf32, #tpu.memory_space<vmem>>, %arg17: memref<32x64xbf16, #tpu.memory_space<vmem>>, %arg18: memref<1x64xf32, #tpu.memory_space<vmem>>, %arg19: memref<64x32xbf16, #tpu.memory_space<vmem>>, %arg20: memref<1x32xf32, #tpu.memory_space<vmem>>, %arg21: memref<1x32xf32, #tpu.memory_space<vmem>>, %arg22: memref<1x32xf32, #tpu.memory_space<vmem>>, %arg23: memref<1x8x32xbf16, #tpu.memory_space<vmem>>) attributes {dimension_semantics = [#tpu.dimension_semantics<parallel>], iteration_bounds = array<i64: 2>, scalar_prefetch = 0 : i64, scratch_operands = 0 : i64, tpu.core_type = #tpu.core_type<tc>, window_params = [{transform_indices = @transform_0, window_bounds = array<i64: 1, 8, 32>}, {transform_indices = @transform_1, window_bounds = array<i64: 1, 8, 32>}, {pipeline_mode = #tpu.pipeline_mode<synchronous>, transform_indices = @transform_2, window_bounds = array<i64: 32, 96>}, {pipeline_mode = #tpu.pipeline_mode<synchronous>, transform_indices = @transform_3, window_bounds = array<i64: 1, 96>}, {pipeline_mode = #tpu.pipeline_mode<synchronous>, transform_indices = @transform_4, window_bounds = array<i64: 32, 32>}, {pipeline_mode = #tpu.pipeline_mode<synchronous>, transform_indices = @transform_5, window_bounds = array<i64: 1, 32>}, {pipeline_mode = #tpu.pipeline_mode<synchronous>, transform_indices = @transform_6, window_bounds = array<i64: 1, 32>}, {pipeline_mode = #tpu.pipeline_mode<synchronous>, transform_indices = @transform_7, window_bounds = array<i64: 1, 32>}, {pipeline_mode = #tpu.pipeline_mode<synchronous>, transform_indices = @transform_8, window_bounds = array<i64: 32, 32>}, {pipeline_mode = #tpu.pipeline_mode<synchronous>, transform_indices = @transform_9, window_bounds = array<i64: 1, 32>}, {pipeline_mode = #tpu.pipeline_mode<synchronous>, transform_indices = @transform_10, window_bounds = array<i64: 32, 64>}, {pipeline_mode = #tpu.pipeline_mode<synchronous>, transform_indices = @transform_11, window_bounds = array<i64: 1, 64>}, {pipeline_mode = #tpu.pipeline_mode<synchronous>, transform_indices = @transform_12, window_bounds = array<i64: 32, 32>}, {pipeline_mode = #tpu.pipeline_mode<synchronous>, transform_indices = @transform_13, window_bounds = array<i64: 1, 32>}, {pipeline_mode = #tpu.pipeline_mode<synchronous>, transform_indices = @transform_14, window_bounds = array<i64: 1, 32>}, {pipeline_mode = #tpu.pipeline_mode<synchronous>, transform_indices = @transform_15, window_bounds = array<i64: 1, 32>}, {pipeline_mode = #tpu.pipeline_mode<synchronous>, transform_indices = @transform_16, window_bounds = array<i64: 32, 64>}, {pipeline_mode = #tpu.pipeline_mode<synchronous>, transform_indices = @transform_17, window_bounds = array<i64: 1, 64>}, {pipeline_mode = #tpu.pipeline_mode<synchronous>, transform_indices = @transform_18, window_bounds = array<i64: 64, 32>}, {pipeline_mode = #tpu.pipeline_mode<synchronous>, transform_indices = @transform_19, window_bounds = array<i64: 1, 32>}, {pipeline_mode = #tpu.pipeline_mode<synchronous>, transform_indices = @transform_20, window_bounds = array<i64: 1, 32>}, {pipeline_mode = #tpu.pipeline_mode<synchronous>, transform_indices = @transform_21, window_bounds = array<i64: 1, 32>}, {transform_indices = @transform_22, window_bounds = array<i64: 1, 8, 32>}]} {
    %c0 = arith.constant 0 : index
    %c0_0 = arith.constant 0 : index
    %c0_1 = arith.constant 0 : index
    %0 = vector.load %arg1[%c0, %c0_0, %c0_1] : memref<1x8x32xbf16, #tpu.memory_space<vmem>>, vector<1x8x32xbf16>
    %1 = vector.shape_cast %0 : vector<1x8x32xbf16> to vector<8x32xbf16>
    %2 = arith.extf %1 : vector<8x32xbf16> to vector<8x32xf32>
    %c0_2 = arith.constant 0 : index
    %c0_3 = arith.constant 0 : index
    %c0_4 = arith.constant 0 : index
    %3 = vector.load %arg2[%c0_2, %c0_3, %c0_4] : memref<1x8x32xbf16, #tpu.memory_space<vmem>>, vector<1x8x32xbf16>
    %4 = vector.shape_cast %3 : vector<1x8x32xbf16> to vector<8x32xbf16>
    %5 = tpu.iota {dimensions = array<i32: 0>} : vector<8x8xi32>
    %6 = tpu.iota {dimensions = array<i32: 1>} : vector<8x8xi32>
    %7 = arith.cmpi sgt, %6, %5 : vector<8x8xi32>
    %cst = arith.constant -1.000000e+09 : f32
    %cst_5 = arith.constant 0.000000e+00 : f32
    %8 = vector.broadcast %cst : f32 to vector<8x8xf32>
    %9 = vector.broadcast %cst_5 : f32 to vector<8x8xf32>
    %10 = arith.select %7, %8, %9 : vector<8x8xi1>, vector<8x8xf32>
    %c0_6 = arith.constant 0 : index
    %c0_7 = arith.constant 0 : index
    %11 = vector.load %arg3[%c0_6, %c0_7] : memref<32x96xbf16, #tpu.memory_space<vmem>>, vector<32x96xbf16>
    %cst_8 = arith.constant dense<0.000000e+00> : vector<8x96xf32>
    %12 = tpu.matmul %1, %11, %cst_8 {dimension_numbers = #tpu.dot_dimension_numbers<[1], [0], [0], [1], [0, 0, 1, 1], [], []>} : vector<8x32xbf16>, vector<32x96xbf16>, vector<8x96xf32> -> vector<8x96xf32>
    %c0_9 = arith.constant 0 : index
    %c0_10 = arith.constant 0 : index
    %13 = vector.load %arg4[%c0_9, %c0_10] : memref<1x96xf32, #tpu.memory_space<vmem>>, vector<1x96xf32>
    %14 = vector.broadcast %13 : vector<1x96xf32> to vector<8x96xf32>
    %15 = arith.addf %12, %14 : vector<8x96xf32>
    %16 = vector.extract_strided_slice %15 {offsets = [0, 0], sizes = [8, 32], strides = [1, 1]} : vector<8x96xf32> to vector<8x32xf32>
    %17 = vector.extract_strided_slice %15 {offsets = [0, 32], sizes = [8, 32], strides = [1, 1]} : vector<8x96xf32> to vector<8x32xf32>
    %18 = vector.extract_strided_slice %15 {offsets = [0, 64], sizes = [8, 32], strides = [1, 1]} : vector<8x96xf32> to vector<8x32xf32>
    %19 = vector.extract_strided_slice %16 {offsets = [0, 0], sizes = [8, 8], strides = [1, 1]} : vector<8x32xf32> to vector<8x8xf32>
    %20 = arith.truncf %19 : vector<8x8xf32> to vector<8x8xbf16>
    %21 = vector.extract_strided_slice %17 {offsets = [0, 0], sizes = [8, 8], strides = [1, 1]} : vector<8x32xf32> to vector<8x8xf32>
    %22 = arith.truncf %21 : vector<8x8xf32> to vector<8x8xbf16>
    %23 = vector.extract_strided_slice %18 {offsets = [0, 0], sizes = [8, 8], strides = [1, 1]} : vector<8x32xf32> to vector<8x8xf32>
    %24 = arith.truncf %23 : vector<8x8xf32> to vector<8x8xbf16>
    %cst_11 = arith.constant dense<0.000000e+00> : vector<8x8xf32>
    %25 = tpu.matmul %20, %22, %cst_11 {dimension_numbers = #tpu.dot_dimension_numbers<[1], [1], [0], [0], [0, 0, 1, 0], [], []>} : vector<8x8xbf16>, vector<8x8xbf16>, vector<8x8xf32> -> vector<8x8xf32>
    %26 = arith.addf %25, %10 : vector<8x8xf32>
    %cst_12 = arith.constant dense<0xFF800000> : vector<8xf32>
    %27 = vector.multi_reduction <maximumf>, %26, %cst_12 [1] : vector<8x8xf32> to vector<8xf32>
    %28 = vector.shape_cast %27 : vector<8xf32> to vector<8x1xf32>
    %29 = vector.broadcast %28 : vector<8x1xf32> to vector<8x8xf32>
    %30 = arith.subf %26, %29 : vector<8x8xf32>
    %31 = math.exp %30 : vector<8x8xf32>
    %cst_13 = arith.constant dense<0.000000e+00> : vector<8xf32>
    %32 = vector.multi_reduction <add>, %31, %cst_13 [1] : vector<8x8xf32> to vector<8xf32>
    %33 = vector.shape_cast %32 : vector<8xf32> to vector<8x1xf32>
    %34 = tpu.reciprocal %33 {approx = true} : vector<8x1xf32> -> vector<8x1xf32>
    %35 = vector.broadcast %34 : vector<8x1xf32> to vector<8x8xf32>
    %36 = arith.mulf %31, %35 : vector<8x8xf32>
    %37 = arith.truncf %36 : vector<8x8xf32> to vector<8x8xbf16>
    %cst_14 = arith.constant dense<0.000000e+00> : vector<8x8xf32>
    %38 = tpu.matmul %37, %24, %cst_14 {dimension_numbers = #tpu.dot_dimension_numbers<[1], [0], [0], [1], [0, 0, 1, 1], [], []>} : vector<8x8xbf16>, vector<8x8xbf16>, vector<8x8xf32> -> vector<8x8xf32>
    %39 = vector.extract_strided_slice %16 {offsets = [0, 8], sizes = [8, 8], strides = [1, 1]} : vector<8x32xf32> to vector<8x8xf32>
    %40 = arith.truncf %39 : vector<8x8xf32> to vector<8x8xbf16>
    %41 = vector.extract_strided_slice %17 {offsets = [0, 8], sizes = [8, 8], strides = [1, 1]} : vector<8x32xf32> to vector<8x8xf32>
    %42 = arith.truncf %41 : vector<8x8xf32> to vector<8x8xbf16>
    %43 = vector.extract_strided_slice %18 {offsets = [0, 8], sizes = [8, 8], strides = [1, 1]} : vector<8x32xf32> to vector<8x8xf32>
    %44 = arith.truncf %43 : vector<8x8xf32> to vector<8x8xbf16>
    %cst_15 = arith.constant dense<0.000000e+00> : vector<8x8xf32>
    %45 = tpu.matmul %40, %42, %cst_15 {dimension_numbers = #tpu.dot_dimension_numbers<[1], [1], [0], [0], [0, 0, 1, 0], [], []>} : vector<8x8xbf16>, vector<8x8xbf16>, vector<8x8xf32> -> vector<8x8xf32>
    %46 = arith.addf %45, %10 : vector<8x8xf32>
    %cst_16 = arith.constant dense<0xFF800000> : vector<8xf32>
    %47 = vector.multi_reduction <maximumf>, %46, %cst_16 [1] : vector<8x8xf32> to vector<8xf32>
    %48 = vector.shape_cast %47 : vector<8xf32> to vector<8x1xf32>
    %49 = vector.broadcast %48 : vector<8x1xf32> to vector<8x8xf32>
    %50 = arith.subf %46, %49 : vector<8x8xf32>
    %51 = math.exp %50 : vector<8x8xf32>
    %cst_17 = arith.constant dense<0.000000e+00> : vector<8xf32>
    %52 = vector.multi_reduction <add>, %51, %cst_17 [1] : vector<8x8xf32> to vector<8xf32>
    %53 = vector.shape_cast %52 : vector<8xf32> to vector<8x1xf32>
    %54 = tpu.reciprocal %53 {approx = true} : vector<8x1xf32> -> vector<8x1xf32>
    %55 = vector.broadcast %54 : vector<8x1xf32> to vector<8x8xf32>
    %56 = arith.mulf %51, %55 : vector<8x8xf32>
    %57 = arith.truncf %56 : vector<8x8xf32> to vector<8x8xbf16>
    %cst_18 = arith.constant dense<0.000000e+00> : vector<8x8xf32>
    %58 = tpu.matmul %57, %44, %cst_18 {dimension_numbers = #tpu.dot_dimension_numbers<[1], [0], [0], [1], [0, 0, 1, 1], [], []>} : vector<8x8xbf16>, vector<8x8xbf16>, vector<8x8xf32> -> vector<8x8xf32>
    %59 = vector.extract_strided_slice %16 {offsets = [0, 16], sizes = [8, 8], strides = [1, 1]} : vector<8x32xf32> to vector<8x8xf32>
    %60 = arith.truncf %59 : vector<8x8xf32> to vector<8x8xbf16>
    %61 = vector.extract_strided_slice %17 {offsets = [0, 16], sizes = [8, 8], strides = [1, 1]} : vector<8x32xf32> to vector<8x8xf32>
    %62 = arith.truncf %61 : vector<8x8xf32> to vector<8x8xbf16>
    %63 = vector.extract_strided_slice %18 {offsets = [0, 16], sizes = [8, 8], strides = [1, 1]} : vector<8x32xf32> to vector<8x8xf32>
    %64 = arith.truncf %63 : vector<8x8xf32> to vector<8x8xbf16>
    %cst_19 = arith.constant dense<0.000000e+00> : vector<8x8xf32>
    %65 = tpu.matmul %60, %62, %cst_19 {dimension_numbers = #tpu.dot_dimension_numbers<[1], [1], [0], [0], [0, 0, 1, 0], [], []>} : vector<8x8xbf16>, vector<8x8xbf16>, vector<8x8xf32> -> vector<8x8xf32>
    %66 = arith.addf %65, %10 : vector<8x8xf32>
    %cst_20 = arith.constant dense<0xFF800000> : vector<8xf32>
    %67 = vector.multi_reduction <maximumf>, %66, %cst_20 [1] : vector<8x8xf32> to vector<8xf32>
    %68 = vector.shape_cast %67 : vector<8xf32> to vector<8x1xf32>
    %69 = vector.broadcast %68 : vector<8x1xf32> to vector<8x8xf32>
    %70 = arith.subf %66, %69 : vector<8x8xf32>
    %71 = math.exp %70 : vector<8x8xf32>
    %cst_21 = arith.constant dense<0.000000e+00> : vector<8xf32>
    %72 = vector.multi_reduction <add>, %71, %cst_21 [1] : vector<8x8xf32> to vector<8xf32>
    %73 = vector.shape_cast %72 : vector<8xf32> to vector<8x1xf32>
    %74 = tpu.reciprocal %73 {approx = true} : vector<8x1xf32> -> vector<8x1xf32>
    %75 = vector.broadcast %74 : vector<8x1xf32> to vector<8x8xf32>
    %76 = arith.mulf %71, %75 : vector<8x8xf32>
    %77 = arith.truncf %76 : vector<8x8xf32> to vector<8x8xbf16>
    %cst_22 = arith.constant dense<0.000000e+00> : vector<8x8xf32>
    %78 = tpu.matmul %77, %64, %cst_22 {dimension_numbers = #tpu.dot_dimension_numbers<[1], [0], [0], [1], [0, 0, 1, 1], [], []>} : vector<8x8xbf16>, vector<8x8xbf16>, vector<8x8xf32> -> vector<8x8xf32>
    %79 = vector.extract_strided_slice %16 {offsets = [0, 24], sizes = [8, 8], strides = [1, 1]} : vector<8x32xf32> to vector<8x8xf32>
    %80 = arith.truncf %79 : vector<8x8xf32> to vector<8x8xbf16>
    %81 = vector.extract_strided_slice %17 {offsets = [0, 24], sizes = [8, 8], strides = [1, 1]} : vector<8x32xf32> to vector<8x8xf32>
    %82 = arith.truncf %81 : vector<8x8xf32> to vector<8x8xbf16>
    %83 = vector.extract_strided_slice %18 {offsets = [0, 24], sizes = [8, 8], strides = [1, 1]} : vector<8x32xf32> to vector<8x8xf32>
    %84 = arith.truncf %83 : vector<8x8xf32> to vector<8x8xbf16>
    %cst_23 = arith.constant dense<0.000000e+00> : vector<8x8xf32>
    %85 = tpu.matmul %80, %82, %cst_23 {dimension_numbers = #tpu.dot_dimension_numbers<[1], [1], [0], [0], [0, 0, 1, 0], [], []>} : vector<8x8xbf16>, vector<8x8xbf16>, vector<8x8xf32> -> vector<8x8xf32>
    %86 = arith.addf %85, %10 : vector<8x8xf32>
    %cst_24 = arith.constant dense<0xFF800000> : vector<8xf32>
    %87 = vector.multi_reduction <maximumf>, %86, %cst_24 [1] : vector<8x8xf32> to vector<8xf32>
    %88 = vector.shape_cast %87 : vector<8xf32> to vector<8x1xf32>
    %89 = vector.broadcast %88 : vector<8x1xf32> to vector<8x8xf32>
    %90 = arith.subf %86, %89 : vector<8x8xf32>
    %91 = math.exp %90 : vector<8x8xf32>
    %cst_25 = arith.constant dense<0.000000e+00> : vector<8xf32>
    %92 = vector.multi_reduction <add>, %91, %cst_25 [1] : vector<8x8xf32> to vector<8xf32>
    %93 = vector.shape_cast %92 : vector<8xf32> to vector<8x1xf32>
    %94 = tpu.reciprocal %93 {approx = true} : vector<8x1xf32> -> vector<8x1xf32>
    %95 = vector.broadcast %94 : vector<8x1xf32> to vector<8x8xf32>
    %96 = arith.mulf %91, %95 : vector<8x8xf32>
    %97 = arith.truncf %96 : vector<8x8xf32> to vector<8x8xbf16>
    %cst_26 = arith.constant dense<0.000000e+00> : vector<8x8xf32>
    %98 = tpu.matmul %97, %84, %cst_26 {dimension_numbers = #tpu.dot_dimension_numbers<[1], [0], [0], [1], [0, 0, 1, 1], [], []>} : vector<8x8xbf16>, vector<8x8xbf16>, vector<8x8xf32> -> vector<8x8xf32>
    %99 = tpu.concatenate %38, %58, %78, %98 in 1 : vector<8x8xf32>, vector<8x8xf32>, vector<8x8xf32>, vector<8x8xf32> -> vector<8x32xf32>
    %100 = arith.truncf %99 : vector<8x32xf32> to vector<8x32xbf16>
    %c0_27 = arith.constant 0 : index
    %c0_28 = arith.constant 0 : index
    %101 = vector.load %arg5[%c0_27, %c0_28] : memref<32x32xbf16, #tpu.memory_space<vmem>>, vector<32x32xbf16>
    %cst_29 = arith.constant dense<0.000000e+00> : vector<8x32xf32>
    %102 = tpu.matmul %100, %101, %cst_29 {dimension_numbers = #tpu.dot_dimension_numbers<[1], [0], [0], [1], [0, 0, 1, 1], [], []>} : vector<8x32xbf16>, vector<32x32xbf16>, vector<8x32xf32> -> vector<8x32xf32>
    %c0_30 = arith.constant 0 : index
    %c0_31 = arith.constant 0 : index
    %103 = vector.load %arg6[%c0_30, %c0_31] : memref<1x32xf32, #tpu.memory_space<vmem>>, vector<1x32xf32>
    %104 = vector.broadcast %103 : vector<1x32xf32> to vector<8x32xf32>
    %105 = arith.addf %102, %104 : vector<8x32xf32>
    %106 = arith.addf %2, %105 : vector<8x32xf32>
    %c0_32 = arith.constant 0 : index
    %c0_33 = arith.constant 0 : index
    %107 = vector.load %arg7[%c0_32, %c0_33] : memref<1x32xf32, #tpu.memory_space<vmem>>, vector<1x32xf32>
    %c0_34 = arith.constant 0 : index
    %c0_35 = arith.constant 0 : index
    %108 = vector.load %arg8[%c0_34, %c0_35] : memref<1x32xf32, #tpu.memory_space<vmem>>, vector<1x32xf32>
    %cst_36 = arith.constant dense<0.000000e+00> : vector<8xf32>
    %109 = vector.multi_reduction <add>, %106, %cst_36 [1] : vector<8x32xf32> to vector<8xf32>
    %110 = vector.shape_cast %109 : vector<8xf32> to vector<8x1xf32>
    %cst_37 = arith.constant 3.200000e+01 : f32
    %111 = vector.broadcast %cst_37 : f32 to vector<8x1xf32>
    %112 = arith.divf %110, %111 : vector<8x1xf32>
    %113 = vector.broadcast %112 : vector<8x1xf32> to vector<8x32xf32>
    %114 = arith.subf %106, %113 : vector<8x32xf32>
    %115 = arith.mulf %114, %114 : vector<8x32xf32>
    %cst_38 = arith.constant dense<0.000000e+00> : vector<8xf32>
    %116 = vector.multi_reduction <add>, %115, %cst_38 [1] : vector<8x32xf32> to vector<8xf32>
    %117 = vector.shape_cast %116 : vector<8xf32> to vector<8x1xf32>
    %cst_39 = arith.constant 3.200000e+01 : f32
    %118 = vector.broadcast %cst_39 : f32 to vector<8x1xf32>
    %119 = arith.divf %117, %118 : vector<8x1xf32>
    %120 = vector.broadcast %112 : vector<8x1xf32> to vector<8x32xf32>
    %121 = arith.subf %106, %120 : vector<8x32xf32>
    %cst_40 = arith.constant 9.99999974E-6 : f32
    %122 = vector.broadcast %cst_40 : f32 to vector<8x1xf32>
    %123 = arith.addf %119, %122 : vector<8x1xf32>
    %124 = math.rsqrt %123 : vector<8x1xf32>
    %125 = vector.broadcast %124 : vector<8x1xf32> to vector<8x32xf32>
    %126 = arith.mulf %121, %125 : vector<8x32xf32>
    %127 = vector.broadcast %107 : vector<1x32xf32> to vector<8x32xf32>
    %128 = arith.mulf %126, %127 : vector<8x32xf32>
    %129 = vector.broadcast %108 : vector<1x32xf32> to vector<8x32xf32>
    %130 = arith.addf %128, %129 : vector<8x32xf32>
    %131 = arith.truncf %130 : vector<8x32xf32> to vector<8x32xbf16>
    %c0_41 = arith.constant 0 : index
    %c0_42 = arith.constant 0 : index
    %132 = vector.load %arg9[%c0_41, %c0_42] : memref<32x32xbf16, #tpu.memory_space<vmem>>, vector<32x32xbf16>
    %cst_43 = arith.constant dense<0.000000e+00> : vector<8x32xf32>
    %133 = tpu.matmul %131, %132, %cst_43 {dimension_numbers = #tpu.dot_dimension_numbers<[1], [0], [0], [1], [0, 0, 1, 1], [], []>} : vector<8x32xbf16>, vector<32x32xbf16>, vector<8x32xf32> -> vector<8x32xf32>
    %c0_44 = arith.constant 0 : index
    %c0_45 = arith.constant 0 : index
    %134 = vector.load %arg10[%c0_44, %c0_45] : memref<1x32xf32, #tpu.memory_space<vmem>>, vector<1x32xf32>
    %135 = vector.broadcast %134 : vector<1x32xf32> to vector<8x32xf32>
    %136 = arith.addf %133, %135 : vector<8x32xf32>
    %c0_46 = arith.constant 0 : index
    %c0_47 = arith.constant 0 : index
    %137 = vector.load %arg11[%c0_46, %c0_47] : memref<32x64xbf16, #tpu.memory_space<vmem>>, vector<32x64xbf16>
    %cst_48 = arith.constant dense<0.000000e+00> : vector<8x64xf32>
    %138 = tpu.matmul %4, %137, %cst_48 {dimension_numbers = #tpu.dot_dimension_numbers<[1], [0], [0], [1], [0, 0, 1, 1], [], []>} : vector<8x32xbf16>, vector<32x64xbf16>, vector<8x64xf32> -> vector<8x64xf32>
    %c0_49 = arith.constant 0 : index
    %c0_50 = arith.constant 0 : index
    %139 = vector.load %arg12[%c0_49, %c0_50] : memref<1x64xf32, #tpu.memory_space<vmem>>, vector<1x64xf32>
    %140 = vector.broadcast %139 : vector<1x64xf32> to vector<8x64xf32>
    %141 = arith.addf %138, %140 : vector<8x64xf32>
    %142 = vector.extract_strided_slice %141 {offsets = [0, 0], sizes = [8, 32], strides = [1, 1]} : vector<8x64xf32> to vector<8x32xf32>
    %143 = vector.extract_strided_slice %141 {offsets = [0, 32], sizes = [8, 32], strides = [1, 1]} : vector<8x64xf32> to vector<8x32xf32>
    %144 = vector.extract_strided_slice %136 {offsets = [0, 0], sizes = [8, 8], strides = [1, 1]} : vector<8x32xf32> to vector<8x8xf32>
    %145 = arith.truncf %144 : vector<8x8xf32> to vector<8x8xbf16>
    %146 = vector.extract_strided_slice %142 {offsets = [0, 0], sizes = [8, 8], strides = [1, 1]} : vector<8x32xf32> to vector<8x8xf32>
    %147 = arith.truncf %146 : vector<8x8xf32> to vector<8x8xbf16>
    %148 = vector.extract_strided_slice %143 {offsets = [0, 0], sizes = [8, 8], strides = [1, 1]} : vector<8x32xf32> to vector<8x8xf32>
    %149 = arith.truncf %148 : vector<8x8xf32> to vector<8x8xbf16>
    %cst_51 = arith.constant dense<0.000000e+00> : vector<8x8xf32>
    %150 = tpu.matmul %145, %147, %cst_51 {dimension_numbers = #tpu.dot_dimension_numbers<[1], [1], [0], [0], [0, 0, 1, 0], [], []>} : vector<8x8xbf16>, vector<8x8xbf16>, vector<8x8xf32> -> vector<8x8xf32>
    %cst_52 = arith.constant dense<0xFF800000> : vector<8xf32>
    %151 = vector.multi_reduction <maximumf>, %150, %cst_52 [1] : vector<8x8xf32> to vector<8xf32>
    %152 = vector.shape_cast %151 : vector<8xf32> to vector<8x1xf32>
    %153 = vector.broadcast %152 : vector<8x1xf32> to vector<8x8xf32>
    %154 = arith.subf %150, %153 : vector<8x8xf32>
    %155 = math.exp %154 : vector<8x8xf32>
    %cst_53 = arith.constant dense<0.000000e+00> : vector<8xf32>
    %156 = vector.multi_reduction <add>, %155, %cst_53 [1] : vector<8x8xf32> to vector<8xf32>
    %157 = vector.shape_cast %156 : vector<8xf32> to vector<8x1xf32>
    %158 = tpu.reciprocal %157 {approx = true} : vector<8x1xf32> -> vector<8x1xf32>
    %159 = vector.broadcast %158 : vector<8x1xf32> to vector<8x8xf32>
    %160 = arith.mulf %155, %159 : vector<8x8xf32>
    %161 = arith.truncf %160 : vector<8x8xf32> to vector<8x8xbf16>
    %cst_54 = arith.constant dense<0.000000e+00> : vector<8x8xf32>
    %162 = tpu.matmul %161, %149, %cst_54 {dimension_numbers = #tpu.dot_dimension_numbers<[1], [0], [0], [1], [0, 0, 1, 1], [], []>} : vector<8x8xbf16>, vector<8x8xbf16>, vector<8x8xf32> -> vector<8x8xf32>
    %163 = vector.extract_strided_slice %136 {offsets = [0, 8], sizes = [8, 8], strides = [1, 1]} : vector<8x32xf32> to vector<8x8xf32>
    %164 = arith.truncf %163 : vector<8x8xf32> to vector<8x8xbf16>
    %165 = vector.extract_strided_slice %142 {offsets = [0, 8], sizes = [8, 8], strides = [1, 1]} : vector<8x32xf32> to vector<8x8xf32>
    %166 = arith.truncf %165 : vector<8x8xf32> to vector<8x8xbf16>
    %167 = vector.extract_strided_slice %143 {offsets = [0, 8], sizes = [8, 8], strides = [1, 1]} : vector<8x32xf32> to vector<8x8xf32>
    %168 = arith.truncf %167 : vector<8x8xf32> to vector<8x8xbf16>
    %cst_55 = arith.constant dense<0.000000e+00> : vector<8x8xf32>
    %169 = tpu.matmul %164, %166, %cst_55 {dimension_numbers = #tpu.dot_dimension_numbers<[1], [1], [0], [0], [0, 0, 1, 0], [], []>} : vector<8x8xbf16>, vector<8x8xbf16>, vector<8x8xf32> -> vector<8x8xf32>
    %cst_56 = arith.constant dense<0xFF800000> : vector<8xf32>
    %170 = vector.multi_reduction <maximumf>, %169, %cst_56 [1] : vector<8x8xf32> to vector<8xf32>
    %171 = vector.shape_cast %170 : vector<8xf32> to vector<8x1xf32>
    %172 = vector.broadcast %171 : vector<8x1xf32> to vector<8x8xf32>
    %173 = arith.subf %169, %172 : vector<8x8xf32>
    %174 = math.exp %173 : vector<8x8xf32>
    %cst_57 = arith.constant dense<0.000000e+00> : vector<8xf32>
    %175 = vector.multi_reduction <add>, %174, %cst_57 [1] : vector<8x8xf32> to vector<8xf32>
    %176 = vector.shape_cast %175 : vector<8xf32> to vector<8x1xf32>
    %177 = tpu.reciprocal %176 {approx = true} : vector<8x1xf32> -> vector<8x1xf32>
    %178 = vector.broadcast %177 : vector<8x1xf32> to vector<8x8xf32>
    %179 = arith.mulf %174, %178 : vector<8x8xf32>
    %180 = arith.truncf %179 : vector<8x8xf32> to vector<8x8xbf16>
    %cst_58 = arith.constant dense<0.000000e+00> : vector<8x8xf32>
    %181 = tpu.matmul %180, %168, %cst_58 {dimension_numbers = #tpu.dot_dimension_numbers<[1], [0], [0], [1], [0, 0, 1, 1], [], []>} : vector<8x8xbf16>, vector<8x8xbf16>, vector<8x8xf32> -> vector<8x8xf32>
    %182 = vector.extract_strided_slice %136 {offsets = [0, 16], sizes = [8, 8], strides = [1, 1]} : vector<8x32xf32> to vector<8x8xf32>
    %183 = arith.truncf %182 : vector<8x8xf32> to vector<8x8xbf16>
    %184 = vector.extract_strided_slice %142 {offsets = [0, 16], sizes = [8, 8], strides = [1, 1]} : vector<8x32xf32> to vector<8x8xf32>
    %185 = arith.truncf %184 : vector<8x8xf32> to vector<8x8xbf16>
    %186 = vector.extract_strided_slice %143 {offsets = [0, 16], sizes = [8, 8], strides = [1, 1]} : vector<8x32xf32> to vector<8x8xf32>
    %187 = arith.truncf %186 : vector<8x8xf32> to vector<8x8xbf16>
    %cst_59 = arith.constant dense<0.000000e+00> : vector<8x8xf32>
    %188 = tpu.matmul %183, %185, %cst_59 {dimension_numbers = #tpu.dot_dimension_numbers<[1], [1], [0], [0], [0, 0, 1, 0], [], []>} : vector<8x8xbf16>, vector<8x8xbf16>, vector<8x8xf32> -> vector<8x8xf32>
    %cst_60 = arith.constant dense<0xFF800000> : vector<8xf32>
    %189 = vector.multi_reduction <maximumf>, %188, %cst_60 [1] : vector<8x8xf32> to vector<8xf32>
    %190 = vector.shape_cast %189 : vector<8xf32> to vector<8x1xf32>
    %191 = vector.broadcast %190 : vector<8x1xf32> to vector<8x8xf32>
    %192 = arith.subf %188, %191 : vector<8x8xf32>
    %193 = math.exp %192 : vector<8x8xf32>
    %cst_61 = arith.constant dense<0.000000e+00> : vector<8xf32>
    %194 = vector.multi_reduction <add>, %193, %cst_61 [1] : vector<8x8xf32> to vector<8xf32>
    %195 = vector.shape_cast %194 : vector<8xf32> to vector<8x1xf32>
    %196 = tpu.reciprocal %195 {approx = true} : vector<8x1xf32> -> vector<8x1xf32>
    %197 = vector.broadcast %196 : vector<8x1xf32> to vector<8x8xf32>
    %198 = arith.mulf %193, %197 : vector<8x8xf32>
    %199 = arith.truncf %198 : vector<8x8xf32> to vector<8x8xbf16>
    %cst_62 = arith.constant dense<0.000000e+00> : vector<8x8xf32>
    %200 = tpu.matmul %199, %187, %cst_62 {dimension_numbers = #tpu.dot_dimension_numbers<[1], [0], [0], [1], [0, 0, 1, 1], [], []>} : vector<8x8xbf16>, vector<8x8xbf16>, vector<8x8xf32> -> vector<8x8xf32>
    %201 = vector.extract_strided_slice %136 {offsets = [0, 24], sizes = [8, 8], strides = [1, 1]} : vector<8x32xf32> to vector<8x8xf32>
    %202 = arith.truncf %201 : vector<8x8xf32> to vector<8x8xbf16>
    %203 = vector.extract_strided_slice %142 {offsets = [0, 24], sizes = [8, 8], strides = [1, 1]} : vector<8x32xf32> to vector<8x8xf32>
    %204 = arith.truncf %203 : vector<8x8xf32> to vector<8x8xbf16>
    %205 = vector.extract_strided_slice %143 {offsets = [0, 24], sizes = [8, 8], strides = [1, 1]} : vector<8x32xf32> to vector<8x8xf32>
    %206 = arith.truncf %205 : vector<8x8xf32> to vector<8x8xbf16>
    %cst_63 = arith.constant dense<0.000000e+00> : vector<8x8xf32>
    %207 = tpu.matmul %202, %204, %cst_63 {dimension_numbers = #tpu.dot_dimension_numbers<[1], [1], [0], [0], [0, 0, 1, 0], [], []>} : vector<8x8xbf16>, vector<8x8xbf16>, vector<8x8xf32> -> vector<8x8xf32>
    %cst_64 = arith.constant dense<0xFF800000> : vector<8xf32>
    %208 = vector.multi_reduction <maximumf>, %207, %cst_64 [1] : vector<8x8xf32> to vector<8xf32>
    %209 = vector.shape_cast %208 : vector<8xf32> to vector<8x1xf32>
    %210 = vector.broadcast %209 : vector<8x1xf32> to vector<8x8xf32>
    %211 = arith.subf %207, %210 : vector<8x8xf32>
    %212 = math.exp %211 : vector<8x8xf32>
    %cst_65 = arith.constant dense<0.000000e+00> : vector<8xf32>
    %213 = vector.multi_reduction <add>, %212, %cst_65 [1] : vector<8x8xf32> to vector<8xf32>
    %214 = vector.shape_cast %213 : vector<8xf32> to vector<8x1xf32>
    %215 = tpu.reciprocal %214 {approx = true} : vector<8x1xf32> -> vector<8x1xf32>
    %216 = vector.broadcast %215 : vector<8x1xf32> to vector<8x8xf32>
    %217 = arith.mulf %212, %216 : vector<8x8xf32>
    %218 = arith.truncf %217 : vector<8x8xf32> to vector<8x8xbf16>
    %cst_66 = arith.constant dense<0.000000e+00> : vector<8x8xf32>
    %219 = tpu.matmul %218, %206, %cst_66 {dimension_numbers = #tpu.dot_dimension_numbers<[1], [0], [0], [1], [0, 0, 1, 1], [], []>} : vector<8x8xbf16>, vector<8x8xbf16>, vector<8x8xf32> -> vector<8x8xf32>
    %220 = tpu.concatenate %162, %181, %200, %219 in 1 : vector<8x8xf32>, vector<8x8xf32>, vector<8x8xf32>, vector<8x8xf32> -> vector<8x32xf32>
    %221 = arith.truncf %220 : vector<8x32xf32> to vector<8x32xbf16>
    %c0_67 = arith.constant 0 : index
    %c0_68 = arith.constant 0 : index
    %222 = vector.load %arg13[%c0_67, %c0_68] : memref<32x32xbf16, #tpu.memory_space<vmem>>, vector<32x32xbf16>
    %cst_69 = arith.constant dense<0.000000e+00> : vector<8x32xf32>
    %223 = tpu.matmul %221, %222, %cst_69 {dimension_numbers = #tpu.dot_dimension_numbers<[1], [0], [0], [1], [0, 0, 1, 1], [], []>} : vector<8x32xbf16>, vector<32x32xbf16>, vector<8x32xf32> -> vector<8x32xf32>
    %c0_70 = arith.constant 0 : index
    %c0_71 = arith.constant 0 : index
    %224 = vector.load %arg14[%c0_70, %c0_71] : memref<1x32xf32, #tpu.memory_space<vmem>>, vector<1x32xf32>
    %225 = vector.broadcast %224 : vector<1x32xf32> to vector<8x32xf32>
    %226 = arith.addf %223, %225 : vector<8x32xf32>
    %227 = arith.addf %130, %226 : vector<8x32xf32>
    %c0_72 = arith.constant 0 : index
    %c0_73 = arith.constant 0 : index
    %228 = vector.load %arg15[%c0_72, %c0_73] : memref<1x32xf32, #tpu.memory_space<vmem>>, vector<1x32xf32>
    %c0_74 = arith.constant 0 : index
    %c0_75 = arith.constant 0 : index
    %229 = vector.load %arg16[%c0_74, %c0_75] : memref<1x32xf32, #tpu.memory_space<vmem>>, vector<1x32xf32>
    %cst_76 = arith.constant dense<0.000000e+00> : vector<8xf32>
    %230 = vector.multi_reduction <add>, %227, %cst_76 [1] : vector<8x32xf32> to vector<8xf32>
    %231 = vector.shape_cast %230 : vector<8xf32> to vector<8x1xf32>
    %cst_77 = arith.constant 3.200000e+01 : f32
    %232 = vector.broadcast %cst_77 : f32 to vector<8x1xf32>
    %233 = arith.divf %231, %232 : vector<8x1xf32>
    %234 = vector.broadcast %233 : vector<8x1xf32> to vector<8x32xf32>
    %235 = arith.subf %227, %234 : vector<8x32xf32>
    %236 = arith.mulf %235, %235 : vector<8x32xf32>
    %cst_78 = arith.constant dense<0.000000e+00> : vector<8xf32>
    %237 = vector.multi_reduction <add>, %236, %cst_78 [1] : vector<8x32xf32> to vector<8xf32>
    %238 = vector.shape_cast %237 : vector<8xf32> to vector<8x1xf32>
    %cst_79 = arith.constant 3.200000e+01 : f32
    %239 = vector.broadcast %cst_79 : f32 to vector<8x1xf32>
    %240 = arith.divf %238, %239 : vector<8x1xf32>
    %241 = vector.broadcast %233 : vector<8x1xf32> to vector<8x32xf32>
    %242 = arith.subf %227, %241 : vector<8x32xf32>
    %cst_80 = arith.constant 9.99999974E-6 : f32
    %243 = vector.broadcast %cst_80 : f32 to vector<8x1xf32>
    %244 = arith.addf %240, %243 : vector<8x1xf32>
    %245 = math.rsqrt %244 : vector<8x1xf32>
    %246 = vector.broadcast %245 : vector<8x1xf32> to vector<8x32xf32>
    %247 = arith.mulf %242, %246 : vector<8x32xf32>
    %248 = vector.broadcast %228 : vector<1x32xf32> to vector<8x32xf32>
    %249 = arith.mulf %247, %248 : vector<8x32xf32>
    %250 = vector.broadcast %229 : vector<1x32xf32> to vector<8x32xf32>
    %251 = arith.addf %249, %250 : vector<8x32xf32>
    %252 = arith.truncf %251 : vector<8x32xf32> to vector<8x32xbf16>
    %c0_81 = arith.constant 0 : index
    %c0_82 = arith.constant 0 : index
    %253 = vector.load %arg17[%c0_81, %c0_82] : memref<32x64xbf16, #tpu.memory_space<vmem>>, vector<32x64xbf16>
    %cst_83 = arith.constant dense<0.000000e+00> : vector<8x64xf32>
    %254 = tpu.matmul %252, %253, %cst_83 {dimension_numbers = #tpu.dot_dimension_numbers<[1], [0], [0], [1], [0, 0, 1, 1], [], []>} : vector<8x32xbf16>, vector<32x64xbf16>, vector<8x64xf32> -> vector<8x64xf32>
    %c0_84 = arith.constant 0 : index
    %c0_85 = arith.constant 0 : index
    %255 = vector.load %arg18[%c0_84, %c0_85] : memref<1x64xf32, #tpu.memory_space<vmem>>, vector<1x64xf32>
    %256 = vector.broadcast %255 : vector<1x64xf32> to vector<8x64xf32>
    %257 = arith.addf %254, %256 : vector<8x64xf32>
    %cst_86 = arith.constant 0.000000e+00 : f32
    %258 = vector.broadcast %cst_86 : f32 to vector<8x64xf32>
    %259 = arith.maximumf %257, %258 : vector<8x64xf32>
    %260 = arith.truncf %259 : vector<8x64xf32> to vector<8x64xbf16>
    %c0_87 = arith.constant 0 : index
    %c0_88 = arith.constant 0 : index
    %261 = vector.load %arg19[%c0_87, %c0_88] : memref<64x32xbf16, #tpu.memory_space<vmem>>, vector<64x32xbf16>
    %cst_89 = arith.constant dense<0.000000e+00> : vector<8x32xf32>
    %262 = tpu.matmul %260, %261, %cst_89 {dimension_numbers = #tpu.dot_dimension_numbers<[1], [0], [0], [1], [0, 0, 1, 1], [], []>} : vector<8x64xbf16>, vector<64x32xbf16>, vector<8x32xf32> -> vector<8x32xf32>
    %c0_90 = arith.constant 0 : index
    %c0_91 = arith.constant 0 : index
    %263 = vector.load %arg20[%c0_90, %c0_91] : memref<1x32xf32, #tpu.memory_space<vmem>>, vector<1x32xf32>
    %264 = vector.broadcast %263 : vector<1x32xf32> to vector<8x32xf32>
    %265 = arith.addf %262, %264 : vector<8x32xf32>
    %266 = arith.addf %251, %265 : vector<8x32xf32>
    %c0_92 = arith.constant 0 : index
    %c0_93 = arith.constant 0 : index
    %267 = vector.load %arg21[%c0_92, %c0_93] : memref<1x32xf32, #tpu.memory_space<vmem>>, vector<1x32xf32>
    %c0_94 = arith.constant 0 : index
    %c0_95 = arith.constant 0 : index
    %268 = vector.load %arg22[%c0_94, %c0_95] : memref<1x32xf32, #tpu.memory_space<vmem>>, vector<1x32xf32>
    %cst_96 = arith.constant dense<0.000000e+00> : vector<8xf32>
    %269 = vector.multi_reduction <add>, %266, %cst_96 [1] : vector<8x32xf32> to vector<8xf32>
    %270 = vector.shape_cast %269 : vector<8xf32> to vector<8x1xf32>
    %cst_97 = arith.constant 3.200000e+01 : f32
    %271 = vector.broadcast %cst_97 : f32 to vector<8x1xf32>
    %272 = arith.divf %270, %271 : vector<8x1xf32>
    %273 = vector.broadcast %272 : vector<8x1xf32> to vector<8x32xf32>
    %274 = arith.subf %266, %273 : vector<8x32xf32>
    %275 = arith.mulf %274, %274 : vector<8x32xf32>
    %cst_98 = arith.constant dense<0.000000e+00> : vector<8xf32>
    %276 = vector.multi_reduction <add>, %275, %cst_98 [1] : vector<8x32xf32> to vector<8xf32>
    %277 = vector.shape_cast %276 : vector<8xf32> to vector<8x1xf32>
    %cst_99 = arith.constant 3.200000e+01 : f32
    %278 = vector.broadcast %cst_99 : f32 to vector<8x1xf32>
    %279 = arith.divf %277, %278 : vector<8x1xf32>
    %280 = vector.broadcast %272 : vector<8x1xf32> to vector<8x32xf32>
    %281 = arith.subf %266, %280 : vector<8x32xf32>
    %cst_100 = arith.constant 9.99999974E-6 : f32
    %282 = vector.broadcast %cst_100 : f32 to vector<8x1xf32>
    %283 = arith.addf %279, %282 : vector<8x1xf32>
    %284 = math.rsqrt %283 : vector<8x1xf32>
    %285 = vector.broadcast %284 : vector<8x1xf32> to vector<8x32xf32>
    %286 = arith.mulf %281, %285 : vector<8x32xf32>
    %287 = vector.broadcast %267 : vector<1x32xf32> to vector<8x32xf32>
    %288 = arith.mulf %286, %287 : vector<8x32xf32>
    %289 = vector.broadcast %268 : vector<1x32xf32> to vector<8x32xf32>
    %290 = arith.addf %288, %289 : vector<8x32xf32>
    %291 = arith.truncf %290 : vector<8x32xf32> to vector<8x32xbf16>
    %c0_101 = arith.constant 0 : index
    %c0_102 = arith.constant 0 : index
    %c0_103 = arith.constant 0 : index
    %292 = vector.load %arg23[%c0_101, %c0_102, %c0_103] : memref<1x8x32xbf16, #tpu.memory_space<vmem>>, vector<1x8x32xbf16>
    %293 = vector.shape_cast %292 : vector<1x8x32xbf16> to vector<8x32xbf16>
    %294 = vector.shape_cast %291 : vector<8x32xbf16> to vector<1x8x32xbf16>
    tpu.vector_store %arg23[%c0_101, %c0_102, %c0_103], %294 {strides = array<i32>} : memref<1x8x32xbf16, #tpu.memory_space<vmem>>, vector<1x8x32xbf16>,
    return
  }
  func.func @transform_0(%arg0: i32) -> (i32, i32, i32) {
    %c0_i32 = arith.constant 0 : i32
    %c0_i32_0 = arith.constant 0 : i32
    %c0_i32_1 = arith.constant 0 : i32
    return %arg0, %c0_i32, %c0_i32_0 : i32, i32, i32
  }
  func.func @transform_1(%arg0: i32) -> (i32, i32, i32) {
    %c0_i32 = arith.constant 0 : i32
    %c0_i32_0 = arith.constant 0 : i32
    %c0_i32_1 = arith.constant 0 : i32
    return %arg0, %c0_i32, %c0_i32_0 : i32, i32, i32
  }
  func.func @transform_2(%arg0: i32) -> (i32, i32) {
    %c0_i32 = arith.constant 0 : i32
    %c0_i32_0 = arith.constant 0 : i32
    %c0_i32_1 = arith.constant 0 : i32
    return %c0_i32, %c0_i32_0 : i32, i32
  }
  func.func @transform_3(%arg0: i32) -> (i32, i32) {
    %c0_i32 = arith.constant 0 : i32
    %c0_i32_0 = arith.constant 0 : i32
    %c0_i32_1 = arith.constant 0 : i32
    return %c0_i32, %c0_i32_0 : i32, i32
  }
  func.func @transform_4(%arg0: i32) -> (i32, i32) {
    %c0_i32 = arith.constant 0 : i32
    %c0_i32_0 = arith.constant 0 : i32
    %c0_i32_1 = arith.constant 0 : i32
    return %c0_i32, %c0_i32_0 : i32, i32
  }
  func.func @transform_5(%arg0: i32) -> (i32, i32) {
    %c0_i32 = arith.constant 0 : i32
    %c0_i32_0 = arith.constant 0 : i32
    %c0_i32_1 = arith.constant 0 : i32
    return %c0_i32, %c0_i32_0 : i32, i32
  }
  func.func @transform_6(%arg0: i32) -> (i32, i32) {
    %c0_i32 = arith.constant 0 : i32
    %c0_i32_0 = arith.constant 0 : i32
    %c0_i32_1 = arith.constant 0 : i32
    return %c0_i32, %c0_i32_0 : i32, i32
  }
  func.func @transform_7(%arg0: i32) -> (i32, i32) {
    %c0_i32 = arith.constant 0 : i32
    %c0_i32_0 = arith.constant 0 : i32
    %c0_i32_1 = arith.constant 0 : i32
    return %c0_i32, %c0_i32_0 : i32, i32
  }
  func.func @transform_8(%arg0: i32) -> (i32, i32) {
    %c0_i32 = arith.constant 0 : i32
    %c0_i32_0 = arith.constant 0 : i32
    %c0_i32_1 = arith.constant 0 : i32
    return %c0_i32, %c0_i32_0 : i32, i32
  }
  func.func @transform_9(%arg0: i32) -> (i32, i32) {
    %c0_i32 = arith.constant 0 : i32
    %c0_i32_0 = arith.constant 0 : i32
    %c0_i32_1 = arith.constant 0 : i32
    return %c0_i32, %c0_i32_0 : i32, i32
  }
  func.func @transform_10(%arg0: i32) -> (i32, i32) {
    %c0_i32 = arith.constant 0 : i32
    %c0_i32_0 = arith.constant 0 : i32
    %c0_i32_1 = arith.constant 0 : i32
    return %c0_i32, %c0_i32_0 : i32, i32
  }
  func.func @transform_11(%arg0: i32) -> (i32, i32) {
    %c0_i32 = arith.constant 0 : i32
    %c0_i32_0 = arith.constant 0 : i32
    %c0_i32_1 = arith.constant 0 : i32
    return %c0_i32, %c0_i32_0 : i32, i32
  }
  func.func @transform_12(%arg0: i32) -> (i32, i32) {
    %c0_i32 = arith.constant 0 : i32
    %c0_i32_0 = arith.constant 0 : i32
    %c0_i32_1 = arith.constant 0 : i32
    return %c0_i32, %c0_i32_0 : i32, i32
  }
  func.func @transform_13(%arg0: i32) -> (i32, i32) {
    %c0_i32 = arith.constant 0 : i32
    %c0_i32_0 = arith.constant 0 : i32
    %c0_i32_1 = arith.constant 0 : i32
    return %c0_i32, %c0_i32_0 : i32, i32
  }
  func.func @transform_14(%arg0: i32) -> (i32, i32) {
    %c0_i32 = arith.constant 0 : i32
    %c0_i32_0 = arith.constant 0 : i32
    %c0_i32_1 = arith.constant 0 : i32
    return %c0_i32, %c0_i32_0 : i32, i32
  }
  func.func @transform_15(%arg0: i32) -> (i32, i32) {
    %c0_i32 = arith.constant 0 : i32
    %c0_i32_0 = arith.constant 0 : i32
    %c0_i32_1 = arith.constant 0 : i32
    return %c0_i32, %c0_i32_0 : i32, i32
  }
  func.func @transform_16(%arg0: i32) -> (i32, i32) {
    %c0_i32 = arith.constant 0 : i32
    %c0_i32_0 = arith.constant 0 : i32
    %c0_i32_1 = arith.constant 0 : i32
    return %c0_i32, %c0_i32_0 : i32, i32
  }
  func.func @transform_17(%arg0: i32) -> (i32, i32) {
    %c0_i32 = arith.constant 0 : i32
    %c0_i32_0 = arith.constant 0 : i32
    %c0_i32_1 = arith.constant 0 : i32
    return %c0_i32, %c0_i32_0 : i32, i32
  }
  func.func @transform_18(%arg0: i32) -> (i32, i32) {
    %c0_i32 = arith.constant 0 : i32
    %c0_i32_0 = arith.constant 0 : i32
    %c0_i32_1 = arith.constant 0 : i32
    return %c0_i32, %c0_i32_0 : i32, i32
  }
  func.func @transform_19(%arg0: i32) -> (i32, i32) {
    %c0_i32 = arith.constant 0 : i32
    %c0_i32_0 = arith.constant 0 : i32
    %c0_i32_1 = arith.constant 0 : i32
    return %c0_i32, %c0_i32_0 : i32, i32
  }
  func.func @transform_20(%arg0: i32) -> (i32, i32) {
    %c0_i32 = arith.constant 0 : i32
    %c0_i32_0 = arith.constant 0 : i32
    %c0_i32_1 = arith.constant 0 : i32
    return %c0_i32, %c0_i32_0 : i32, i32
  }
  func.func @transform_21(%arg0: i32) -> (i32, i32) {
    %c0_i32 = arith.constant 0 : i32
    %c0_i32_0 = arith.constant 0 : i32
    %c0_i32_1 = arith.constant 0 : i32
    return %c0_i32, %c0_i32_0 : i32, i32
  }
  func.func @transform_22(%arg0: i32) -> (i32, i32, i32) {
    %c0_i32 = arith.constant 0 : i32
    %c0_i32_0 = arith.constant 0 : i32
    %c0_i32_1 = arith.constant 0 : i32
    return %arg0, %c0_i32, %c0_i32_0 : i32, i32, i32
  }
}

module attributes {stable_mosaic.version = 11 : i64} {
  func.func @_decoder_layer_kernel(%arg0: i32, %arg1: memref<1x8x32xf32, #tpu.memory_space<vmem>>, %arg2: memref<1x8x32xbf16, #tpu.memory_space<vmem>>, %arg3: memref<32x96xbf16, #tpu.memory_space<vmem>>, %arg4: memref<1x96xf32, #tpu.memory_space<vmem>>, %arg5: memref<32x32xbf16, #tpu.memory_space<vmem>>, %arg6: memref<1x32xf32, #tpu.memory_space<vmem>>, %arg7: memref<1x32xf32, #tpu.memory_space<vmem>>, %arg8: memref<1x32xf32, #tpu.memory_space<vmem>>, %arg9: memref<32x32xbf16, #tpu.memory_space<vmem>>, %arg10: memref<1x32xf32, #tpu.memory_space<vmem>>, %arg11: memref<32x64xbf16, #tpu.memory_space<vmem>>, %arg12: memref<1x64xf32, #tpu.memory_space<vmem>>, %arg13: memref<32x32xbf16, #tpu.memory_space<vmem>>, %arg14: memref<1x32xf32, #tpu.memory_space<vmem>>, %arg15: memref<1x32xf32, #tpu.memory_space<vmem>>, %arg16: memref<1x32xf32, #tpu.memory_space<vmem>>, %arg17: memref<32x64xbf16, #tpu.memory_space<vmem>>, %arg18: memref<1x64xf32, #tpu.memory_space<vmem>>, %arg19: memref<64x32xbf16, #tpu.memory_space<vmem>>, %arg20: memref<1x32xf32, #tpu.memory_space<vmem>>, %arg21: memref<1x32xf32, #tpu.memory_space<vmem>>, %arg22: memref<1x32xf32, #tpu.memory_space<vmem>>, %arg23: memref<1x8x32xbf16, #tpu.memory_space<vmem>>) attributes {dimension_semantics = [#tpu.dimension_semantics<parallel>], iteration_bounds = array<i64: 2>, scalar_prefetch = 0 : i64, scratch_operands = 0 : i64, tpu.core_type = #tpu.core_type<tc>, window_params = [{transform_indices = @transform_0, window_bounds = array<i64: 1, 8, 32>}, {transform_indices = @transform_1, window_bounds = array<i64: 1, 8, 32>}, {pipeline_mode = #tpu.pipeline_mode<synchronous>, transform_indices = @transform_2, window_bounds = array<i64: 32, 96>}, {pipeline_mode = #tpu.pipeline_mode<synchronous>, transform_indices = @transform_3, window_bounds = array<i64: 1, 96>}, {pipeline_mode = #tpu.pipeline_mode<synchronous>, transform_indices = @transform_4, window_bounds = array<i64: 32, 32>}, {pipeline_mode = #tpu.pipeline_mode<synchronous>, transform_indices = @transform_5, window_bounds = array<i64: 1, 32>}, {pipeline_mode = #tpu.pipeline_mode<synchronous>, transform_indices = @transform_6, window_bounds = array<i64: 1, 32>}, {pipeline_mode = #tpu.pipeline_mode<synchronous>, transform_indices = @transform_7, window_bounds = array<i64: 1, 32>}, {pipeline_mode = #tpu.pipeline_mode<synchronous>, transform_indices = @transform_8, window_bounds = array<i64: 32, 32>}, {pipeline_mode = #tpu.pipeline_mode<synchronous>, transform_indices = @transform_9, window_bounds = array<i64: 1, 32>}, {pipeline_mode = #tpu.pipeline_mode<synchronous>, transform_indices = @transform_10, window_bounds = array<i64: 32, 64>}, {pipeline_mode = #tpu.pipeline_mode<synchronous>, transform_indices = @transform_11, window_bounds = array<i64: 1, 64>}, {pipeline_mode = #tpu.pipeline_mode<synchronous>, transform_indices = @transform_12, window_bounds = array<i64: 32, 32>}, {pipeline_mode = #tpu.pipeline_mode<synchronous>, transform_indices = @transform_13, window_bounds = array<i64: 1, 32>}, {pipeline_mode = #tpu.pipeline_mode<synchronous>, transform_indices = @transform_14, window_bounds = array<i64: 1, 32>}, {pipeline_mode = #tpu.pipeline_mode<synchronous>, transform_indices = @transform_15, window_bounds = array<i64: 1, 32>}, {pipeline_mode = #tpu.pipeline_mode<synchronous>, transform_indices = @transform_16, window_bounds = array<i64: 32, 64>}, {pipeline_mode = #tpu.pipeline_mode<synchronous>, transform_indices = @transform_17, window_bounds = array<i64: 1, 64>}, {pipeline_mode = #tpu.pipeline_mode<synchronous>, transform_indices = @transform_18, window_bounds = array<i64: 64, 32>}, {pipeline_mode = #tpu.pipeline_mode<synchronous>, transform_indices = @transform_19, window_bounds = array<i64: 1, 32>}, {pipeline_mode = #tpu.pipeline_mode<synchronous>, transform_indices = @transform_20, window_bounds = array<i64: 1, 32>}, {pipeline_mode = #tpu.pipeline_mode<synchronous>, transform_indices = @transform_21, window_bounds = array<i64: 1, 32>}, {transform_indices = @transform_22, window_bounds = array<i64: 1, 8, 32>}]} {
    %c0 = arith.constant 0 : index
    %c0_0 = arith.constant 0 : index
    %c0_1 = arith.constant 0 : index
    %0 = vector.load %arg1[%c0, %c0_0, %c0_1] : memref<1x8x32xf32, #tpu.memory_space<vmem>>, vector<1x8x32xf32>
    %1 = vector.shape_cast %0 : vector<1x8x32xf32> to vector<8x32xf32>
    %2 = arith.truncf %1 : vector<8x32xf32> to vector<8x32xbf16>
    %c0_2 = arith.constant 0 : index
    %c0_3 = arith.constant 0 : index
    %c0_4 = arith.constant 0 : index
    %3 = vector.load %arg2[%c0_2, %c0_3, %c0_4] : memref<1x8x32xbf16, #tpu.memory_space<vmem>>, vector<1x8x32xbf16>
    %4 = vector.shape_cast %3 : vector<1x8x32xbf16> to vector<8x32xbf16>
    %5 = tpu.iota {dimensions = array<i32: 0>} : vector<8x8xi32>
    %6 = tpu.iota {dimensions = array<i32: 1>} : vector<8x8xi32>
    %7 = arith.cmpi sgt, %6, %5 : vector<8x8xi32>
    %cst = arith.constant -1.000000e+09 : f32
    %cst_5 = arith.constant 0.000000e+00 : f32
    %8 = vector.broadcast %cst : f32 to vector<8x8xf32>
    %9 = vector.broadcast %cst_5 : f32 to vector<8x8xf32>
    %10 = arith.select %7, %8, %9 : vector<8x8xi1>, vector<8x8xf32>
    %c0_6 = arith.constant 0 : index
    %c0_7 = arith.constant 0 : index
    %11 = vector.load %arg3[%c0_6, %c0_7] : memref<32x96xbf16, #tpu.memory_space<vmem>>, vector<32x96xbf16>
    %cst_8 = arith.constant dense<0.000000e+00> : vector<8x96xf32>
    %12 = tpu.matmul %2, %11, %cst_8 {dimension_numbers = #tpu.dot_dimension_numbers<[1], [0], [0], [1], [0, 0, 1, 1], [], []>} : vector<8x32xbf16>, vector<32x96xbf16>, vector<8x96xf32> -> vector<8x96xf32>
    %c0_9 = arith.constant 0 : index
    %c0_10 = arith.constant 0 : index
    %13 = vector.load %arg4[%c0_9, %c0_10] : memref<1x96xf32, #tpu.memory_space<vmem>>, vector<1x96xf32>
    %14 = vector.broadcast %13 : vector<1x96xf32> to vector<8x96xf32>
    %15 = arith.addf %12, %14 : vector<8x96xf32>
    %16 = vector.extract_strided_slice %15 {offsets = [0, 0], sizes = [8, 32], strides = [1, 1]} : vector<8x96xf32> to vector<8x32xf32>
    %17 = vector.extract_strided_slice %15 {offsets = [0, 32], sizes = [8, 32], strides = [1, 1]} : vector<8x96xf32> to vector<8x32xf32>
    %18 = vector.extract_strided_slice %15 {offsets = [0, 64], sizes = [8, 32], strides = [1, 1]} : vector<8x96xf32> to vector<8x32xf32>
    %19 = vector.extract_strided_slice %16 {offsets = [0, 0], sizes = [8, 8], strides = [1, 1]} : vector<8x32xf32> to vector<8x8xf32>
    %20 = arith.truncf %19 : vector<8x8xf32> to vector<8x8xbf16>
    %21 = vector.extract_strided_slice %17 {offsets = [0, 0], sizes = [8, 8], strides = [1, 1]} : vector<8x32xf32> to vector<8x8xf32>
    %22 = arith.truncf %21 : vector<8x8xf32> to vector<8x8xbf16>
    %23 = vector.extract_strided_slice %18 {offsets = [0, 0], sizes = [8, 8], strides = [1, 1]} : vector<8x32xf32> to vector<8x8xf32>
    %24 = arith.truncf %23 : vector<8x8xf32> to vector<8x8xbf16>
    %cst_11 = arith.constant dense<0.000000e+00> : vector<8x8xf32>
    %25 = tpu.matmul %20, %22, %cst_11 {dimension_numbers = #tpu.dot_dimension_numbers<[1], [1], [0], [0], [0, 0, 1, 0], [], []>} : vector<8x8xbf16>, vector<8x8xbf16>, vector<8x8xf32> -> vector<8x8xf32>
    %26 = arith.addf %25, %10 : vector<8x8xf32>
    %cst_12 = arith.constant dense<0xFF800000> : vector<8xf32>
    %27 = vector.multi_reduction <maximumf>, %26, %cst_12 [1] : vector<8x8xf32> to vector<8xf32>
    %28 = vector.shape_cast %27 : vector<8xf32> to vector<8x1xf32>
    %29 = vector.broadcast %28 : vector<8x1xf32> to vector<8x8xf32>
    %30 = arith.subf %26, %29 : vector<8x8xf32>
    %31 = math.exp %30 : vector<8x8xf32>
    %cst_13 = arith.constant dense<0.000000e+00> : vector<8xf32>
    %32 = vector.multi_reduction <add>, %31, %cst_13 [1] : vector<8x8xf32> to vector<8xf32>
    %33 = vector.shape_cast %32 : vector<8xf32> to vector<8x1xf32>
    %34 = tpu.reciprocal %33 {approx = true} : vector<8x1xf32> -> vector<8x1xf32>
    %35 = vector.broadcast %34 : vector<8x1xf32> to vector<8x8xf32>
    %36 = arith.mulf %31, %35 : vector<8x8xf32>
    %37 = arith.truncf %36 : vector<8x8xf32> to vector<8x8xbf16>
    %cst_14 = arith.constant dense<0.000000e+00> : vector<8x8xf32>
    %38 = tpu.matmul %37, %24, %cst_14 {dimension_numbers = #tpu.dot_dimension_numbers<[1], [0], [0], [1], [0, 0, 1, 1], [], []>} : vector<8x8xbf16>, vector<8x8xbf16>, vector<8x8xf32> -> vector<8x8xf32>
    %39 = vector.extract_strided_slice %16 {offsets = [0, 8], sizes = [8, 8], strides = [1, 1]} : vector<8x32xf32> to vector<8x8xf32>
    %40 = arith.truncf %39 : vector<8x8xf32> to vector<8x8xbf16>
    %41 = vector.extract_strided_slice %17 {offsets = [0, 8], sizes = [8, 8], strides = [1, 1]} : vector<8x32xf32> to vector<8x8xf32>
    %42 = arith.truncf %41 : vector<8x8xf32> to vector<8x8xbf16>
    %43 = vector.extract_strided_slice %18 {offsets = [0, 8], sizes = [8, 8], strides = [1, 1]} : vector<8x32xf32> to vector<8x8xf32>
    %44 = arith.truncf %43 : vector<8x8xf32> to vector<8x8xbf16>
    %cst_15 = arith.constant dense<0.000000e+00> : vector<8x8xf32>
    %45 = tpu.matmul %40, %42, %cst_15 {dimension_numbers = #tpu.dot_dimension_numbers<[1], [1], [0], [0], [0, 0, 1, 0], [], []>} : vector<8x8xbf16>, vector<8x8xbf16>, vector<8x8xf32> -> vector<8x8xf32>
    %46 = arith.addf %45, %10 : vector<8x8xf32>
    %cst_16 = arith.constant dense<0xFF800000> : vector<8xf32>
    %47 = vector.multi_reduction <maximumf>, %46, %cst_16 [1] : vector<8x8xf32> to vector<8xf32>
    %48 = vector.shape_cast %47 : vector<8xf32> to vector<8x1xf32>
    %49 = vector.broadcast %48 : vector<8x1xf32> to vector<8x8xf32>
    %50 = arith.subf %46, %49 : vector<8x8xf32>
    %51 = math.exp %50 : vector<8x8xf32>
    %cst_17 = arith.constant dense<0.000000e+00> : vector<8xf32>
    %52 = vector.multi_reduction <add>, %51, %cst_17 [1] : vector<8x8xf32> to vector<8xf32>
    %53 = vector.shape_cast %52 : vector<8xf32> to vector<8x1xf32>
    %54 = tpu.reciprocal %53 {approx = true} : vector<8x1xf32> -> vector<8x1xf32>
    %55 = vector.broadcast %54 : vector<8x1xf32> to vector<8x8xf32>
    %56 = arith.mulf %51, %55 : vector<8x8xf32>
    %57 = arith.truncf %56 : vector<8x8xf32> to vector<8x8xbf16>
    %cst_18 = arith.constant dense<0.000000e+00> : vector<8x8xf32>
    %58 = tpu.matmul %57, %44, %cst_18 {dimension_numbers = #tpu.dot_dimension_numbers<[1], [0], [0], [1], [0, 0, 1, 1], [], []>} : vector<8x8xbf16>, vector<8x8xbf16>, vector<8x8xf32> -> vector<8x8xf32>
    %59 = vector.extract_strided_slice %16 {offsets = [0, 16], sizes = [8, 8], strides = [1, 1]} : vector<8x32xf32> to vector<8x8xf32>
    %60 = arith.truncf %59 : vector<8x8xf32> to vector<8x8xbf16>
    %61 = vector.extract_strided_slice %17 {offsets = [0, 16], sizes = [8, 8], strides = [1, 1]} : vector<8x32xf32> to vector<8x8xf32>
    %62 = arith.truncf %61 : vector<8x8xf32> to vector<8x8xbf16>
    %63 = vector.extract_strided_slice %18 {offsets = [0, 16], sizes = [8, 8], strides = [1, 1]} : vector<8x32xf32> to vector<8x8xf32>
    %64 = arith.truncf %63 : vector<8x8xf32> to vector<8x8xbf16>
    %cst_19 = arith.constant dense<0.000000e+00> : vector<8x8xf32>
    %65 = tpu.matmul %60, %62, %cst_19 {dimension_numbers = #tpu.dot_dimension_numbers<[1], [1], [0], [0], [0, 0, 1, 0], [], []>} : vector<8x8xbf16>, vector<8x8xbf16>, vector<8x8xf32> -> vector<8x8xf32>
    %66 = arith.addf %65, %10 : vector<8x8xf32>
    %cst_20 = arith.constant dense<0xFF800000> : vector<8xf32>
    %67 = vector.multi_reduction <maximumf>, %66, %cst_20 [1] : vector<8x8xf32> to vector<8xf32>
    %68 = vector.shape_cast %67 : vector<8xf32> to vector<8x1xf32>
    %69 = vector.broadcast %68 : vector<8x1xf32> to vector<8x8xf32>
    %70 = arith.subf %66, %69 : vector<8x8xf32>
    %71 = math.exp %70 : vector<8x8xf32>
    %cst_21 = arith.constant dense<0.000000e+00> : vector<8xf32>
    %72 = vector.multi_reduction <add>, %71, %cst_21 [1] : vector<8x8xf32> to vector<8xf32>
    %73 = vector.shape_cast %72 : vector<8xf32> to vector<8x1xf32>
    %74 = tpu.reciprocal %73 {approx = true} : vector<8x1xf32> -> vector<8x1xf32>
    %75 = vector.broadcast %74 : vector<8x1xf32> to vector<8x8xf32>
    %76 = arith.mulf %71, %75 : vector<8x8xf32>
    %77 = arith.truncf %76 : vector<8x8xf32> to vector<8x8xbf16>
    %cst_22 = arith.constant dense<0.000000e+00> : vector<8x8xf32>
    %78 = tpu.matmul %77, %64, %cst_22 {dimension_numbers = #tpu.dot_dimension_numbers<[1], [0], [0], [1], [0, 0, 1, 1], [], []>} : vector<8x8xbf16>, vector<8x8xbf16>, vector<8x8xf32> -> vector<8x8xf32>
    %79 = vector.extract_strided_slice %16 {offsets = [0, 24], sizes = [8, 8], strides = [1, 1]} : vector<8x32xf32> to vector<8x8xf32>
    %80 = arith.truncf %79 : vector<8x8xf32> to vector<8x8xbf16>
    %81 = vector.extract_strided_slice %17 {offsets = [0, 24], sizes = [8, 8], strides = [1, 1]} : vector<8x32xf32> to vector<8x8xf32>
    %82 = arith.truncf %81 : vector<8x8xf32> to vector<8x8xbf16>
    %83 = vector.extract_strided_slice %18 {offsets = [0, 24], sizes = [8, 8], strides = [1, 1]} : vector<8x32xf32> to vector<8x8xf32>
    %84 = arith.truncf %83 : vector<8x8xf32> to vector<8x8xbf16>
    %cst_23 = arith.constant dense<0.000000e+00> : vector<8x8xf32>
    %85 = tpu.matmul %80, %82, %cst_23 {dimension_numbers = #tpu.dot_dimension_numbers<[1], [1], [0], [0], [0, 0, 1, 0], [], []>} : vector<8x8xbf16>, vector<8x8xbf16>, vector<8x8xf32> -> vector<8x8xf32>
    %86 = arith.addf %85, %10 : vector<8x8xf32>
    %cst_24 = arith.constant dense<0xFF800000> : vector<8xf32>
    %87 = vector.multi_reduction <maximumf>, %86, %cst_24 [1] : vector<8x8xf32> to vector<8xf32>
    %88 = vector.shape_cast %87 : vector<8xf32> to vector<8x1xf32>
    %89 = vector.broadcast %88 : vector<8x1xf32> to vector<8x8xf32>
    %90 = arith.subf %86, %89 : vector<8x8xf32>
    %91 = math.exp %90 : vector<8x8xf32>
    %cst_25 = arith.constant dense<0.000000e+00> : vector<8xf32>
    %92 = vector.multi_reduction <add>, %91, %cst_25 [1] : vector<8x8xf32> to vector<8xf32>
    %93 = vector.shape_cast %92 : vector<8xf32> to vector<8x1xf32>
    %94 = tpu.reciprocal %93 {approx = true} : vector<8x1xf32> -> vector<8x1xf32>
    %95 = vector.broadcast %94 : vector<8x1xf32> to vector<8x8xf32>
    %96 = arith.mulf %91, %95 : vector<8x8xf32>
    %97 = arith.truncf %96 : vector<8x8xf32> to vector<8x8xbf16>
    %cst_26 = arith.constant dense<0.000000e+00> : vector<8x8xf32>
    %98 = tpu.matmul %97, %84, %cst_26 {dimension_numbers = #tpu.dot_dimension_numbers<[1], [0], [0], [1], [0, 0, 1, 1], [], []>} : vector<8x8xbf16>, vector<8x8xbf16>, vector<8x8xf32> -> vector<8x8xf32>
    %99 = tpu.concatenate %38, %58, %78, %98 in 1 : vector<8x8xf32>, vector<8x8xf32>, vector<8x8xf32>, vector<8x8xf32> -> vector<8x32xf32>
    %100 = arith.truncf %99 : vector<8x32xf32> to vector<8x32xbf16>
    %c0_27 = arith.constant 0 : index
    %c0_28 = arith.constant 0 : index
    %101 = vector.load %arg5[%c0_27, %c0_28] : memref<32x32xbf16, #tpu.memory_space<vmem>>, vector<32x32xbf16>
    %cst_29 = arith.constant dense<0.000000e+00> : vector<8x32xf32>
    %102 = tpu.matmul %100, %101, %cst_29 {dimension_numbers = #tpu.dot_dimension_numbers<[1], [0], [0], [1], [0, 0, 1, 1], [], []>} : vector<8x32xbf16>, vector<32x32xbf16>, vector<8x32xf32> -> vector<8x32xf32>
    %c0_30 = arith.constant 0 : index
    %c0_31 = arith.constant 0 : index
    %103 = vector.load %arg6[%c0_30, %c0_31] : memref<1x32xf32, #tpu.memory_space<vmem>>, vector<1x32xf32>
    %104 = vector.broadcast %103 : vector<1x32xf32> to vector<8x32xf32>
    %105 = arith.addf %102, %104 : vector<8x32xf32>
    %106 = arith.addf %1, %105 : vector<8x32xf32>
    %c0_32 = arith.constant 0 : index
    %c0_33 = arith.constant 0 : index
    %107 = vector.load %arg7[%c0_32, %c0_33] : memref<1x32xf32, #tpu.memory_space<vmem>>, vector<1x32xf32>
    %c0_34 = arith.constant 0 : index
    %c0_35 = arith.constant 0 : index
    %108 = vector.load %arg8[%c0_34, %c0_35] : memref<1x32xf32, #tpu.memory_space<vmem>>, vector<1x32xf32>
    %cst_36 = arith.constant dense<0.000000e+00> : vector<8xf32>
    %109 = vector.multi_reduction <add>, %106, %cst_36 [1] : vector<8x32xf32> to vector<8xf32>
    %110 = vector.shape_cast %109 : vector<8xf32> to vector<8x1xf32>
    %cst_37 = arith.constant 3.200000e+01 : f32
    %111 = vector.broadcast %cst_37 : f32 to vector<8x1xf32>
    %112 = arith.divf %110, %111 : vector<8x1xf32>
    %113 = vector.broadcast %112 : vector<8x1xf32> to vector<8x32xf32>
    %114 = arith.subf %106, %113 : vector<8x32xf32>
    %115 = arith.mulf %114, %114 : vector<8x32xf32>
    %cst_38 = arith.constant dense<0.000000e+00> : vector<8xf32>
    %116 = vector.multi_reduction <add>, %115, %cst_38 [1] : vector<8x32xf32> to vector<8xf32>
    %117 = vector.shape_cast %116 : vector<8xf32> to vector<8x1xf32>
    %cst_39 = arith.constant 3.200000e+01 : f32
    %118 = vector.broadcast %cst_39 : f32 to vector<8x1xf32>
    %119 = arith.divf %117, %118 : vector<8x1xf32>
    %120 = vector.broadcast %112 : vector<8x1xf32> to vector<8x32xf32>
    %121 = arith.subf %106, %120 : vector<8x32xf32>
    %cst_40 = arith.constant 9.99999974E-6 : f32
    %122 = vector.broadcast %cst_40 : f32 to vector<8x1xf32>
    %123 = arith.addf %119, %122 : vector<8x1xf32>
    %124 = math.rsqrt %123 : vector<8x1xf32>
    %125 = vector.broadcast %124 : vector<8x1xf32> to vector<8x32xf32>
    %126 = arith.mulf %121, %125 : vector<8x32xf32>
    %127 = vector.broadcast %107 : vector<1x32xf32> to vector<8x32xf32>
    %128 = arith.mulf %126, %127 : vector<8x32xf32>
    %129 = vector.broadcast %108 : vector<1x32xf32> to vector<8x32xf32>
    %130 = arith.addf %128, %129 : vector<8x32xf32>
    %131 = arith.truncf %130 : vector<8x32xf32> to vector<8x32xbf16>
    %c0_41 = arith.constant 0 : index
    %c0_42 = arith.constant 0 : index
    %132 = vector.load %arg9[%c0_41, %c0_42] : memref<32x32xbf16, #tpu.memory_space<vmem>>, vector<32x32xbf16>
    %cst_43 = arith.constant dense<0.000000e+00> : vector<8x32xf32>
    %133 = tpu.matmul %131, %132, %cst_43 {dimension_numbers = #tpu.dot_dimension_numbers<[1], [0], [0], [1], [0, 0, 1, 1], [], []>} : vector<8x32xbf16>, vector<32x32xbf16>, vector<8x32xf32> -> vector<8x32xf32>
    %c0_44 = arith.constant 0 : index
    %c0_45 = arith.constant 0 : index
    %134 = vector.load %arg10[%c0_44, %c0_45] : memref<1x32xf32, #tpu.memory_space<vmem>>, vector<1x32xf32>
    %135 = vector.broadcast %134 : vector<1x32xf32> to vector<8x32xf32>
    %136 = arith.addf %133, %135 : vector<8x32xf32>
    %c0_46 = arith.constant 0 : index
    %c0_47 = arith.constant 0 : index
    %137 = vector.load %arg11[%c0_46, %c0_47] : memref<32x64xbf16, #tpu.memory_space<vmem>>, vector<32x64xbf16>
    %cst_48 = arith.constant dense<0.000000e+00> : vector<8x64xf32>
    %138 = tpu.matmul %4, %137, %cst_48 {dimension_numbers = #tpu.dot_dimension_numbers<[1], [0], [0], [1], [0, 0, 1, 1], [], []>} : vector<8x32xbf16>, vector<32x64xbf16>, vector<8x64xf32> -> vector<8x64xf32>
    %c0_49 = arith.constant 0 : index
    %c0_50 = arith.constant 0 : index
    %139 = vector.load %arg12[%c0_49, %c0_50] : memref<1x64xf32, #tpu.memory_space<vmem>>, vector<1x64xf32>
    %140 = vector.broadcast %139 : vector<1x64xf32> to vector<8x64xf32>
    %141 = arith.addf %138, %140 : vector<8x64xf32>
    %142 = vector.extract_strided_slice %141 {offsets = [0, 0], sizes = [8, 32], strides = [1, 1]} : vector<8x64xf32> to vector<8x32xf32>
    %143 = vector.extract_strided_slice %141 {offsets = [0, 32], sizes = [8, 32], strides = [1, 1]} : vector<8x64xf32> to vector<8x32xf32>
    %144 = vector.extract_strided_slice %136 {offsets = [0, 0], sizes = [8, 8], strides = [1, 1]} : vector<8x32xf32> to vector<8x8xf32>
    %145 = arith.truncf %144 : vector<8x8xf32> to vector<8x8xbf16>
    %146 = vector.extract_strided_slice %142 {offsets = [0, 0], sizes = [8, 8], strides = [1, 1]} : vector<8x32xf32> to vector<8x8xf32>
    %147 = arith.truncf %146 : vector<8x8xf32> to vector<8x8xbf16>
    %148 = vector.extract_strided_slice %143 {offsets = [0, 0], sizes = [8, 8], strides = [1, 1]} : vector<8x32xf32> to vector<8x8xf32>
    %149 = arith.truncf %148 : vector<8x8xf32> to vector<8x8xbf16>
    %cst_51 = arith.constant dense<0.000000e+00> : vector<8x8xf32>
    %150 = tpu.matmul %145, %147, %cst_51 {dimension_numbers = #tpu.dot_dimension_numbers<[1], [1], [0], [0], [0, 0, 1, 0], [], []>} : vector<8x8xbf16>, vector<8x8xbf16>, vector<8x8xf32> -> vector<8x8xf32>
    %cst_52 = arith.constant dense<0xFF800000> : vector<8xf32>
    %151 = vector.multi_reduction <maximumf>, %150, %cst_52 [1] : vector<8x8xf32> to vector<8xf32>
    %152 = vector.shape_cast %151 : vector<8xf32> to vector<8x1xf32>
    %153 = vector.broadcast %152 : vector<8x1xf32> to vector<8x8xf32>
    %154 = arith.subf %150, %153 : vector<8x8xf32>
    %155 = math.exp %154 : vector<8x8xf32>
    %cst_53 = arith.constant dense<0.000000e+00> : vector<8xf32>
    %156 = vector.multi_reduction <add>, %155, %cst_53 [1] : vector<8x8xf32> to vector<8xf32>
    %157 = vector.shape_cast %156 : vector<8xf32> to vector<8x1xf32>
    %158 = tpu.reciprocal %157 {approx = true} : vector<8x1xf32> -> vector<8x1xf32>
    %159 = vector.broadcast %158 : vector<8x1xf32> to vector<8x8xf32>
    %160 = arith.mulf %155, %159 : vector<8x8xf32>
    %161 = arith.truncf %160 : vector<8x8xf32> to vector<8x8xbf16>
    %cst_54 = arith.constant dense<0.000000e+00> : vector<8x8xf32>
    %162 = tpu.matmul %161, %149, %cst_54 {dimension_numbers = #tpu.dot_dimension_numbers<[1], [0], [0], [1], [0, 0, 1, 1], [], []>} : vector<8x8xbf16>, vector<8x8xbf16>, vector<8x8xf32> -> vector<8x8xf32>
    %163 = vector.extract_strided_slice %136 {offsets = [0, 8], sizes = [8, 8], strides = [1, 1]} : vector<8x32xf32> to vector<8x8xf32>
    %164 = arith.truncf %163 : vector<8x8xf32> to vector<8x8xbf16>
    %165 = vector.extract_strided_slice %142 {offsets = [0, 8], sizes = [8, 8], strides = [1, 1]} : vector<8x32xf32> to vector<8x8xf32>
    %166 = arith.truncf %165 : vector<8x8xf32> to vector<8x8xbf16>
    %167 = vector.extract_strided_slice %143 {offsets = [0, 8], sizes = [8, 8], strides = [1, 1]} : vector<8x32xf32> to vector<8x8xf32>
    %168 = arith.truncf %167 : vector<8x8xf32> to vector<8x8xbf16>
    %cst_55 = arith.constant dense<0.000000e+00> : vector<8x8xf32>
    %169 = tpu.matmul %164, %166, %cst_55 {dimension_numbers = #tpu.dot_dimension_numbers<[1], [1], [0], [0], [0, 0, 1, 0], [], []>} : vector<8x8xbf16>, vector<8x8xbf16>, vector<8x8xf32> -> vector<8x8xf32>
    %cst_56 = arith.constant dense<0xFF800000> : vector<8xf32>
    %170 = vector.multi_reduction <maximumf>, %169, %cst_56 [1] : vector<8x8xf32> to vector<8xf32>
    %171 = vector.shape_cast %170 : vector<8xf32> to vector<8x1xf32>
    %172 = vector.broadcast %171 : vector<8x1xf32> to vector<8x8xf32>
    %173 = arith.subf %169, %172 : vector<8x8xf32>
    %174 = math.exp %173 : vector<8x8xf32>
    %cst_57 = arith.constant dense<0.000000e+00> : vector<8xf32>
    %175 = vector.multi_reduction <add>, %174, %cst_57 [1] : vector<8x8xf32> to vector<8xf32>
    %176 = vector.shape_cast %175 : vector<8xf32> to vector<8x1xf32>
    %177 = tpu.reciprocal %176 {approx = true} : vector<8x1xf32> -> vector<8x1xf32>
    %178 = vector.broadcast %177 : vector<8x1xf32> to vector<8x8xf32>
    %179 = arith.mulf %174, %178 : vector<8x8xf32>
    %180 = arith.truncf %179 : vector<8x8xf32> to vector<8x8xbf16>
    %cst_58 = arith.constant dense<0.000000e+00> : vector<8x8xf32>
    %181 = tpu.matmul %180, %168, %cst_58 {dimension_numbers = #tpu.dot_dimension_numbers<[1], [0], [0], [1], [0, 0, 1, 1], [], []>} : vector<8x8xbf16>, vector<8x8xbf16>, vector<8x8xf32> -> vector<8x8xf32>
    %182 = vector.extract_strided_slice %136 {offsets = [0, 16], sizes = [8, 8], strides = [1, 1]} : vector<8x32xf32> to vector<8x8xf32>
    %183 = arith.truncf %182 : vector<8x8xf32> to vector<8x8xbf16>
    %184 = vector.extract_strided_slice %142 {offsets = [0, 16], sizes = [8, 8], strides = [1, 1]} : vector<8x32xf32> to vector<8x8xf32>
    %185 = arith.truncf %184 : vector<8x8xf32> to vector<8x8xbf16>
    %186 = vector.extract_strided_slice %143 {offsets = [0, 16], sizes = [8, 8], strides = [1, 1]} : vector<8x32xf32> to vector<8x8xf32>
    %187 = arith.truncf %186 : vector<8x8xf32> to vector<8x8xbf16>
    %cst_59 = arith.constant dense<0.000000e+00> : vector<8x8xf32>
    %188 = tpu.matmul %183, %185, %cst_59 {dimension_numbers = #tpu.dot_dimension_numbers<[1], [1], [0], [0], [0, 0, 1, 0], [], []>} : vector<8x8xbf16>, vector<8x8xbf16>, vector<8x8xf32> -> vector<8x8xf32>
    %cst_60 = arith.constant dense<0xFF800000> : vector<8xf32>
    %189 = vector.multi_reduction <maximumf>, %188, %cst_60 [1] : vector<8x8xf32> to vector<8xf32>
    %190 = vector.shape_cast %189 : vector<8xf32> to vector<8x1xf32>
    %191 = vector.broadcast %190 : vector<8x1xf32> to vector<8x8xf32>
    %192 = arith.subf %188, %191 : vector<8x8xf32>
    %193 = math.exp %192 : vector<8x8xf32>
    %cst_61 = arith.constant dense<0.000000e+00> : vector<8xf32>
    %194 = vector.multi_reduction <add>, %193, %cst_61 [1] : vector<8x8xf32> to vector<8xf32>
    %195 = vector.shape_cast %194 : vector<8xf32> to vector<8x1xf32>
    %196 = tpu.reciprocal %195 {approx = true} : vector<8x1xf32> -> vector<8x1xf32>
    %197 = vector.broadcast %196 : vector<8x1xf32> to vector<8x8xf32>
    %198 = arith.mulf %193, %197 : vector<8x8xf32>
    %199 = arith.truncf %198 : vector<8x8xf32> to vector<8x8xbf16>
    %cst_62 = arith.constant dense<0.000000e+00> : vector<8x8xf32>
    %200 = tpu.matmul %199, %187, %cst_62 {dimension_numbers = #tpu.dot_dimension_numbers<[1], [0], [0], [1], [0, 0, 1, 1], [], []>} : vector<8x8xbf16>, vector<8x8xbf16>, vector<8x8xf32> -> vector<8x8xf32>
    %201 = vector.extract_strided_slice %136 {offsets = [0, 24], sizes = [8, 8], strides = [1, 1]} : vector<8x32xf32> to vector<8x8xf32>
    %202 = arith.truncf %201 : vector<8x8xf32> to vector<8x8xbf16>
    %203 = vector.extract_strided_slice %142 {offsets = [0, 24], sizes = [8, 8], strides = [1, 1]} : vector<8x32xf32> to vector<8x8xf32>
    %204 = arith.truncf %203 : vector<8x8xf32> to vector<8x8xbf16>
    %205 = vector.extract_strided_slice %143 {offsets = [0, 24], sizes = [8, 8], strides = [1, 1]} : vector<8x32xf32> to vector<8x8xf32>
    %206 = arith.truncf %205 : vector<8x8xf32> to vector<8x8xbf16>
    %cst_63 = arith.constant dense<0.000000e+00> : vector<8x8xf32>
    %207 = tpu.matmul %202, %204, %cst_63 {dimension_numbers = #tpu.dot_dimension_numbers<[1], [1], [0], [0], [0, 0, 1, 0], [], []>} : vector<8x8xbf16>, vector<8x8xbf16>, vector<8x8xf32> -> vector<8x8xf32>
    %cst_64 = arith.constant dense<0xFF800000> : vector<8xf32>
    %208 = vector.multi_reduction <maximumf>, %207, %cst_64 [1] : vector<8x8xf32> to vector<8xf32>
    %209 = vector.shape_cast %208 : vector<8xf32> to vector<8x1xf32>
    %210 = vector.broadcast %209 : vector<8x1xf32> to vector<8x8xf32>
    %211 = arith.subf %207, %210 : vector<8x8xf32>
    %212 = math.exp %211 : vector<8x8xf32>
    %cst_65 = arith.constant dense<0.000000e+00> : vector<8xf32>
    %213 = vector.multi_reduction <add>, %212, %cst_65 [1] : vector<8x8xf32> to vector<8xf32>
    %214 = vector.shape_cast %213 : vector<8xf32> to vector<8x1xf32>
    %215 = tpu.reciprocal %214 {approx = true} : vector<8x1xf32> -> vector<8x1xf32>
    %216 = vector.broadcast %215 : vector<8x1xf32> to vector<8x8xf32>
    %217 = arith.mulf %212, %216 : vector<8x8xf32>
    %218 = arith.truncf %217 : vector<8x8xf32> to vector<8x8xbf16>
    %cst_66 = arith.constant dense<0.000000e+00> : vector<8x8xf32>
    %219 = tpu.matmul %218, %206, %cst_66 {dimension_numbers = #tpu.dot_dimension_numbers<[1], [0], [0], [1], [0, 0, 1, 1], [], []>} : vector<8x8xbf16>, vector<8x8xbf16>, vector<8x8xf32> -> vector<8x8xf32>
    %220 = tpu.concatenate %162, %181, %200, %219 in 1 : vector<8x8xf32>, vector<8x8xf32>, vector<8x8xf32>, vector<8x8xf32> -> vector<8x32xf32>
    %221 = arith.truncf %220 : vector<8x32xf32> to vector<8x32xbf16>
    %c0_67 = arith.constant 0 : index
    %c0_68 = arith.constant 0 : index
    %222 = vector.load %arg13[%c0_67, %c0_68] : memref<32x32xbf16, #tpu.memory_space<vmem>>, vector<32x32xbf16>
    %cst_69 = arith.constant dense<0.000000e+00> : vector<8x32xf32>
    %223 = tpu.matmul %221, %222, %cst_69 {dimension_numbers = #tpu.dot_dimension_numbers<[1], [0], [0], [1], [0, 0, 1, 1], [], []>} : vector<8x32xbf16>, vector<32x32xbf16>, vector<8x32xf32> -> vector<8x32xf32>
    %c0_70 = arith.constant 0 : index
    %c0_71 = arith.constant 0 : index
    %224 = vector.load %arg14[%c0_70, %c0_71] : memref<1x32xf32, #tpu.memory_space<vmem>>, vector<1x32xf32>
    %225 = vector.broadcast %224 : vector<1x32xf32> to vector<8x32xf32>
    %226 = arith.addf %223, %225 : vector<8x32xf32>
    %227 = arith.addf %130, %226 : vector<8x32xf32>
    %c0_72 = arith.constant 0 : index
    %c0_73 = arith.constant 0 : index
    %228 = vector.load %arg15[%c0_72, %c0_73] : memref<1x32xf32, #tpu.memory_space<vmem>>, vector<1x32xf32>
    %c0_74 = arith.constant 0 : index
    %c0_75 = arith.constant 0 : index
    %229 = vector.load %arg16[%c0_74, %c0_75] : memref<1x32xf32, #tpu.memory_space<vmem>>, vector<1x32xf32>
    %cst_76 = arith.constant dense<0.000000e+00> : vector<8xf32>
    %230 = vector.multi_reduction <add>, %227, %cst_76 [1] : vector<8x32xf32> to vector<8xf32>
    %231 = vector.shape_cast %230 : vector<8xf32> to vector<8x1xf32>
    %cst_77 = arith.constant 3.200000e+01 : f32
    %232 = vector.broadcast %cst_77 : f32 to vector<8x1xf32>
    %233 = arith.divf %231, %232 : vector<8x1xf32>
    %234 = vector.broadcast %233 : vector<8x1xf32> to vector<8x32xf32>
    %235 = arith.subf %227, %234 : vector<8x32xf32>
    %236 = arith.mulf %235, %235 : vector<8x32xf32>
    %cst_78 = arith.constant dense<0.000000e+00> : vector<8xf32>
    %237 = vector.multi_reduction <add>, %236, %cst_78 [1] : vector<8x32xf32> to vector<8xf32>
    %238 = vector.shape_cast %237 : vector<8xf32> to vector<8x1xf32>
    %cst_79 = arith.constant 3.200000e+01 : f32
    %239 = vector.broadcast %cst_79 : f32 to vector<8x1xf32>
    %240 = arith.divf %238, %239 : vector<8x1xf32>
    %241 = vector.broadcast %233 : vector<8x1xf32> to vector<8x32xf32>
    %242 = arith.subf %227, %241 : vector<8x32xf32>
    %cst_80 = arith.constant 9.99999974E-6 : f32
    %243 = vector.broadcast %cst_80 : f32 to vector<8x1xf32>
    %244 = arith.addf %240, %243 : vector<8x1xf32>
    %245 = math.rsqrt %244 : vector<8x1xf32>
    %246 = vector.broadcast %245 : vector<8x1xf32> to vector<8x32xf32>
    %247 = arith.mulf %242, %246 : vector<8x32xf32>
    %248 = vector.broadcast %228 : vector<1x32xf32> to vector<8x32xf32>
    %249 = arith.mulf %247, %248 : vector<8x32xf32>
    %250 = vector.broadcast %229 : vector<1x32xf32> to vector<8x32xf32>
    %251 = arith.addf %249, %250 : vector<8x32xf32>
    %252 = arith.truncf %251 : vector<8x32xf32> to vector<8x32xbf16>
    %c0_81 = arith.constant 0 : index
    %c0_82 = arith.constant 0 : index
    %253 = vector.load %arg17[%c0_81, %c0_82] : memref<32x64xbf16, #tpu.memory_space<vmem>>, vector<32x64xbf16>
    %cst_83 = arith.constant dense<0.000000e+00> : vector<8x64xf32>
    %254 = tpu.matmul %252, %253, %cst_83 {dimension_numbers = #tpu.dot_dimension_numbers<[1], [0], [0], [1], [0, 0, 1, 1], [], []>} : vector<8x32xbf16>, vector<32x64xbf16>, vector<8x64xf32> -> vector<8x64xf32>
    %c0_84 = arith.constant 0 : index
    %c0_85 = arith.constant 0 : index
    %255 = vector.load %arg18[%c0_84, %c0_85] : memref<1x64xf32, #tpu.memory_space<vmem>>, vector<1x64xf32>
    %256 = vector.broadcast %255 : vector<1x64xf32> to vector<8x64xf32>
    %257 = arith.addf %254, %256 : vector<8x64xf32>
    %cst_86 = arith.constant 0.000000e+00 : f32
    %258 = vector.broadcast %cst_86 : f32 to vector<8x64xf32>
    %259 = arith.maximumf %257, %258 : vector<8x64xf32>
    %260 = arith.truncf %259 : vector<8x64xf32> to vector<8x64xbf16>
    %c0_87 = arith.constant 0 : index
    %c0_88 = arith.constant 0 : index
    %261 = vector.load %arg19[%c0_87, %c0_88] : memref<64x32xbf16, #tpu.memory_space<vmem>>, vector<64x32xbf16>
    %cst_89 = arith.constant dense<0.000000e+00> : vector<8x32xf32>
    %262 = tpu.matmul %260, %261, %cst_89 {dimension_numbers = #tpu.dot_dimension_numbers<[1], [0], [0], [1], [0, 0, 1, 1], [], []>} : vector<8x64xbf16>, vector<64x32xbf16>, vector<8x32xf32> -> vector<8x32xf32>
    %c0_90 = arith.constant 0 : index
    %c0_91 = arith.constant 0 : index
    %263 = vector.load %arg20[%c0_90, %c0_91] : memref<1x32xf32, #tpu.memory_space<vmem>>, vector<1x32xf32>
    %264 = vector.broadcast %263 : vector<1x32xf32> to vector<8x32xf32>
    %265 = arith.addf %262, %264 : vector<8x32xf32>
    %266 = arith.addf %251, %265 : vector<8x32xf32>
    %c0_92 = arith.constant 0 : index
    %c0_93 = arith.constant 0 : index
    %267 = vector.load %arg21[%c0_92, %c0_93] : memref<1x32xf32, #tpu.memory_space<vmem>>, vector<1x32xf32>
    %c0_94 = arith.constant 0 : index
    %c0_95 = arith.constant 0 : index
    %268 = vector.load %arg22[%c0_94, %c0_95] : memref<1x32xf32, #tpu.memory_space<vmem>>, vector<1x32xf32>
    %cst_96 = arith.constant dense<0.000000e+00> : vector<8xf32>
    %269 = vector.multi_reduction <add>, %266, %cst_96 [1] : vector<8x32xf32> to vector<8xf32>
    %270 = vector.shape_cast %269 : vector<8xf32> to vector<8x1xf32>
    %cst_97 = arith.constant 3.200000e+01 : f32
    %271 = vector.broadcast %cst_97 : f32 to vector<8x1xf32>
    %272 = arith.divf %270, %271 : vector<8x1xf32>
    %273 = vector.broadcast %272 : vector<8x1xf32> to vector<8x32xf32>
    %274 = arith.subf %266, %273 : vector<8x32xf32>
    %275 = arith.mulf %274, %274 : vector<8x32xf32>
    %cst_98 = arith.constant dense<0.000000e+00> : vector<8xf32>
    %276 = vector.multi_reduction <add>, %275, %cst_98 [1] : vector<8x32xf32> to vector<8xf32>
    %277 = vector.shape_cast %276 : vector<8xf32> to vector<8x1xf32>
    %cst_99 = arith.constant 3.200000e+01 : f32
    %278 = vector.broadcast %cst_99 : f32 to vector<8x1xf32>
    %279 = arith.divf %277, %278 : vector<8x1xf32>
    %280 = vector.broadcast %272 : vector<8x1xf32> to vector<8x32xf32>
    %281 = arith.subf %266, %280 : vector<8x32xf32>
    %cst_100 = arith.constant 9.99999974E-6 : f32
    %282 = vector.broadcast %cst_100 : f32 to vector<8x1xf32>
    %283 = arith.addf %279, %282 : vector<8x1xf32>
    %284 = math.rsqrt %283 : vector<8x1xf32>
    %285 = vector.broadcast %284 : vector<8x1xf32> to vector<8x32xf32>
    %286 = arith.mulf %281, %285 : vector<8x32xf32>
    %287 = vector.broadcast %267 : vector<1x32xf32> to vector<8x32xf32>
    %288 = arith.mulf %286, %287 : vector<8x32xf32>
    %289 = vector.broadcast %268 : vector<1x32xf32> to vector<8x32xf32>
    %290 = arith.addf %288, %289 : vector<8x32xf32>
    %291 = arith.truncf %290 : vector<8x32xf32> to vector<8x32xbf16>
    %c0_101 = arith.constant 0 : index
    %c0_102 = arith.constant 0 : index
    %c0_103 = arith.constant 0 : index
    %292 = vector.load %arg23[%c0_101, %c0_102, %c0_103] : memref<1x8x32xbf16, #tpu.memory_space<vmem>>, vector<1x8x32xbf16>
    %293 = vector.shape_cast %292 : vector<1x8x32xbf16> to vector<8x32xbf16>
    %294 = vector.shape_cast %291 : vector<8x32xbf16> to vector<1x8x32xbf16>
    tpu.vector_store %arg23[%c0_101, %c0_102, %c0_103], %294 {strides = array<i32>} : memref<1x8x32xbf16, #tpu.memory_space<vmem>>, vector<1x8x32xbf16>,
    return
  }
  func.func @transform_0(%arg0: i32) -> (i32, i32, i32) {
    %c0_i32 = arith.constant 0 : i32
    %c0_i32_0 = arith.constant 0 : i32
    %c0_i32_1 = arith.constant 0 : i32
    return %arg0, %c0_i32, %c0_i32_0 : i32, i32, i32
  }
  func.func @transform_1(%arg0: i32) -> (i32, i32, i32) {
    %c0_i32 = arith.constant 0 : i32
    %c0_i32_0 = arith.constant 0 : i32
    %c0_i32_1 = arith.constant 0 : i32
    return %arg0, %c0_i32, %c0_i32_0 : i32, i32, i32
  }
  func.func @transform_2(%arg0: i32) -> (i32, i32) {
    %c0_i32 = arith.constant 0 : i32
    %c0_i32_0 = arith.constant 0 : i32
    %c0_i32_1 = arith.constant 0 : i32
    return %c0_i32, %c0_i32_0 : i32, i32
  }
  func.func @transform_3(%arg0: i32) -> (i32, i32) {
    %c0_i32 = arith.constant 0 : i32
    %c0_i32_0 = arith.constant 0 : i32
    %c0_i32_1 = arith.constant 0 : i32
    return %c0_i32, %c0_i32_0 : i32, i32
  }
  func.func @transform_4(%arg0: i32) -> (i32, i32) {
    %c0_i32 = arith.constant 0 : i32
    %c0_i32_0 = arith.constant 0 : i32
    %c0_i32_1 = arith.constant 0 : i32
    return %c0_i32, %c0_i32_0 : i32, i32
  }
  func.func @transform_5(%arg0: i32) -> (i32, i32) {
    %c0_i32 = arith.constant 0 : i32
    %c0_i32_0 = arith.constant 0 : i32
    %c0_i32_1 = arith.constant 0 : i32
    return %c0_i32, %c0_i32_0 : i32, i32
  }
  func.func @transform_6(%arg0: i32) -> (i32, i32) {
    %c0_i32 = arith.constant 0 : i32
    %c0_i32_0 = arith.constant 0 : i32
    %c0_i32_1 = arith.constant 0 : i32
    return %c0_i32, %c0_i32_0 : i32, i32
  }
  func.func @transform_7(%arg0: i32) -> (i32, i32) {
    %c0_i32 = arith.constant 0 : i32
    %c0_i32_0 = arith.constant 0 : i32
    %c0_i32_1 = arith.constant 0 : i32
    return %c0_i32, %c0_i32_0 : i32, i32
  }
  func.func @transform_8(%arg0: i32) -> (i32, i32) {
    %c0_i32 = arith.constant 0 : i32
    %c0_i32_0 = arith.constant 0 : i32
    %c0_i32_1 = arith.constant 0 : i32
    return %c0_i32, %c0_i32_0 : i32, i32
  }
  func.func @transform_9(%arg0: i32) -> (i32, i32) {
    %c0_i32 = arith.constant 0 : i32
    %c0_i32_0 = arith.constant 0 : i32
    %c0_i32_1 = arith.constant 0 : i32
    return %c0_i32, %c0_i32_0 : i32, i32
  }
  func.func @transform_10(%arg0: i32) -> (i32, i32) {
    %c0_i32 = arith.constant 0 : i32
    %c0_i32_0 = arith.constant 0 : i32
    %c0_i32_1 = arith.constant 0 : i32
    return %c0_i32, %c0_i32_0 : i32, i32
  }
  func.func @transform_11(%arg0: i32) -> (i32, i32) {
    %c0_i32 = arith.constant 0 : i32
    %c0_i32_0 = arith.constant 0 : i32
    %c0_i32_1 = arith.constant 0 : i32
    return %c0_i32, %c0_i32_0 : i32, i32
  }
  func.func @transform_12(%arg0: i32) -> (i32, i32) {
    %c0_i32 = arith.constant 0 : i32
    %c0_i32_0 = arith.constant 0 : i32
    %c0_i32_1 = arith.constant 0 : i32
    return %c0_i32, %c0_i32_0 : i32, i32
  }
  func.func @transform_13(%arg0: i32) -> (i32, i32) {
    %c0_i32 = arith.constant 0 : i32
    %c0_i32_0 = arith.constant 0 : i32
    %c0_i32_1 = arith.constant 0 : i32
    return %c0_i32, %c0_i32_0 : i32, i32
  }
  func.func @transform_14(%arg0: i32) -> (i32, i32) {
    %c0_i32 = arith.constant 0 : i32
    %c0_i32_0 = arith.constant 0 : i32
    %c0_i32_1 = arith.constant 0 : i32
    return %c0_i32, %c0_i32_0 : i32, i32
  }
  func.func @transform_15(%arg0: i32) -> (i32, i32) {
    %c0_i32 = arith.constant 0 : i32
    %c0_i32_0 = arith.constant 0 : i32
    %c0_i32_1 = arith.constant 0 : i32
    return %c0_i32, %c0_i32_0 : i32, i32
  }
  func.func @transform_16(%arg0: i32) -> (i32, i32) {
    %c0_i32 = arith.constant 0 : i32
    %c0_i32_0 = arith.constant 0 : i32
    %c0_i32_1 = arith.constant 0 : i32
    return %c0_i32, %c0_i32_0 : i32, i32
  }
  func.func @transform_17(%arg0: i32) -> (i32, i32) {
    %c0_i32 = arith.constant 0 : i32
    %c0_i32_0 = arith.constant 0 : i32
    %c0_i32_1 = arith.constant 0 : i32
    return %c0_i32, %c0_i32_0 : i32, i32
  }
  func.func @transform_18(%arg0: i32) -> (i32, i32) {
    %c0_i32 = arith.constant 0 : i32
    %c0_i32_0 = arith.constant 0 : i32
    %c0_i32_1 = arith.constant 0 : i32
    return %c0_i32, %c0_i32_0 : i32, i32
  }
  func.func @transform_19(%arg0: i32) -> (i32, i32) {
    %c0_i32 = arith.constant 0 : i32
    %c0_i32_0 = arith.constant 0 : i32
    %c0_i32_1 = arith.constant 0 : i32
    return %c0_i32, %c0_i32_0 : i32, i32
  }
  func.func @transform_20(%arg0: i32) -> (i32, i32) {
    %c0_i32 = arith.constant 0 : i32
    %c0_i32_0 = arith.constant 0 : i32
    %c0_i32_1 = arith.constant 0 : i32
    return %c0_i32, %c0_i32_0 : i32, i32
  }
  func.func @transform_21(%arg0: i32) -> (i32, i32) {
    %c0_i32 = arith.constant 0 : i32
    %c0_i32_0 = arith.constant 0 : i32
    %c0_i32_1 = arith.constant 0 : i32
    return %c0_i32, %c0_i32_0 : i32, i32
  }
  func.func @transform_22(%arg0: i32) -> (i32, i32, i32) {
    %c0_i32 = arith.constant 0 : i32
    %c0_i32_0 = arith.constant 0 : i32
    %c0_i32_1 = arith.constant 0 : i32
    return %arg0, %c0_i32, %c0_i32_0 : i32, i32, i32
  }
}

module attributes {stable_mosaic.version = 11 : i64} {
  func.func @_linear_kernel(%arg0: i32, %arg1: memref<8x32xbf16, #tpu.memory_space<vmem>>, %arg2: memref<32x32xbf16, #tpu.memory_space<vmem>>, %arg3: memref<1x32xf32, #tpu.memory_space<vmem>>, %arg4: memref<8x32xf32, #tpu.memory_space<vmem>>) attributes {dimension_semantics = [#tpu.dimension_semantics<parallel>], iteration_bounds = array<i64: 2>, scalar_prefetch = 0 : i64, scratch_operands = 0 : i64, tpu.core_type = #tpu.core_type<tc>, window_params = [{transform_indices = @transform_0, window_bounds = array<i64: 8, 32>}, {pipeline_mode = #tpu.pipeline_mode<synchronous>, transform_indices = @transform_1, window_bounds = array<i64: 32, 32>}, {pipeline_mode = #tpu.pipeline_mode<synchronous>, transform_indices = @transform_2, window_bounds = array<i64: 1, 32>}, {transform_indices = @transform_3, window_bounds = array<i64: 8, 32>}]} {
    %c0 = arith.constant 0 : index
    %c0_0 = arith.constant 0 : index
    %0 = vector.load %arg1[%c0, %c0_0] : memref<8x32xbf16, #tpu.memory_space<vmem>>, vector<8x32xbf16>
    %c0_1 = arith.constant 0 : index
    %c0_2 = arith.constant 0 : index
    %1 = vector.load %arg2[%c0_1, %c0_2] : memref<32x32xbf16, #tpu.memory_space<vmem>>, vector<32x32xbf16>
    %cst = arith.constant dense<0.000000e+00> : vector<8x32xf32>
    %2 = tpu.matmul %0, %1, %cst {dimension_numbers = #tpu.dot_dimension_numbers<[1], [0], [0], [1], [0, 0, 1, 1], [], []>} : vector<8x32xbf16>, vector<32x32xbf16>, vector<8x32xf32> -> vector<8x32xf32>
    %c0_3 = arith.constant 0 : index
    %c0_4 = arith.constant 0 : index
    %3 = vector.load %arg3[%c0_3, %c0_4] : memref<1x32xf32, #tpu.memory_space<vmem>>, vector<1x32xf32>
    %4 = vector.broadcast %3 : vector<1x32xf32> to vector<8x32xf32>
    %5 = arith.addf %2, %4 : vector<8x32xf32>
    %c0_5 = arith.constant 0 : index
    %c0_6 = arith.constant 0 : index
    %6 = vector.load %arg4[%c0_5, %c0_6] : memref<8x32xf32, #tpu.memory_space<vmem>>, vector<8x32xf32>
    tpu.vector_store %arg4[%c0_5, %c0_6], %5 {strides = array<i32>} : memref<8x32xf32, #tpu.memory_space<vmem>>, vector<8x32xf32>,
    return
  }
  func.func @transform_0(%arg0: i32) -> (i32, i32) {
    %c0_i32 = arith.constant 0 : i32
    %c0_i32_0 = arith.constant 0 : i32
    return %arg0, %c0_i32 : i32, i32
  }
  func.func @transform_1(%arg0: i32) -> (i32, i32) {
    %c0_i32 = arith.constant 0 : i32
    %c0_i32_0 = arith.constant 0 : i32
    %c0_i32_1 = arith.constant 0 : i32
    return %c0_i32, %c0_i32_0 : i32, i32
  }
  func.func @transform_2(%arg0: i32) -> (i32, i32) {
    %c0_i32 = arith.constant 0 : i32
    %c0_i32_0 = arith.constant 0 : i32
    %c0_i32_1 = arith.constant 0 : i32
    return %c0_i32, %c0_i32_0 : i32, i32
  }
  func.func @transform_3(%arg0: i32) -> (i32, i32) {
    %c0_i32 = arith.constant 0 : i32
    %c0_i32_0 = arith.constant 0 : i32
    return %arg0, %c0_i32 : i32, i32
  }
}

</mosaic_0001>

<bundles_post_ra>
// kernel: transformer_forward.5
= control target key start
LH: loop header
LB: loop body
LE: loop exit
PB: predicated region body
PF: predicated region fallthrough
CT: control target
= control target key end

     0   :  { %s1602_s25 = smov 0   ;;  %s1770_s0 = inlined_call_operand.vmem [shape: f32[2,8,32], index: 0, kind: input, shape index: {}]   ;;  %s1771_s1 = inlined_call_operand.vmem [shape: bf16[32,96], index: 1, kind: input, shape index: {}]   ;;  %s1772_s2 = inlined_call_operand.vmem [shape: f32[1,96], index: 2, kind: input, shape index: {}]   ;;  %s1773_s3 = inlined_call_operand.vmem [shape: bf16[32,32], index: 3, kind: input, shape index: {}]   ;;  %s1774_s4 = inlined_call_operand.vmem [shape: f32[1,32], index: 4, kind: input, shape index: {}]   ;;  %s1775_s5 = inlined_call_operand.vmem [shape: f32[1,32], index: 5, kind: input, shape index: {}]   ;;  %s1776_s6 = inlined_call_operand.vmem [shape: f32[1,32], index: 6, kind: input, shape index: {}]   ;;  %s1777_s7 = inlined_call_operand.vmem [shape: bf16[32,64], index: 7, kind: input, shape index: {}]   ;;  %s1778_s8 = inlined_call_operand.vmem [shape: f32[1,64], index: 8, kind: input, shape index: {}]   ;;  %s1779_s9 = inlined_call_operand.vmem [shape: bf16[64,32], index: 9, kind: input, shape index: {}]   ;;  %s1780_s10 = inlined_call_operand.vmem [shape: f32[1,32], index: 10, kind: input, shape index: {}]   ;;  %s1781_s11 = inlined_call_operand.vmem [shape: f32[1,32], index: 11, kind: input, shape index: {}]   ;;  %s1782_s12 = inlined_call_operand.vmem [shape: f32[1,32], index: 12, kind: input, shape index: {}]   ;;  %s1783_s13 = inlined_call_operand.vmem [shape: bf16[2,8,32], index: 13, kind: output, shape index: {}]  }
   0x1 LB: > { %s1301_s26 = sadd.s32 4294967295, %s1514_s25   ;;  %p1305_p0 = scmp.ge.s32.totalorder %s1514_s25, 1  ;;  %s1514_s25 = sphi %s1602_s25, %s23_s25  }
   0x2   : > { %p386_p1 = scmp.lt.s32.totalorder %s1514_s25, 3 }
   0x4   : > { %p387_p2 = pnand %p1305_p0, %p386_p1 }
   0x5   : > { %v1478_v0 = vld [vmem:[%s1771_s1] sm:$0xff] (!%p387_p2)   ;;  %v1516_v1 = vmov (!%p387_p2), 0.0   ;;  %v1479_v2 = vld [vmem:[%s1771_s1 + $0x8] sm:$0xff] (!%p387_p2)   ;;  %vm1517_vm0 = vmmov (!%p387_p2), 0   ;;  %p428_p3 = scmp.lt.s32.totalorder (!%p387_p2), %s1301_s26, 1  ;;  %vm462_vm1 = vcmask (!%p387_p2), 261120  }
   0x6   : > { %390 = sbr.rel (%p387_p2) target bundleno = 2559 (0x9ff), region = 72  ;;  %1370 = vmatprep.subr.bf16.mxu0 (!%p387_p2), %v1516_v1  ;;  %1378 = vmatprep.subr.bf16.mxu1 (!%p387_p2), %v1516_v1  ;;  %v1308_v5 = vld [vmem:[%s1772_s2] ss:$0 sm:$0xff] (!%p387_p2)  ;;  %s1518_s20 = smov (!%p387_p2), 120   ;;  %vm510_vm2 = vcmask (!%p387_p2), 64512   ;;  %vm574_vm3 = vcmask (!%p387_p2), 1043456  }
   0x7   : > { %1371 = vmatpush3.bf16.msra.mxu0 (!%p387_p2), %v1478_v0  ;;  %1374 = vmatprep.mubr.msk.bf16.mxu0 (!%p387_p2), %vm1517_vm0, %v1516_v1  ;;  %s1519_s21 = smov (!%p387_p2), 96   ;;  %s1520_s22 = smov (!%p387_p2), 80   ;;  %vm961_vm4 = vcmask (!%p387_p2), 130048   ;;  %vm963_vm5 = vcmask (!%p387_p2), 195584   ;;  %vm1171_vm6 = vcmask (!%p387_p2), 523264   ;;  %vm1246_vm7 = vcmask (!%p387_p2), 257024  }
   0x8   : > { %1372 = vmatprep.subr.bf16.mxu0 (!%p387_p2), %v1516_v1  ;;  %1380 = vmatprep.mubr.msk.bf16.mxu1 (!%p387_p2), %vm1517_vm0, %v1516_v1  ;;  %s1521_s23 = smov (!%p387_p2), 88   ;;  %s1522_s24 = smov (!%p387_p2), 72  }
   0x9   : > { %s1523_s27 = smov (!%p387_p2), 112   ;;  %s1524_s28 = smov (!%p387_p2), 104  }
   0xa   : > { %s1525_s29 = smov (!%p387_p2), 56   ;;  %s1526_s30 = smov (!%p387_p2), 64  }
   0xb   : > { %1373 = vmatpush3.bf16.msra.mxu0 (!%p387_p2), %v1479_v2  ;;  %s1528_s15 = smov (!%p387_p2), 48   ;;  %s1529_s16 = smov (!%p387_p2), 8  }
   0xc   : > { %1384 = vmatprep.subr.bf16.mxu0 (!%p387_p2), %v1516_v1 }
   0xd   : > { %s1785_s26 = smov (!%p428_p3, %s1301_s26), 1 }
   0xe   : > { %s1306_s14 = sshll.u32 %s1785_s26, 3  ;;  %s1307_s19 = sshll.u32 %s1785_s26, 2 }
   0xf   : > { %s431_s17 = scalar_lea.vmem %s1770_s0, %s1306_s14  ;;  %s1527_s14 = smov 40  }
  0x10   : > { %v1630_v3 = vld [vmem:[%s431_s17] sm:$0xff] }
  0x11   : > { %v438_v4 = vpack.c.bf16 %v1630_v3, %v1630_v3 }
  0x13   : > { %1375 = vmatmul.mubr.msk.bf16.vlgmr.msra.gmra.mrb[0].mxu0 %vm462_vm1, %v438_v4 }
  0x14   : > { %1386 = vmatprep.mubr.msk.bf16.mxu0 %vm1517_vm0, %v1516_v1 }
  0xe6   : > { %v500_v6 = vpop.f32.mrb[0].mxu0 }
  0xe7   : > { %v501_v7 = vadd.f32 %v1308_v5, %v500_v6  ;;  %v1376_v8 = vpop.f32.mrb[1].mxu0 }
  0xe8   : > { %v503_v9 = vpop.f32.mrb[2].mxu0 }
  0xe9   : > { %v1640_v10 = vpack.c.bf16 %v501_v7, %v501_v7  ;;  %v1377_v11 = vpop.f32.mrb[3].mxu0 }
  0xeb   : > { %618 = vrot.lane.b32.xlu1 %v1640_v10, %s1518_s20  ;;  %508 = vrot.lane.b32.xlu0 %v1640_v10, %s1519_s21  ;;  %s1530_s21 = smov 16  }
  0xef   : > { %730 = vrot.lane.b32.xlu1 %v1640_v10, %s1520_s22  ;;  %620 = vrot.lane.b32.xlu0 %v1640_v10, %s1521_s23  ;;  %s1531_s22 = smov 24  }
  0xf3   : > { %840 = vrot.lane.b32.xlu1 %v1640_v10, %s1522_s24  ;;  %728 = vrot.lane.b32.xlu0 %v1640_v10, %s1523_s27 }
  0xf7   : > { %838 = vrot.lane.b32.xlu0 %v1640_v10, %s1524_s28 }
 0x15d   : > { %v509_v12 = vpop.permute.xlu0 %508  ;;  %v619_v15 = vpop.permute.xlu1 %618 }
 0x15e   : > { %v515_v13 = vsel %vm510_vm2, %v509_v12, 0 }
 0x15f   : > { %1379 = vmatpush3.bf16.xpose.msra.mxu1 %v515_v13 }
 0x160   : > { %1390 = vmatprep.subr.bf16.mxu1 %v1516_v1 }
 0x161   : > { %v621_v14 = vpop.permute.xlu0 %620  ;;  %v731_v17 = vpop.permute.xlu1 %730 }
 0x162   : > { %v626_v16 = vsel %vm510_vm2, %v621_v14, 0  ;;  %v736_v18 = vsel %vm510_vm2, %v731_v17, 0 }
 0x165   : > { %v841_v19 = vpop.permute.xlu1 %840  ;;  %v729_v20 = vpop.permute.xlu0 %728 }
 0x166   : > { %1381 = vmatmul.mubr.msk.bf16.vlgmr.msra.gmra.mrb[0].mxu1 %vm510_vm2, %v1640_v10  ;;  %v846_v21 = vsel %vm510_vm2, %v841_v19, 0 }
 0x167   : > { %1391 = vmatpush3.bf16.xpose.msra.mxu1 %v626_v16  ;;  %1392 = vmatprep.mubr.msk.bf16.mxu1 %vm1517_vm0, %v1516_v1 }
 0x168   : > { %1402 = vmatprep.subr.bf16.mxu1 %v1516_v1 }
 0x169   : > { %v839_v22 = vpop.permute.xlu0 %838 }
 0x16e   : > { %1393 = vmatmul.mubr.msk.bf16.vlgmr.msra.gmra.mrb[4].mxu1 %vm510_vm2, %v619_v15 }
 0x16f   : > { %1403 = vmatpush3.bf16.xpose.msra.mxu1 %v736_v18  ;;  %1404 = vmatprep.mubr.msk.bf16.mxu1 %vm1517_vm0, %v1516_v1 }
 0x170   : > { %1414 = vmatprep.subr.bf16.mxu1 %v1516_v1 }
 0x176   : > { %1405 = vmatmul.mubr.msk.bf16.vlgmr.msra.gmra.mrb[8].mxu1 %vm510_vm2, %v729_v20 }
 0x177   : > { %1415 = vmatpush3.bf16.xpose.msra.mxu1 %v846_v21  ;;  %1416 = vmatprep.mubr.msk.bf16.mxu1 %vm1517_vm0, %v1516_v1 }
 0x178   : > { %1426 = vmatprep.subr.bf16.mxu1 %v1516_v1 }
 0x17e   : > { %1417 = vmatmul.mubr.msk.bf16.vlgmr.msra.gmra.mrb[12].mxu1 %vm510_vm2, %v839_v22 }
 0x17f   : > { %1430 = vmatprep.mubr.msk.bf16.mxu1 %vm1517_vm0, %v1516_v1 }
 0x239   : > { %v551_v23 = vpop.f32.mrb[0].mxu1 }
 0x23a   : > { %v1382_v24 = vpop.f32.mrb[1].mxu1  ;;  %v557_v25 = vsel %vm510_vm2, %v551_v23, -inf }
 0x23b   : > { %558 = vmax.xlane.f32.xlu1 %v557_v25  ;;  %v554_v26 = vpop.f32.mrb[2].mxu1 }
 0x23c   : > { %v1383_v27 = vpop.f32.mrb[3].mxu1 }
 0x241   : > { %v662_v28 = vpop.f32.mrb[4].mxu1 }
 0x242   : > { %v1394_v29 = vpop.f32.mrb[5].mxu1  ;;  %v668_v30 = vsel %vm510_vm2, %v662_v28, -inf }
 0x243   : > { %669 = vmax.xlane.f32.xlu0 %v668_v30  ;;  %v665_v31 = vpop.f32.mrb[6].mxu1 }
 0x244   : > { %v1395_v32 = vpop.f32.mrb[7].mxu1 }
 0x249   : > { %v772_v33 = vpop.f32.mrb[8].mxu1 }
 0x24a   : > { %v1406_v34 = vpop.f32.mrb[9].mxu1  ;;  %v778_v35 = vsel %vm510_vm2, %v772_v33, -inf }
 0x24b   : > { %779 = vmax.xlane.f32.xlu0 %v778_v35  ;;  %v775_v36 = vpop.f32.mrb[10].mxu1  ;;  %v1481_v34 = vld [vmem:[%s1773_s3 + $0x8] sm:$0xff]  }
 0x24c   : > { %v1407_v37 = vpop.f32.mrb[11].mxu1 }
 0x251   : > { %v882_v38 = vpop.f32.mrb[12].mxu1 }
 0x252   : > { %v1418_v39 = vpop.f32.mrb[13].mxu1  ;;  %v888_v40 = vsel %vm510_vm2, %v882_v38, -inf }
 0x253   : > { %889 = vmax.xlane.f32.xlu1 %v888_v40  ;;  %v885_v41 = vpop.f32.mrb[14].mxu1 }
 0x254   : > { %v1419_v42 = vpop.f32.mrb[15].mxu1 }
 0x2c8   : > { %v559_v43 = vpop.xlane.xlu1 %558 }
 0x2c9   : > { %v560_v44 = vsub.f32 %v551_v23, %v559_v43 }
 0x2cb   : > { %v561_v45 = vmul.f32 1.442695, %v560_v44 }
 0x2cd   : > { %1488 = vpow2.f32 %v561_v45 }
 0x2d0   : > { %v670_v46 = vpop.xlane.xlu0 %669 }
 0x2d1   : > { %v671_v47 = vsub.f32 %v662_v28, %v670_v46 }
 0x2d3   : > { %v672_v48 = vmul.f32 1.442695, %v671_v47 }
 0x2d5   : > { %1490 = vpow2.f32 %v672_v48 }
 0x2d7   : > { %v1489_v49 = vpop.eup %1488 }
 0x2d8   : > { %v780_v50 = vpop.xlane.xlu0 %779  ;;  %v563_v51 = vsel %vm510_vm2, %v1489_v49, 0.0 }
 0x2d9   : > { %v781_v52 = vsub.f32 %v772_v33, %v780_v50  ;;  %564 = vadd.xlane.f32.xlu0 %v563_v51  ;;  %v1480_v33 = vld [vmem:[%s1773_s3] sm:$0xff]  }
 0x2da   : > { %1427 = vmatpush3.bf16.msra.mxu1 %v1480_v33  ;;  %v1320_v50 = vld [vmem:[%s1774_s4] ss:$0 sm:$0xff] }
 0x2db   : > { %v782_v53 = vmul.f32 1.442695, %v781_v52  ;;  %1428 = vmatprep.subr.bf16.mxu1 %v1516_v1 }
 0x2dd   : > { %1492 = vpow2.f32 %v782_v53 }
 0x2de   : > { %1429 = vmatpush3.bf16.msra.mxu1 %v1481_v34 }
 0x2df   : > { %v1491_v54 = vpop.eup %1490  ;;  %1442 = vmatprep.subr.bf16.mxu1 %v1516_v1 }
 0x2e0   : > { %v674_v55 = vsel %vm510_vm2, %v1491_v54, 0.0  ;;  %v890_v58 = vpop.xlane.xlu1 %889 }
 0x2e1   : > { %675 = vadd.xlane.f32.xlu1 %v674_v55  ;;  %v891_v59 = vsub.f32 %v882_v38, %v890_v58 }
 0x2e3   : > { %v892_v60 = vmul.f32 1.442695, %v891_v59 }
 0x2e5   : > { %1494 = vpow2.f32 %v892_v60 }
 0x2e7   : > { %v1493_v56 = vpop.eup %1492 }
 0x2e8   : > { %v784_v57 = vsel %vm510_vm2, %v1493_v56, 0.0 }
 0x2e9   : > { %785 = vadd.xlane.f32.xlu0 %v784_v57 }
 0x2ef   : > { %v1495_v61 = vpop.eup %1494 }
 0x2f0   : > { %v894_v62 = vsel %vm510_vm2, %v1495_v61, 0.0 }
 0x2f2   : > { %680 = vrot.lane.b32.xlu1 %v1640_v10, %s1525_s29 }
 0x2ff   : > { %569 = vrot.lane.b32.xlu0 %v1640_v10, %s1526_s30 }
 0x303   : > { %900 = vrot.lane.b32.xlu0 %v1640_v10, %s1527_s14 }
 0x316   : > { %895 = vadd.xlane.f32.xlu1 %v894_v62 }
 0x327   : > { %790 = vrot.lane.b32.xlu1 %v1640_v10, %s1528_s15 }
 0x366   : > { %v565_v63 = vpop.xlane.xlu0 %564 }
 0x367   : > { %1496 = vrcp.f32 %v565_v63  ;;  %v1482_v63 = vld [vmem:[%s1777_s7] sm:$0xff]  }
 0x36e   : > { %v676_v0 = vpop.xlane.xlu1 %675 }
 0x36f   : > { %1498 = vrcp.f32 %v676_v0  ;;  %v1484_v0 = vld [vmem:[%s1779_s9] sm:$0xff]  }
 0x371   : > { %v1497_v2 = vpop.eup %1496 }
 0x372   : > { %v567_v5 = vmul.f32 %v1497_v2, %v1489_v49  ;;  %v681_v8 = vpop.permute.xlu1 %680  ;;  %v1485_v2 = vld [vmem:[%s1779_s9 + $0x8] sm:$0xff]  }
 0x373   : > { %v686_v12 = vsel %vm574_vm3, %v681_v8, 0  ;;  %v1324_v8 = vld [vmem:[%s1775_s5] ss:$0 sm:$0xff] }
 0x374   : > { %v568_v9 = vpack.c.bf16 %v567_v5, %v567_v5 }
 0x376   : > { %v786_v4 = vpop.xlane.xlu0 %785 }
 0x377   : > { %1500 = vrcp.f32 %v786_v4 }
 0x379   : > { %v1499_v11 = vpop.eup %1498 }
 0x37a   : > { %v570_v6 = vpop.permute.xlu0 %569  ;;  %v678_v10 = vmul.f32 %v1499_v11, %v1491_v54  ;;  %v1325_v11 = vld [vmem:[%s1776_s6] ss:$0 sm:$0xff] }
 0x37b   : > { %v576_v7 = vsel %vm574_vm3, %v570_v6, 0 }
 0x37c   : > { %1385 = vmatpush3.bf16.msra.mxu0 %v576_v7  ;;  %v679_v13 = vpack.c.bf16 %v678_v10, %v678_v10 }
 0x37d   : > { %1396 = vmatprep.subr.bf16.mxu0 %v1516_v1 }
 0x37e   : > { %v901_v19 = vpop.permute.xlu0 %900 }
 0x37f   : > { %1387 = vmatmul.mubr.msk.bf16.vlgmr.msra.gmra.mrb[4].mxu0 %vm510_vm2, %v568_v9  ;;  %v906_v21 = vsel %vm574_vm3, %v901_v19, 0 }
 0x380   : > { %1397 = vmatpush3.bf16.msra.mxu0 %v686_v12  ;;  %1398 = vmatprep.mubr.msk.bf16.mxu0 %vm1517_vm0, %v1516_v1 }
 0x381   : > { %1408 = vmatprep.subr.bf16.mxu0 %v1516_v1  ;;  %v1501_v14 = vpop.eup %1500 }
 0x382   : > { %v788_v16 = vmul.f32 %v1501_v14, %v1493_v56  ;;  %v1486_v14 = vld [vmem:[%s1779_s9 + $0x10] sm:$0xff]  }
 0x384   : > { %v789_v20 = vpack.c.bf16 %v788_v16, %v788_v16  ;;  %v1326_v16 = vld [vmem:[%s1778_s8] ss:$0 sm:$0xff] }
 0x387   : > { %1399 = vmatmul.mubr.msk.bf16.vlgmr.msra.gmra.mrb[8].mxu0 %vm510_vm2, %v679_v13 }
 0x388   : > { %1410 = vmatprep.mubr.msk.bf16.mxu0 %vm1517_vm0, %v1516_v1 }
 0x3a3   : > { %v896_v15 = vpop.xlane.xlu1 %895 }
 0x3a4   : > { %1502 = vrcp.f32 %v896_v15  ;;  %v1487_v15 = vld [vmem:[%s1779_s9 + $0x18] sm:$0xff]  }
 0x3a7   : > { %v791_v17 = vpop.permute.xlu1 %790 }
 0x3a8   : > { %v796_v18 = vsel %vm574_vm3, %v791_v17, 0 }
 0x3a9   : > { %1409 = vmatpush3.bf16.msra.mxu0 %v796_v18 }
 0x3aa   : > { %1420 = vmatprep.subr.bf16.mxu0 %v1516_v1 }
 0x3ac   : > { %1411 = vmatmul.mubr.msk.bf16.vlgmr.msra.gmra.mrb[12].mxu0 %vm510_vm2, %v789_v20 }
 0x3ad   : > { %1421 = vmatpush3.bf16.msra.mxu0 %v906_v21  ;;  %1422 = vmatprep.mubr.msk.bf16.mxu0 %vm1517_vm0, %v1516_v1 }
 0x3ae   : > { %v1503_v22 = vpop.eup %1502  ;;  %1434 = vmatprep.subr.bf16.mxu0 %v1516_v1 }
 0x3af   : > { %v898_v23 = vmul.f32 %v1503_v22, %v1495_v61 }
 0x3b1   : > { %v899_v24 = vpack.c.bf16 %v898_v23, %v898_v23 }
 0x3b4   : > { %1423 = vmatmul.mubr.msk.bf16.vlgmr.msra.gmra.mrb[16].mxu0 %vm510_vm2, %v899_v24 }
 0x3b5   : > { %1438 = vmatprep.mubr.msk.bf16.mxu0 %vm1517_vm0, %v1516_v1  ;;  %1435 = vmatpush3.bf16.msra.mxu0 %v1482_v63 }
 0x3b6   : > { %1436 = vmatprep.subr.bf16.mxu0 %v1516_v1 }
 0x452   : > { %v612_v25 = vpop.f32.mrb[4].mxu0 }
 0x453   : > { %v1388_v26 = vpop.f32.mrb[5].mxu0 }
 0x454   : > { %v615_v27 = vpop.f32.mrb[6].mxu0 }
 0x455   : > { %v1389_v28 = vpop.f32.mrb[7].mxu0 }
 0x45a   : > { %v722_v29 = vpop.f32.mrb[8].mxu0 }
 0x45b   : > { %949 = vrot.lane.b32.xlu1 %v722_v29, %s1529_s16  ;;  %v1400_v30 = vpop.f32.mrb[9].mxu0 }
 0x45c   : > { %v725_v31 = vpop.f32.mrb[10].mxu0 }
 0x45d   : > { %v1401_v32 = vpop.f32.mrb[11].mxu0 }
 0x47f   : > { %v832_v35 = vpop.f32.mrb[12].mxu0 }
 0x480   : > { %953 = vrot.lane.b32.xlu0 %v832_v35, %s1530_s21  ;;  %v1412_v36 = vpop.f32.mrb[13].mxu0 }
 0x481   : > { %v835_v37 = vpop.f32.mrb[14].mxu0 }
 0x482   : > { %v1413_v38 = vpop.f32.mrb[15].mxu0 }
 0x487   : > { %v942_v39 = vpop.f32.mrb[16].mxu0 }
 0x488   : > { %957 = vrot.lane.b32.xlu1 %v942_v39, %s1531_s22  ;;  %v1424_v40 = vpop.f32.mrb[17].mxu0  ;;  %s435_s22 = scalar_lea.vmem %s1783_s13, %s1307_s19 }
 0x489   : > { %v945_v41 = vpop.f32.mrb[18].mxu0  ;;  %v1336_v40 = vld [vmem:[%s1781_s11] ss:$0 sm:$0xff] }
 0x48a   : > { %v1425_v42 = vpop.f32.mrb[19].mxu0 }
 0x48b   : > { %v1337_v42 = vld [vmem:[%s1782_s12] ss:$0 sm:$0xff] }
 0x4cd   : > { %v950_v43 = vpop.permute.xlu1 %949 }
 0x4ce   : > { %v960_v45 = vsel %vm510_vm2, %v612_v25, %v950_v43 }
 0x4f2   : > { %v954_v44 = vpop.permute.xlu0 %953 }
 0x4f3   : > { %v962_v46 = vsel %vm961_vm4, %v960_v45, %v954_v44 }
 0x4fa   : > { %v958_v47 = vpop.permute.xlu1 %957 }
 0x4fb   : > { %v964_v48 = vsel %vm963_vm5, %v962_v46, %v958_v47 }
 0x4fc   : > { %v965_v49 = vpack.c.bf16 %v964_v48, %v964_v48 }
 0x4fe   : > { %1431 = vmatmul.mubr.msk.bf16.vlgmr.msra.gmra.mrb[16].mxu1 %vm462_vm1, %v965_v49 }
 0x4ff   : > { %1450 = vmatprep.mubr.msk.bf16.mxu1 %vm1517_vm0, %v1516_v1  ;;  %1443 = vmatpush3.bf16.msra.mxu1 %v1484_v0 }
 0x500   : > { %1444 = vmatprep.subr.bf16.mxu1 %v1516_v1 }
 0x503   : > { %1445 = vmatpush3.bf16.msra.mxu1 %v1485_v2 }
 0x504   : > { %1446 = vmatprep.subr.bf16.mxu1 %v1516_v1 }
 0x507   : > { %1447 = vmatpush3.bf16.msra.mxu1 %v1486_v14 }
 0x508   : > { %1448 = vmatprep.subr.bf16.mxu1 %v1516_v1  ;;  %v1330_v1 = vld [vmem:[%s1780_s10] ss:$0 sm:$0xff] }
 0x50b   : > { %1449 = vmatpush3.bf16.msra.mxu1 %v1487_v15 }
 0x5d1   : > { %v1026_v51 = vpop.f32.mrb[16].mxu1 }
 0x5d2   : > { %v1027_v52 = vadd.f32 %v1320_v50, %v1026_v51  ;;  %v1432_v53 = vpop.f32.mrb[17].mxu1 }
 0x5d3   : > { %v1029_v54 = vpop.f32.mrb[18].mxu1 }
 0x5d4   : > { %v1433_v55 = vpop.f32.mrb[19].mxu1  ;;  %v1032_v56 = vadd.f32 %v1027_v52, %v1630_v3  ;;  %v1483_v3 = vld [vmem:[%s1777_s7 + $0x8] sm:$0xff]  }
 0x5d5   : > { %1437 = vmatpush3.bf16.msra.mxu0 %v1483_v3 }
 0x5d6   : > { %v1035_v57 = vsel %vm462_vm1, %v1032_v56, 0.0 }
 0x5d7   : > { %1036 = vadd.xlane.f32.xlu0 %v1035_v57 }
 0x664   : > { %v1037_v58 = vpop.xlane.xlu0 %1036 }
 0x665   : > { %v1039_v59 = vmul.f32 0.03125, %v1037_v58 }
 0x667   : > { %v1040_v60 = vsub.f32 %v1032_v56, %v1039_v59 }
 0x669   : > { %v1041_v61 = vmul.f32 %v1040_v60, %v1040_v60 }
 0x66b   : > { %v1042_v62 = vsel %vm462_vm1, %v1041_v61, 0.0 }
 0x66c   : > { %1043 = vadd.xlane.f32.xlu1 %v1042_v62 }
 0x6f9   : > { %v1044_v4 = vpop.xlane.xlu1 %1043 }
 0x6fa   : > { %v1045_v5 = vmul.f32 0.03125, %v1044_v4 }
 0x6fc   : > { %v1046_v6 = vadd.f32 1e-05, %v1045_v5 }
 0x6fe   : > { %1504 = vrsqrt.f32 %v1046_v6 }
 0x708   : > { %v1505_v7 = vpop.eup %1504 }
 0x709   : > { %v1048_v9 = vmul.f32 %v1505_v7, %v1040_v60 }
 0x70b   : > { %v1055_v12 = vmul.f32 %v1324_v8, %v1048_v9 }
 0x70d   : > { %v1062_v10 = vadd.f32 %v1325_v11, %v1055_v12 }
 0x70f   : > { %v1063_v13 = vpack.c.bf16 %v1062_v10, %v1062_v10 }
 0x711   : > { %1439 = vmatmul.mubr.msk.bf16.vlgmr.msra.gmra.mrb[20].mxu0 %vm462_vm1, %v1063_v13 }
 0x7e4   : > { %v1124_v17 = vpop.f32.mrb[20].mxu0 }
 0x7e5   : > { %v1125_v18 = vadd.f32 %v1326_v16, %v1124_v17  ;;  %v1440_v19 = vpop.f32.mrb[21].mxu0 }
 0x7e6   : > { %v1127_v20 = vpop.f32.mrb[22].mxu0 }
 0x7e7   : > { %v1130_v21 = vmax.f32 %v1125_v18, 0.0  ;;  %v1441_v22 = vpop.f32.mrb[23].mxu0 }
 0x7e9   : > { %v1131_v23 = vpack.c.bf16 %v1130_v21, %v1130_v21 }
 0x7eb   : > { %1451 = vmatmul.mubr.msk.bf16.vlgmr.msra.gmra.mrb[20].mxu1 %vm1171_vm6, %v1131_v23 }
 0x8be   : > { %v1209_v24 = vpop.f32.mrb[20].mxu1 }
 0x8bf   : > { %v1210_v25 = vadd.f32 %v1330_v1, %v1209_v24  ;;  %v1452_v26 = vpop.f32.mrb[21].mxu1 }
 0x8c0   : > { %v1212_v27 = vpop.f32.mrb[22].mxu1 }
 0x8c1   : > { %v1453_v28 = vpop.f32.mrb[23].mxu1  ;;  %v1215_v29 = vadd.f32 %v1210_v25, %v1062_v10 }
 0x8c3   : > { %v1218_v30 = vsel %vm462_vm1, %v1215_v29, 0.0 }
 0x8c4   : > { %1219 = vadd.xlane.f32.xlu0 %v1218_v30 }
 0x951   : > { %v1220_v31 = vpop.xlane.xlu0 %1219 }
 0x952   : > { %v1221_v32 = vmul.f32 0.03125, %v1220_v31 }
 0x954   : > { %v1222_v33 = vsub.f32 %v1215_v29, %v1221_v32 }
 0x956   : > { %v1223_v34 = vmul.f32 %v1222_v33, %v1222_v33 }
 0x958   : > { %v1224_v35 = vsel %vm462_vm1, %v1223_v34, 0.0 }
 0x959   : > { %1225 = vadd.xlane.f32.xlu0 %v1224_v35 }
 0x9e6   : > { %v1226_v36 = vpop.xlane.xlu0 %1225 }
 0x9e7   : > { %v1227_v37 = vmul.f32 0.03125, %v1226_v36 }
 0x9e9   : > { %v1228_v38 = vadd.f32 1e-05, %v1227_v37 }
 0x9eb   : > { %1506 = vrsqrt.f32 %v1228_v38 }
 0x9f5   : > { %v1507_v39 = vpop.eup %1506 }
 0x9f6   : > { %v1230_v41 = vmul.f32 %v1507_v39, %v1222_v33 }
 0x9f8   : > { %v1237_v43 = vmul.f32 %v1336_v40, %v1230_v41 }
 0x9fa   : > { %v1244_v44 = vadd.f32 %v1337_v42, %v1237_v43 }
 0x9fc   : > { %v1245_v45 = vpack.c.bf16 %v1244_v44, %v1244_v44 }
 0x9fe   : > { %1247 = vst.msk [vmem:[%s435_s22] sm:$0xf] %vm1246_vm7, %v1245_v45 }
 0x9ff PF: > { %s23_s25 = sadd.s32 1, %s1514_s25  }
 0xa00   : > { %p20_p4 = scmp.ge.s32.totalorder %s23_s25, 4  }
 0xa02   :  { %22 = sbr.rel (!%p20_p4) target bundleno = 1 (0x1), region = 102 }

// kernel: transformer_forward.6
= control target key start
LH: loop header
LB: loop body
LE: loop exit
PB: predicated region body
PF: predicated region fallthrough
CT: control target
= control target key end

     0   :  { %18 = vsyncpa [#allocation3], 0  ;;  %s1673_s25 = smov 0   ;;  %s1879_s0 = inlined_call_operand.vmem [shape: bf16[2,8,32], index: 0, kind: input, shape index: {}]   ;;  %s1880_s1 = inlined_call_operand.vmem [shape: bf16[32,96], index: 1, kind: input, shape index: {}]   ;;  %s1881_s2 = inlined_call_operand.vmem [shape: f32[1,96], index: 2, kind: input, shape index: {}]   ;;  %s1882_s3 = inlined_call_operand.vmem [shape: bf16[32,32], index: 3, kind: input, shape index: {}]   ;;  %s1883_s4 = inlined_call_operand.vmem [shape: f32[1,32], index: 4, kind: input, shape index: {}]   ;;  %s1884_s5 = inlined_call_operand.vmem [shape: f32[1,32], index: 5, kind: input, shape index: {}]   ;;  %s1885_s6 = inlined_call_operand.vmem [shape: f32[1,32], index: 6, kind: input, shape index: {}]   ;;  %s1886_s7 = inlined_call_operand.vmem [shape: bf16[32,64], index: 7, kind: input, shape index: {}]   ;;  %s1887_s8 = inlined_call_operand.vmem [shape: f32[1,64], index: 8, kind: input, shape index: {}]   ;;  %s1888_s9 = inlined_call_operand.vmem [shape: bf16[64,32], index: 9, kind: input, shape index: {}]   ;;  %s1889_s10 = inlined_call_operand.vmem [shape: f32[1,32], index: 10, kind: input, shape index: {}]   ;;  %s1890_s11 = inlined_call_operand.vmem [shape: f32[1,32], index: 11, kind: input, shape index: {}]   ;;  %s1891_s12 = inlined_call_operand.hbm [shape: f32[1,32], index: 12, kind: input, shape index: {}]   ;;  %s1892_s13 = inlined_call_operand.vmem [shape: bf16[2,8,32], index: 13, kind: output, shape index: {}]  }
   0x1 LB: > { %s1679_s26 = sadd.s32 4294967295, %s1584_s25   ;;  %p1328_p0 = scmp.ge.s32.totalorder %s1584_s25, 1  ;;  %s1584_s25 = sphi %s1673_s25, %s24_s25  }
   0x2   : > { %p333_p1 = scmp.lt.s32.totalorder %s1584_s25, 3  ;;  %p1893_p3 = scmp.eq.s32.totalorder %s1679_s26, 0 }
   0x3   : > { %s1586_s28 = smov [#allocation2]   ;;  %s1546_s16 = scalar_lea.hbm %s1891_s12, 16 }
   0x4   : > { %p1683_p2 = pnand %p1328_p0, %p333_p1  ;;  %s379_s29 = sshll.u32 %s1586_s28, 4  ;;  %s380_s29 = int_to_ptr.vmem [resolvable:$true] %s379_s29 }
   0x5   : > { %p1547_p6 = scmp.ne.s32.totalorder %s1891_s12, %s1546_s16  ;;  %p1553_p10 = scmp.lt.u32.totalorder %s1546_s16, %s1891_s12 }
   0x6   : > { %s1895_s27 = scalar_select %p1683_p2, 1, 0 }
   0x7   : > { %p1485_p4 = pneg %p1683_p2 }
   0x9   : > { %p1692_p5 = pnand %p1893_p3, %p1485_p4 }
   0xb   : > { %p1548_p7 = pneg %p1692_p5 }
   0xd   : > { %p1549_p8 = pnand %p1548_p7, %p1547_p6 }
   0xf   : > { %p1550_p9 = pneg %p1549_p8 }
  0x11   : > { %p1555_p11 = pnand %p1553_p10, %p1550_p9 }
  0x13   : > { %1558 = shalt.err (!%p1555_p11)
}
  0x14   : > { %s1559_s21 = scalar_lea.vmem %s380_s29, 16  ;;  %s1566_s22 = scalar_lea.vmem %s380_s29, 32 }
  0x15   : > { %p1560_p12 = scmp.ne.s32.totalorder %s380_s29, %s1559_s21  ;;  %p1567_p1 = scmp.lt.s32.totalorder %s380_s29, %s380_s29 }
  0x16   : > { %p1568_p4 = scmp.lt.s32.totalorder %s1566_s22, %s1559_s21 }
  0x17   : > { %p1562_p13 = pnand %p1560_p12, %p1548_p7 }
  0x18   : > { %p1569_p3 = por %p1568_p4, %p1567_p1 }
  0x19   : > { %p1563_p0 = pneg %p1562_p13 }
  0x1b   : > { %p1570_p2 = pnand %p1569_p3, %p1563_p0 }
  0x1d   : > { %1573 = shalt.err (!%p1570_p2)
}
  0x1e   : > { %1488 = dma.hbm_to_vmem [thread:$0]  (!%p1692_p5), %s1891_s12, 16, %s380_s29, [#allocation3]  }
  0x1f   : > { %p1897_p6 = scmp.ne.s32.totalorder %s1895_s27, 0 }
  0x20   : > { %p1898_p8 = scmp.eq.s32.totalorder (!%p1897_p6), %s1679_s26, 0 }
  0x21   : > { %399 = sbr.rel (%p1897_p6) target bundleno = 2591 (0xa1f), region = 72 }
  0x28   : > { %1579 = dma.done.wait (%p1898_p8), [#allocation3], 16   ;;  %p1899_p7 = pmov %p1898_p8 }
  0x29   : > { %p441_p9 = scmp.lt.s32.totalorder %s1679_s26, 1  ;;  %v1587_v0 = vmov 0.0   ;;  %vm1588_vm0 = vmmov 0   ;;  %v1516_v1 = vld [vmem:[%s1880_s1] sm:$0xff]   ;;  %v1517_v2 = vld [vmem:[%s1880_s1 + $0x8] sm:$0xff]   ;;  %vm475_vm1 = vcmask 261120  }
  0x2a   : > { %1581 = vsyncadd (%p1899_p7), [#allocation3], 4294967280  ;;  %1397 = vmatprep.subr.bf16.mxu0 %v1587_v0  ;;  %1401 = vmatprep.mubr.msk.bf16.mxu0 %vm1588_vm0, %v1587_v0  ;;  %v1335_v4 = vld [vmem:[%s1881_s2] ss:$0 sm:$0xff]  ;;  %s1589_s20 = smov 120   ;;  %s1590_s21 = smov 96  }
  0x2b   : > { %s1901_s26 = smov (!%p441_p9, %s1679_s26), 1  ;;  %1405 = vmatprep.subr.bf16.mxu1 %v1587_v0  ;;  %1407 = vmatprep.mubr.msk.bf16.mxu1 %vm1588_vm0, %v1587_v0  ;;  %s1591_s22 = smov 80   ;;  %vm523_vm2 = vcmask 64512   ;;  %vm587_vm3 = vcmask 1043456   ;;  %vm974_vm4 = vcmask 130048   ;;  %vm976_vm5 = vcmask 195584  }
  0x2c   : > { %s1333_s27 = sshll.u32 %s1901_s26, 2  ;;  %1398 = vmatpush3.bf16.msra.mxu0 %v1516_v1  ;;  %s1592_s23 = smov 88   ;;  %vm1184_vm6 = vcmask 523264   ;;  %vm1259_vm7 = vcmask 257024  }
  0x2d   : > { %s444_s15 = scalar_lea.vmem %s1879_s0, %s1333_s27  ;;  %1399 = vmatprep.subr.bf16.mxu0 %v1587_v0  ;;  %s1593_s24 = smov 72  }
  0x2e   : > { %v1741_v3 = vld [vmem:[%s444_s15] sm:$0xf]  ;;  %s1594_s28 = smov 112   ;;  %s1595_s29 = smov 104  }
  0x2f   : > { %s1596_s30 = smov 56   ;;  %s1597_s14 = smov 64  }
  0x30   : > { %1400 = vmatpush3.bf16.msra.mxu0 %v1517_v2  ;;  %s1598_s15 = smov 40   ;;  %s1599_s16 = smov 48  }
  0x31   : > { %1411 = vmatprep.subr.bf16.mxu0 %v1587_v0  ;;  %s1600_s17 = smov 8  }
  0x33   : > { %1402 = vmatmul.mubr.msk.bf16.vlgmr.msra.gmra.mrb[0].mxu0 %vm475_vm1, %v1741_v3 }
  0x34   : > { %1413 = vmatprep.mubr.msk.bf16.mxu0 %vm1588_vm0, %v1587_v0 }
 0x106   : > { %v513_v5 = vpop.f32.mrb[0].mxu0 }
 0x107   : > { %v514_v6 = vadd.f32 %v1335_v4, %v513_v5  ;;  %v1403_v7 = vpop.f32.mrb[1].mxu0 }
 0x108   : > { %v516_v8 = vpop.f32.mrb[2].mxu0 }
 0x109   : > { %v1751_v9 = vpack.c.bf16 %v514_v6, %v514_v6  ;;  %v1404_v10 = vpop.f32.mrb[3].mxu0 }
 0x10b   : > { %631 = vrot.lane.b32.xlu1 %v1751_v9, %s1589_s20  ;;  %521 = vrot.lane.b32.xlu0 %v1751_v9, %s1590_s21 }
 0x10f   : > { %743 = vrot.lane.b32.xlu1 %v1751_v9, %s1591_s22  ;;  %633 = vrot.lane.b32.xlu0 %v1751_v9, %s1592_s23  ;;  %s1601_s22 = smov 16   ;;  %s1602_s23 = smov 24  }
 0x113   : > { %853 = vrot.lane.b32.xlu1 %v1751_v9, %s1593_s24  ;;  %741 = vrot.lane.b32.xlu0 %v1751_v9, %s1594_s28 }
 0x117   : > { %851 = vrot.lane.b32.xlu0 %v1751_v9, %s1595_s29 }
 0x17d   : > { %v522_v11 = vpop.permute.xlu0 %521  ;;  %v632_v14 = vpop.permute.xlu1 %631 }
 0x17e   : > { %v528_v12 = vsel %vm523_vm2, %v522_v11, 0 }
 0x17f   : > { %1406 = vmatpush3.bf16.xpose.msra.mxu1 %v528_v12 }
 0x180   : > { %1417 = vmatprep.subr.bf16.mxu1 %v1587_v0 }
 0x181   : > { %v634_v13 = vpop.permute.xlu0 %633  ;;  %v744_v16 = vpop.permute.xlu1 %743 }
 0x182   : > { %v639_v15 = vsel %vm523_vm2, %v634_v13, 0  ;;  %v749_v17 = vsel %vm523_vm2, %v744_v16, 0 }
 0x185   : > { %v854_v18 = vpop.permute.xlu1 %853  ;;  %v742_v19 = vpop.permute.xlu0 %741 }
 0x186   : > { %1408 = vmatmul.mubr.msk.bf16.vlgmr.msra.gmra.mrb[0].mxu1 %vm523_vm2, %v1751_v9  ;;  %v859_v20 = vsel %vm523_vm2, %v854_v18, 0 }
 0x187   : > { %1418 = vmatpush3.bf16.xpose.msra.mxu1 %v639_v15  ;;  %1419 = vmatprep.mubr.msk.bf16.mxu1 %vm1588_vm0, %v1587_v0 }
 0x188   : > { %1429 = vmatprep.subr.bf16.mxu1 %v1587_v0 }
 0x189   : > { %v852_v21 = vpop.permute.xlu0 %851 }
 0x18e   : > { %1420 = vmatmul.mubr.msk.bf16.vlgmr.msra.gmra.mrb[4].mxu1 %vm523_vm2, %v632_v14 }
 0x18f   : > { %1430 = vmatpush3.bf16.xpose.msra.mxu1 %v749_v17  ;;  %1431 = vmatprep.mubr.msk.bf16.mxu1 %vm1588_vm0, %v1587_v0 }
 0x190   : > { %1441 = vmatprep.subr.bf16.mxu1 %v1587_v0 }
 0x196   : > { %1432 = vmatmul.mubr.msk.bf16.vlgmr.msra.gmra.mrb[8].mxu1 %vm523_vm2, %v742_v19 }
 0x197   : > { %1442 = vmatpush3.bf16.xpose.msra.mxu1 %v859_v20  ;;  %1443 = vmatprep.mubr.msk.bf16.mxu1 %vm1588_vm0, %v1587_v0 }
 0x198   : > { %1453 = vmatprep.subr.bf16.mxu1 %v1587_v0 }
 0x19e   : > { %1444 = vmatmul.mubr.msk.bf16.vlgmr.msra.gmra.mrb[12].mxu1 %vm523_vm2, %v852_v21 }
 0x19f   : > { %1457 = vmatprep.mubr.msk.bf16.mxu1 %vm1588_vm0, %v1587_v0 }
 0x259   : > { %v564_v22 = vpop.f32.mrb[0].mxu1 }
 0x25a   : > { %v1409_v23 = vpop.f32.mrb[1].mxu1  ;;  %v570_v24 = vsel %vm523_vm2, %v564_v22, -inf }
 0x25b   : > { %571 = vmax.xlane.f32.xlu1 %v570_v24  ;;  %v567_v25 = vpop.f32.mrb[2].mxu1 }
 0x25c   : > { %v1410_v26 = vpop.f32.mrb[3].mxu1 }
 0x261   : > { %v675_v27 = vpop.f32.mrb[4].mxu1 }
 0x262   : > { %v1421_v28 = vpop.f32.mrb[5].mxu1  ;;  %v681_v29 = vsel %vm523_vm2, %v675_v27, -inf }
 0x263   : > { %682 = vmax.xlane.f32.xlu0 %v681_v29  ;;  %v678_v30 = vpop.f32.mrb[6].mxu1 }
 0x264   : > { %v1422_v31 = vpop.f32.mrb[7].mxu1 }
 0x269   : > { %v785_v32 = vpop.f32.mrb[8].mxu1 }
 0x26a   : > { %v1433_v33 = vpop.f32.mrb[9].mxu1  ;;  %v791_v34 = vsel %vm523_vm2, %v785_v32, -inf }
 0x26b   : > { %792 = vmax.xlane.f32.xlu0 %v791_v34  ;;  %v788_v35 = vpop.f32.mrb[10].mxu1  ;;  %v1519_v33 = vld [vmem:[%s1882_s3 + $0x8] sm:$0xff]  }
 0x26c   : > { %v1434_v36 = vpop.f32.mrb[11].mxu1 }
 0x271   : > { %v895_v37 = vpop.f32.mrb[12].mxu1 }
 0x272   : > { %v1445_v38 = vpop.f32.mrb[13].mxu1  ;;  %v901_v39 = vsel %vm523_vm2, %v895_v37, -inf }
 0x273   : > { %902 = vmax.xlane.f32.xlu1 %v901_v39  ;;  %v898_v40 = vpop.f32.mrb[14].mxu1 }
 0x274   : > { %v1446_v41 = vpop.f32.mrb[15].mxu1 }
 0x2e8   : > { %v572_v42 = vpop.xlane.xlu1 %571 }
 0x2e9   : > { %v573_v43 = vsub.f32 %v564_v22, %v572_v42 }
 0x2eb   : > { %v574_v44 = vmul.f32 1.442695, %v573_v43 }
 0x2ed   : > { %1526 = vpow2.f32 %v574_v44 }
 0x2f0   : > { %v683_v45 = vpop.xlane.xlu0 %682 }
 0x2f1   : > { %v684_v46 = vsub.f32 %v675_v27, %v683_v45 }
 0x2f3   : > { %v685_v47 = vmul.f32 1.442695, %v684_v46 }
 0x2f5   : > { %1528 = vpow2.f32 %v685_v47 }
 0x2f7   : > { %v1527_v48 = vpop.eup %1526 }
 0x2f8   : > { %v793_v49 = vpop.xlane.xlu0 %792  ;;  %v576_v50 = vsel %vm523_vm2, %v1527_v48, 0.0 }
 0x2f9   : > { %v794_v51 = vsub.f32 %v785_v32, %v793_v49  ;;  %577 = vadd.xlane.f32.xlu0 %v576_v50  ;;  %v1518_v32 = vld [vmem:[%s1882_s3] sm:$0xff]   ;;  %v451_v50 = vunpack.c.l.bf16 %v1741_v3 }
 0x2fa   : > { %1454 = vmatpush3.bf16.msra.mxu1 %v1518_v32  ;;  %v1347_v49 = vld [vmem:[%s1883_s4] ss:$0 sm:$0xff] }
 0x2fb   : > { %v795_v52 = vmul.f32 1.442695, %v794_v51  ;;  %1455 = vmatprep.subr.bf16.mxu1 %v1587_v0  ;;  %v1520_v3 = vld [vmem:[%s1886_s7] sm:$0xff]  }
 0x2fd   : > { %1530 = vpow2.f32 %v795_v52 }
 0x2fe   : > { %1456 = vmatpush3.bf16.msra.mxu1 %v1519_v33 }
 0x2ff   : > { %v1529_v53 = vpop.eup %1528  ;;  %1469 = vmatprep.subr.bf16.mxu1 %v1587_v0 }
 0x300   : > { %v687_v54 = vsel %vm523_vm2, %v1529_v53, 0.0  ;;  %v903_v57 = vpop.xlane.xlu1 %902 }
 0x301   : > { %688 = vadd.xlane.f32.xlu1 %v687_v54  ;;  %v904_v58 = vsub.f32 %v895_v37, %v903_v57 }
 0x303   : > { %v905_v59 = vmul.f32 1.442695, %v904_v58 }
 0x305   : > { %1532 = vpow2.f32 %v905_v59 }
 0x307   : > { %v1531_v55 = vpop.eup %1530 }
 0x308   : > { %v797_v56 = vsel %vm523_vm2, %v1531_v55, 0.0 }
 0x309   : > { %798 = vadd.xlane.f32.xlu0 %v797_v56 }
 0x30f   : > { %v1533_v60 = vpop.eup %1532 }
 0x310   : > { %v907_v61 = vsel %vm523_vm2, %v1533_v60, 0.0 }
 0x312   : > { %693 = vrot.lane.b32.xlu1 %v1751_v9, %s1596_s30 }
 0x31f   : > { %582 = vrot.lane.b32.xlu0 %v1751_v9, %s1597_s14 }
 0x323   : > { %913 = vrot.lane.b32.xlu0 %v1751_v9, %s1598_s15 }
 0x336   : > { %908 = vadd.xlane.f32.xlu1 %v907_v61 }
 0x347   : > { %803 = vrot.lane.b32.xlu1 %v1751_v9, %s1599_s16 }
 0x386   : > { %v578_v62 = vpop.xlane.xlu0 %577 }
 0x387   : > { %1534 = vrcp.f32 %v578_v62 }
 0x38e   : > { %v689_v63 = vpop.xlane.xlu1 %688 }
 0x38f   : > { %1536 = vrcp.f32 %v689_v63  ;;  %v1521_v63 = vld [vmem:[%s1886_s7 + $0x8] sm:$0xff]  }
 0x391   : > { %v1535_v1 = vpop.eup %1534 }
 0x392   : > { %v580_v4 = vmul.f32 %v1535_v1, %v1527_v48  ;;  %v694_v7 = vpop.permute.xlu1 %693  ;;  %v1522_v1 = vld [vmem:[%s1888_s9] sm:$0xff]  }
 0x393   : > { %v699_v11 = vsel %vm587_vm3, %v694_v7, 0 }
 0x394   : > { %v581_v8 = vpack.c.bf16 %v580_v4, %v580_v4 }
 0x396   : > { %v799_v2 = vpop.xlane.xlu0 %798 }
 0x397   : > { %1538 = vrcp.f32 %v799_v2  ;;  %v1523_v2 = vld [vmem:[%s1888_s9 + $0x8] sm:$0xff]  }
 0x399   : > { %v1537_v10 = vpop.eup %1536 }
 0x39a   : > { %v583_v5 = vpop.permute.xlu0 %582  ;;  %v691_v9 = vmul.f32 %v1537_v10, %v1529_v53 }
 0x39b   : > { %v589_v6 = vsel %vm587_vm3, %v583_v5, 0 }
 0x39c   : > { %1412 = vmatpush3.bf16.msra.mxu0 %v589_v6  ;;  %v692_v12 = vpack.c.bf16 %v691_v9, %v691_v9 }
 0x39d   : > { %1423 = vmatprep.subr.bf16.mxu0 %v1587_v0 }
 0x39e   : > { %v914_v18 = vpop.permute.xlu0 %913 }
 0x39f   : > { %1414 = vmatmul.mubr.msk.bf16.vlgmr.msra.gmra.mrb[4].mxu0 %vm523_vm2, %v581_v8  ;;  %v919_v20 = vsel %vm587_vm3, %v914_v18, 0  ;;  %v1351_v8 = vld [vmem:[%s1884_s5] ss:$0 sm:$0xff] }
 0x3a0   : > { %1424 = vmatpush3.bf16.msra.mxu0 %v699_v11  ;;  %1425 = vmatprep.mubr.msk.bf16.mxu0 %vm1588_vm0, %v1587_v0  ;;  %v1352_v11 = vld [vmem:[%s1885_s6] ss:$0 sm:$0xff] }
 0x3a1   : > { %1435 = vmatprep.subr.bf16.mxu0 %v1587_v0  ;;  %v1539_v13 = vpop.eup %1538 }
 0x3a2   : > { %v801_v15 = vmul.f32 %v1539_v13, %v1531_v55 }
 0x3a4   : > { %v802_v19 = vpack.c.bf16 %v801_v15, %v801_v15  ;;  %v1525_v15 = vld [vmem:[%s1888_s9 + $0x18] sm:$0xff]  }
 0x3a7   : > { %1426 = vmatmul.mubr.msk.bf16.vlgmr.msra.gmra.mrb[8].mxu0 %vm523_vm2, %v692_v12 }
 0x3a8   : > { %1437 = vmatprep.mubr.msk.bf16.mxu0 %vm1588_vm0, %v1587_v0 }
 0x3c3   : > { %v909_v14 = vpop.xlane.xlu1 %908 }
 0x3c4   : > { %1540 = vrcp.f32 %v909_v14  ;;  %v1524_v14 = vld [vmem:[%s1888_s9 + $0x10] sm:$0xff]  }
 0x3c7   : > { %v804_v16 = vpop.permute.xlu1 %803 }
 0x3c8   : > { %v809_v17 = vsel %vm587_vm3, %v804_v16, 0  ;;  %v1353_v16 = vld [vmem:[%s1887_s8] ss:$0 sm:$0xff] }
 0x3c9   : > { %1436 = vmatpush3.bf16.msra.mxu0 %v809_v17 }
 0x3ca   : > { %1447 = vmatprep.subr.bf16.mxu0 %v1587_v0 }
 0x3cc   : > { %1438 = vmatmul.mubr.msk.bf16.vlgmr.msra.gmra.mrb[12].mxu0 %vm523_vm2, %v802_v19 }
 0x3cd   : > { %1448 = vmatpush3.bf16.msra.mxu0 %v919_v20  ;;  %1449 = vmatprep.mubr.msk.bf16.mxu0 %vm1588_vm0, %v1587_v0 }
 0x3ce   : > { %v1541_v21 = vpop.eup %1540  ;;  %1461 = vmatprep.subr.bf16.mxu0 %v1587_v0 }
 0x3cf   : > { %v911_v22 = vmul.f32 %v1541_v21, %v1533_v60 }
 0x3d1   : > { %v912_v23 = vpack.c.bf16 %v911_v22, %v911_v22 }
 0x3d4   : > { %1450 = vmatmul.mubr.msk.bf16.vlgmr.msra.gmra.mrb[16].mxu0 %vm523_vm2, %v912_v23 }
 0x3d5   : > { %1465 = vmatprep.mubr.msk.bf16.mxu0 %vm1588_vm0, %v1587_v0  ;;  %1462 = vmatpush3.bf16.msra.mxu0 %v1520_v3 }
 0x3d6   : > { %1463 = vmatprep.subr.bf16.mxu0 %v1587_v0 }
 0x3d9   : > { %1464 = vmatpush3.bf16.msra.mxu0 %v1521_v63 }
 0x472   : > { %v625_v24 = vpop.f32.mrb[4].mxu0 }
 0x473   : > { %v1415_v25 = vpop.f32.mrb[5].mxu0 }
 0x474   : > { %v628_v26 = vpop.f32.mrb[6].mxu0 }
 0x475   : > { %v1416_v27 = vpop.f32.mrb[7].mxu0 }
 0x47a   : > { %v735_v28 = vpop.f32.mrb[8].mxu0 }
 0x47b   : > { %962 = vrot.lane.b32.xlu1 %v735_v28, %s1600_s17  ;;  %v1427_v29 = vpop.f32.mrb[9].mxu0 }
 0x47c   : > { %v738_v30 = vpop.f32.mrb[10].mxu0 }
 0x47d   : > { %v1428_v31 = vpop.f32.mrb[11].mxu0 }
 0x49f   : > { %v845_v34 = vpop.f32.mrb[12].mxu0 }
 0x4a0   : > { %966 = vrot.lane.b32.xlu0 %v845_v34, %s1601_s22  ;;  %v1439_v35 = vpop.f32.mrb[13].mxu0  ;;  %s448_s22 = scalar_lea.vmem %s1892_s13, %s1333_s27 }
 0x4a1   : > { %v848_v36 = vpop.f32.mrb[14].mxu0 }
 0x4a2   : > { %v1440_v37 = vpop.f32.mrb[15].mxu0 }
 0x4a7   : > { %v955_v38 = vpop.f32.mrb[16].mxu0 }
 0x4a8   : > { %970 = vrot.lane.b32.xlu1 %v955_v38, %s1602_s23  ;;  %v1451_v39 = vpop.f32.mrb[17].mxu0 }
 0x4a9   : > { %v958_v40 = vpop.f32.mrb[18].mxu0 }
 0x4aa   : > { %v1452_v41 = vpop.f32.mrb[19].mxu0  ;;  %v1363_v40 = vld [vmem:[%s1890_s11] ss:$0 sm:$0xff] }
 0x4ed   : > { %v963_v42 = vpop.permute.xlu1 %962 }
 0x4ee   : > { %v973_v44 = vsel %vm523_vm2, %v625_v24, %v963_v42  ;;  %v1364_v42 = vld [vmem:[#allocation2] ss:$0 sm:$0xff] }
 0x512   : > { %v967_v43 = vpop.permute.xlu0 %966 }
 0x513   : > { %v975_v45 = vsel %vm974_vm4, %v973_v44, %v967_v43 }
 0x51a   : > { %v971_v46 = vpop.permute.xlu1 %970 }
 0x51b   : > { %v977_v47 = vsel %vm976_vm5, %v975_v45, %v971_v46 }
 0x51c   : > { %v978_v48 = vpack.c.bf16 %v977_v47, %v977_v47 }
 0x51e   : > { %1458 = vmatmul.mubr.msk.bf16.vlgmr.msra.gmra.mrb[16].mxu1 %vm475_vm1, %v978_v48 }
 0x51f   : > { %1477 = vmatprep.mubr.msk.bf16.mxu1 %vm1588_vm0, %v1587_v0  ;;  %1470 = vmatpush3.bf16.msra.mxu1 %v1522_v1 }
 0x520   : > { %1471 = vmatprep.subr.bf16.mxu1 %v1587_v0 }
 0x523   : > { %1472 = vmatpush3.bf16.msra.mxu1 %v1523_v2 }
 0x524   : > { %1473 = vmatprep.subr.bf16.mxu1 %v1587_v0 }
 0x527   : > { %1474 = vmatpush3.bf16.msra.mxu1 %v1524_v14 }
 0x528   : > { %1475 = vmatprep.subr.bf16.mxu1 %v1587_v0  ;;  %v1357_v0 = vld [vmem:[%s1889_s10] ss:$0 sm:$0xff] }
 0x52b   : > { %1476 = vmatpush3.bf16.msra.mxu1 %v1525_v15 }
 0x5f1   : > { %v1039_v51 = vpop.f32.mrb[16].mxu1 }
 0x5f2   : > { %v1040_v52 = vadd.f32 %v1347_v49, %v1039_v51  ;;  %v1459_v53 = vpop.f32.mrb[17].mxu1 }
 0x5f3   : > { %v1042_v54 = vpop.f32.mrb[18].mxu1 }
 0x5f4   : > { %v1460_v55 = vpop.f32.mrb[19].mxu1  ;;  %v1045_v56 = vadd.f32 %v1040_v52, %v451_v50 }
 0x5f6   : > { %v1048_v57 = vsel %vm475_vm1, %v1045_v56, 0.0 }
 0x5f7   : > { %1049 = vadd.xlane.f32.xlu0 %v1048_v57 }
 0x684   : > { %v1050_v58 = vpop.xlane.xlu0 %1049 }
 0x685   : > { %v1052_v59 = vmul.f32 0.03125, %v1050_v58 }
 0x687   : > { %v1053_v60 = vsub.f32 %v1045_v56, %v1052_v59 }
 0x689   : > { %v1054_v61 = vmul.f32 %v1053_v60, %v1053_v60 }
 0x68b   : > { %v1055_v62 = vsel %vm475_vm1, %v1054_v61, 0.0 }
 0x68c   : > { %1056 = vadd.xlane.f32.xlu1 %v1055_v62 }
 0x719   : > { %v1057_v4 = vpop.xlane.xlu1 %1056 }
 0x71a   : > { %v1058_v5 = vmul.f32 0.03125, %v1057_v4 }
 0x71c   : > { %v1059_v6 = vadd.f32 1e-05, %v1058_v5 }
 0x71e   : > { %1542 = vrsqrt.f32 %v1059_v6 }
 0x728   : > { %v1543_v7 = vpop.eup %1542 }
 0x729   : > { %v1061_v10 = vmul.f32 %v1543_v7, %v1053_v60 }
 0x72b   : > { %v1068_v9 = vmul.f32 %v1351_v8, %v1061_v10 }
 0x72d   : > { %v1075_v12 = vadd.f32 %v1352_v11, %v1068_v9 }
 0x72f   : > { %v1076_v13 = vpack.c.bf16 %v1075_v12, %v1075_v12 }
 0x731   : > { %1466 = vmatmul.mubr.msk.bf16.vlgmr.msra.gmra.mrb[20].mxu0 %vm475_vm1, %v1076_v13 }
 0x804   : > { %v1137_v17 = vpop.f32.mrb[20].mxu0 }
 0x805   : > { %v1138_v18 = vadd.f32 %v1353_v16, %v1137_v17  ;;  %v1467_v19 = vpop.f32.mrb[21].mxu0 }
 0x806   : > { %v1140_v20 = vpop.f32.mrb[22].mxu0 }
 0x807   : > { %v1143_v21 = vmax.f32 %v1138_v18, 0.0  ;;  %v1468_v22 = vpop.f32.mrb[23].mxu0 }
 0x809   : > { %v1144_v23 = vpack.c.bf16 %v1143_v21, %v1143_v21 }
 0x80b   : > { %1478 = vmatmul.mubr.msk.bf16.vlgmr.msra.gmra.mrb[20].mxu1 %vm1184_vm6, %v1144_v23 }
 0x8de   : > { %v1222_v24 = vpop.f32.mrb[20].mxu1 }
 0x8df   : > { %v1223_v25 = vadd.f32 %v1357_v0, %v1222_v24  ;;  %v1479_v26 = vpop.f32.mrb[21].mxu1 }
 0x8e0   : > { %v1225_v27 = vpop.f32.mrb[22].mxu1 }
 0x8e1   : > { %v1480_v28 = vpop.f32.mrb[23].mxu1  ;;  %v1228_v29 = vadd.f32 %v1223_v25, %v1075_v12 }
 0x8e3   : > { %v1231_v30 = vsel %vm475_vm1, %v1228_v29, 0.0 }
 0x8e4   : > { %1232 = vadd.xlane.f32.xlu0 %v1231_v30 }
 0x971   : > { %v1233_v31 = vpop.xlane.xlu0 %1232 }
 0x972   : > { %v1234_v32 = vmul.f32 0.03125, %v1233_v31 }
 0x974   : > { %v1235_v33 = vsub.f32 %v1228_v29, %v1234_v32 }
 0x976   : > { %v1236_v34 = vmul.f32 %v1235_v33, %v1235_v33 }
 0x978   : > { %v1237_v35 = vsel %vm475_vm1, %v1236_v34, 0.0 }
 0x979   : > { %1238 = vadd.xlane.f32.xlu0 %v1237_v35 }
 0xa06   : > { %v1239_v36 = vpop.xlane.xlu0 %1238 }
 0xa07   : > { %v1240_v37 = vmul.f32 0.03125, %v1239_v36 }
 0xa09   : > { %v1241_v38 = vadd.f32 1e-05, %v1240_v37 }
 0xa0b   : > { %1544 = vrsqrt.f32 %v1241_v38 }
 0xa15   : > { %v1545_v39 = vpop.eup %1544 }
 0xa16   : > { %v1243_v41 = vmul.f32 %v1545_v39, %v1235_v33 }
 0xa18   : > { %v1250_v43 = vmul.f32 %v1363_v40, %v1243_v41 }
 0xa1a   : > { %v1257_v44 = vadd.f32 %v1364_v42, %v1250_v43 }
 0xa1c   : > { %v1258_v45 = vpack.c.bf16 %v1257_v44, %v1257_v44 }
 0xa1e   : > { %1260 = vst.msk [vmem:[%s448_s22] sm:$0xf] %vm1259_vm7, %v1258_v45 }
 0xa1f PF: > { %s24_s25 = sadd.s32 1, %s1584_s25  }
 0xa20   : > { %p21_p2 = scmp.ge.s32.totalorder %s24_s25, 4  }
 0xa22   :  { %23 = sbr.rel (!%p21_p2) target bundleno = 1 (0x1), region = 107 }
 0xa29   :  { %1280 = vsyncpa [#allocation3], 1 }
 0xa2a   :  { %1282 = vsyncpa [#allocation3 + $0x1], 1 }

// kernel: transformer_forward.8
= control target key start
LH: loop header
LB: loop body
LE: loop exit
PB: predicated region body
PF: predicated region fallthrough
CT: control target
= control target key end

     0   :  { %s3175_s0 = inlined_call_operand.vmem [shape: bf16[2,8,32], index: 0, kind: input, shape index: {}]   ;;  %s3176_s1 = inlined_call_operand.vmem [shape: bf16[2,8,32], index: 1, kind: input, shape index: {}]   ;;  %s3177_s2 = inlined_call_operand.vmem [shape: bf16[32,96], index: 2, kind: input, shape index: {}]   ;;  %s3178_s3 = inlined_call_operand.vmem [shape: f32[1,96], index: 3, kind: input, shape index: {}]   ;;  %s3179_s4 = inlined_call_operand.vmem [shape: bf16[32,32], index: 4, kind: input, shape index: {}]   ;;  %s3180_s5 = inlined_call_operand.vmem [shape: f32[1,32], index: 5, kind: input, shape index: {}]   ;;  %s3181_s6 = inlined_call_operand.vmem [shape: f32[1,32], index: 6, kind: input, shape index: {}]   ;;  %s3182_s7 = inlined_call_operand.vmem [shape: f32[1,32], index: 7, kind: input, shape index: {}]   ;;  %s3183_s8 = inlined_call_operand.vmem [shape: bf16[32,32], index: 8, kind: input, shape index: {}]   ;;  %s3184_s9 = inlined_call_operand.vmem [shape: f32[1,32], index: 9, kind: input, shape index: {}]   ;;  %s3185_s10 = inlined_call_operand.vmem [shape: bf16[32,64], index: 10, kind: input, shape index: {}]   ;;  %s3186_s11 = inlined_call_operand.vmem [shape: f32[1,64], index: 11, kind: input, shape index: {}]   ;;  %s3187_s12 = inlined_call_operand.vmem [shape: bf16[32,32], index: 12, kind: input, shape index: {}]   ;;  %s3188_s13 = inlined_call_operand.vmem [shape: f32[1,32], index: 13, kind: input, shape index: {}]   ;;  %s3189_s14 = inlined_call_operand.vmem [shape: f32[1,32], index: 14, kind: input, shape index: {}]   ;;  %s3190_s15 = inlined_call_operand.vmem [shape: f32[1,32], index: 15, kind: input, shape index: {}]   ;;  %s3191_s16 = inlined_call_operand.vmem [shape: bf16[32,64], index: 16, kind: input, shape index: {}]   ;;  %s3192_s17 = inlined_call_operand.vmem [shape: f32[1,64], index: 17, kind: input, shape index: {}]   ;;  %s3193_s18 = inlined_call_operand.vmem [shape: bf16[64,32], index: 18, kind: input, shape index: {}]   ;;  %s3194_s19 = inlined_call_operand.vmem [shape: f32[1,32], index: 19, kind: input, shape index: {}]   ;;  %s3195_s20 = inlined_call_operand.vmem [shape: f32[1,32], index: 20, kind: input, shape index: {}]   ;;  %s3196_s21 = inlined_call_operand.hbm [shape: f32[1,32], index: 21, kind: input, shape index: {}]   ;;  %s3197_s22 = inlined_call_operand.vmem [shape: bf16[2,8,32], index: 22, kind: output, shape index: {}]  }
   0x1   :  { %3209 = sst [smem:[#allocation5_spill]] %s3175_s0 }
   0x2   :  { %3210 = sst [smem:[#allocation6_spill]] %s3176_s1 }
   0x3   :  { %3211 = sst [smem:[#allocation7_spill]] %s3177_s2 }
   0x4   :  { %3212 = sst [smem:[#allocation8_spill]] %s3178_s3 }
   0x5   :  { %3213 = sst [smem:[#allocation9_spill]] %s3179_s4 }
   0x6   :  { %3214 = sst [smem:[#allocation10_spill]] %s3180_s5 }
   0x7   :  { %3215 = sst [smem:[#allocation11_spill]] %s3181_s6 }
   0x8   :  { %27 = vsyncpa [#allocation3], 0  ;;  %s2826_s3 = smov 0  }
   0x9 LB: > { %s2832_s28 = sadd.s32 4294967295, %s2692_s3   ;;  %p2292_p0 = scmp.ge.s32.totalorder %s2692_s3, 1  ;;  %s2692_s3 = sphi %s2826_s3, %s33_s3  }
   0xa   : > { %p536_p1 = scmp.lt.s32.totalorder %s2692_s3, 3  ;;  %p3200_p3 = scmp.eq.s32.totalorder %s2832_s28, 0 }
   0xb   : > { %s2694_s30 = smov [#allocation2]   ;;  %s2654_s5 = scalar_lea.hbm %s3196_s21, 16 }
   0xc   : > { %p2836_p2 = pnand %p2292_p0, %p536_p1  ;;  %s606_s4 = sshll.u32 %s2694_s30, 4  ;;  %s607_s4 = int_to_ptr.vmem [resolvable:$true] %s606_s4 }
   0xd   : > { %p2655_p6 = scmp.ne.s32.totalorder %s3196_s21, %s2654_s5  ;;  %p2661_p10 = scmp.lt.u32.totalorder %s2654_s5, %s3196_s21 }
   0xe   : > { %s3216_s29 = scalar_select %p2836_p2, 1, 0 }
   0xf   : > { %p2569_p4 = pneg %p2836_p2 }
  0x11   : > { %p2845_p5 = pnand %p3200_p3, %p2569_p4 }
  0x13   : > { %p2656_p7 = pneg %p2845_p5 }
  0x15   : > { %p2657_p8 = pnand %p2656_p7, %p2655_p6 }
  0x17   : > { %p2658_p9 = pneg %p2657_p8 }
  0x19   : > { %p2663_p11 = pnand %p2661_p10, %p2658_p9 }
  0x1b   : > { %2666 = shalt.err (!%p2663_p11)
}
  0x1c   : > { %s2667_s2 = scalar_lea.vmem %s607_s4, 16  ;;  %s2674_s27 = scalar_lea.vmem %s607_s4, 32 }
  0x1d   : > { %p2668_p12 = scmp.ne.s32.totalorder %s607_s4, %s2667_s2  ;;  %p2675_p1 = scmp.lt.s32.totalorder %s607_s4, %s607_s4 }
  0x1e   : > { %p2676_p4 = scmp.lt.s32.totalorder %s2674_s27, %s2667_s2 }
  0x1f   : > { %p2670_p13 = pnand %p2668_p12, %p2656_p7 }
  0x20   : > { %p2677_p3 = por %p2676_p4, %p2675_p1 }
  0x21   : > { %p2671_p0 = pneg %p2670_p13 }
  0x23   : > { %p2678_p2 = pnand %p2677_p3, %p2671_p0 }
  0x25   : > { %2681 = shalt.err (!%p2678_p2)
}
  0x26   : > { %2572 = dma.hbm_to_vmem [thread:$0]  (!%p2845_p5), %s3196_s21, 16, %s607_s4, [#allocation3]  }
  0x27   : > { %p3218_p6 = scmp.ne.s32.totalorder %s3216_s29, 0 }
  0x28   : > { %p3219_p8 = scmp.eq.s32.totalorder (!%p3218_p6), %s2832_s28, 0 }
  0x29   : > { %633 = sbr.rel (%p3218_p6) target bundleno = 4350 (0x10fe), region = 108 }
  0x30   : > { %2687 = dma.done.wait (%p3219_p8), [#allocation3], 16   ;;  %p3220_p7 = pmov %p3219_p8 }
  0x31   : > { %p697_p9 = scmp.lt.s32.totalorder %s2832_s28, 1  ;;  %v2695_v0 = vmov 0.0   ;;  %vm2696_vm0 = vmmov 0   ;;  %s3221_s1 = sld [smem:[#allocation7_spill]]  ;;  %vm742_vm1 = vcmask 261120   ;;  %vm790_vm2 = vcmask 64512  }
  0x32   : > { %2689 = vsyncadd (%p3220_p7), [#allocation3], 4294967280  ;;  %2409 = vmatprep.subr.bf16.mxu1 %v2695_v0  ;;  %2413 = vmatprep.mubr.msk.bf16.mxu1 %vm2696_vm0, %v2695_v0  ;;  %s3222_s6 = sld [smem:[#allocation5_spill]]  ;;  %s3223_s30 = sld [smem:[#allocation8_spill]]  ;;  %v713_v22 = vlaneseq  ;;  %vm854_vm4 = vcmask 1043456   ;;  %vm1241_vm5 = vcmask 130048  }
  0x33   : > { %s3236_s28 = smov (!%p697_p9, %s2832_s28), 1  ;;  %2423 = vmatprep.subr.bf16.mxu0 %v2695_v0  ;;  %2425 = vmatprep.mubr.msk.bf16.mxu0 %vm2696_vm0, %v2695_v0  ;;  %s2697_s23 = smov 120   ;;  %vm1243_vm6 = vcmask 195584   ;;  %vm2136_vm7 = vcmask 523264   ;;  %vm2211_vm8 = vcmask 257024  }
  0x34   : > { %s2879_s29 = sshll.u32 %s3236_s28, 2  ;;  %s3208_s4 = smov 96   ;;  %v714_v23 = vshrl.u32 %v713_v22, 7  ;;  %v716_v24 = vand.u32 127, %v713_v22 }
  0x35   : > { %s3207_s0 = smov 80   ;;  %s3202_s5 = smov 88  }
  0x36   : > { %s3203_s24 = smov 72   ;;  %vm717_vm3 = vcmp.gt.s32.totalorder %v716_v24, %v714_v23  ;;  %s2704_s26 = smov 56  }
  0x37   : > { %v2600_v1 = vld [vmem:[%s3221_s1] sm:$0xff]   ;;  %v2601_v2 = vld [vmem:[%s3221_s1 + $0x8] sm:$0xff]   ;;  %v718_v25 = vsel %vm717_vm3, -1e+09, %v2695_v0  ;;  %s2705_s2 = smov 64   ;;  %s2706_s28 = smov 40  }
  0x38   : > { %s700_s25 = scalar_lea.vmem %s3222_s6, %s2879_s29  ;;  %2410 = vmatpush3.bf16.msra.mxu1 %v2600_v1  ;;  %v2300_v4 = vld [vmem:[%s3223_s30] ss:$0 sm:$0xff]  ;;  %s2702_s6 = smov 112  }
  0x39   : > { %2411 = vmatprep.subr.bf16.mxu1 %v2695_v0  ;;  %v2892_v3 = vld [vmem:[%s700_s25] sm:$0xf]  ;;  %s2703_s25 = smov 104   ;;  %s2707_s27 = smov 48  }
  0x3a   : > { %s3206_s30 = smov 8  }
  0x3c   : > { %2412 = vmatpush3.bf16.msra.mxu1 %v2601_v2 }
  0x3d   : > { %2417 = vmatprep.subr.bf16.mxu1 %v2695_v0 }
  0x3f   : > { %2414 = vmatmul.mubr.msk.bf16.vlgmr.msra.gmra.mrb[0].mxu1 %vm742_vm1, %v2892_v3 }
  0x40   : > { %2419 = vmatprep.mubr.msk.bf16.mxu1 %vm2696_vm0, %v2695_v0 }
 0x112   : > { %v780_v5 = vpop.f32.mrb[0].mxu1 }
 0x113   : > { %v781_v6 = vadd.f32 %v2300_v4, %v780_v5  ;;  %v2415_v7 = vpop.f32.mrb[1].mxu1 }
 0x114   : > { %v783_v8 = vpop.f32.mrb[2].mxu1 }
 0x115   : > { %v2902_v9 = vpack.c.bf16 %v781_v6, %v781_v6  ;;  %v2416_v10 = vpop.f32.mrb[3].mxu1 }
 0x117   : > { %898 = vrot.lane.b32.xlu1 %v2902_v9, %s2697_s23  ;;  %788 = vrot.lane.b32.xlu0 %v2902_v9, %s3208_s4 }
 0x11b   : > { %1010 = vrot.lane.b32.xlu1 %v2902_v9, %s3207_s0  ;;  %900 = vrot.lane.b32.xlu0 %v2902_v9, %s3202_s5  ;;  %s3226_s0 = sld [smem:[#allocation6_spill]]  ;;  %s3232_s5 = smov 8  }
 0x11f   : > { %1120 = vrot.lane.b32.xlu1 %v2902_v9, %s3203_s24  ;;  %1008 = vrot.lane.b32.xlu0 %v2902_v9, %s2702_s6  ;;  %s3205_s24 = smov 16  }
 0x121   : > { %s704_s4 = scalar_lea.vmem %s3226_s0, %s2879_s29  ;;  %s3231_s0 = smov 88  }
 0x123   : > { %1118 = vrot.lane.b32.xlu0 %v2902_v9, %s2703_s25 }
 0x189   : > { %v789_v11 = vpop.permute.xlu0 %788  ;;  %v899_v14 = vpop.permute.xlu1 %898 }
 0x18a   : > { %v795_v12 = vsel %vm790_vm2, %v789_v11, 0 }
 0x18b   : > { %2418 = vmatpush3.bf16.xpose.msra.mxu1 %v795_v12 }
 0x18c   : > { %2429 = vmatprep.subr.bf16.mxu1 %v2695_v0 }
 0x18d   : > { %v901_v13 = vpop.permute.xlu0 %900  ;;  %v1011_v16 = vpop.permute.xlu1 %1010 }
 0x18e   : > { %v906_v15 = vsel %vm790_vm2, %v901_v13, 0  ;;  %v1016_v17 = vsel %vm790_vm2, %v1011_v16, 0 }
 0x191   : > { %v1121_v18 = vpop.permute.xlu1 %1120  ;;  %v1009_v19 = vpop.permute.xlu0 %1008 }
 0x192   : > { %2420 = vmatmul.mubr.msk.bf16.vlgmr.msra.gmra.mrb[4].mxu1 %vm790_vm2, %v2902_v9  ;;  %v1126_v20 = vsel %vm790_vm2, %v1121_v18, 0 }
 0x193   : > { %2430 = vmatpush3.bf16.xpose.msra.mxu1 %v906_v15  ;;  %2431 = vmatprep.mubr.msk.bf16.mxu1 %vm2696_vm0, %v2695_v0 }
 0x194   : > { %2441 = vmatprep.subr.bf16.mxu1 %v2695_v0 }
 0x195   : > { %v1119_v21 = vpop.permute.xlu0 %1118 }
 0x19a   : > { %2432 = vmatmul.mubr.msk.bf16.vlgmr.msra.gmra.mrb[8].mxu1 %vm790_vm2, %v899_v14 }
 0x19b   : > { %2442 = vmatpush3.bf16.xpose.msra.mxu1 %v1016_v17  ;;  %2443 = vmatprep.mubr.msk.bf16.mxu1 %vm2696_vm0, %v2695_v0 }
 0x19c   : > { %2453 = vmatprep.subr.bf16.mxu1 %v2695_v0 }
 0x1a2   : > { %2444 = vmatmul.mubr.msk.bf16.vlgmr.msra.gmra.mrb[12].mxu1 %vm790_vm2, %v1009_v19 }
 0x1a3   : > { %2454 = vmatpush3.bf16.xpose.msra.mxu1 %v1126_v20  ;;  %2455 = vmatprep.mubr.msk.bf16.mxu1 %vm2696_vm0, %v2695_v0 }
 0x1a4   : > { %2465 = vmatprep.subr.bf16.mxu1 %v2695_v0 }
 0x1aa   : > { %2456 = vmatmul.mubr.msk.bf16.vlgmr.msra.gmra.mrb[16].mxu1 %vm790_vm2, %v1119_v21 }
 0x1ab   : > { %2469 = vmatprep.mubr.msk.bf16.mxu1 %vm2696_vm0, %v2695_v0 }
 0x265   : > { %v831_v26 = vpop.f32.mrb[4].mxu1 }
 0x266   : > { %v832_v27 = vadd.f32 %v831_v26, %v718_v25  ;;  %v2421_v28 = vpop.f32.mrb[5].mxu1 }
 0x267   : > { %v834_v29 = vpop.f32.mrb[6].mxu1 }
 0x268   : > { %v2422_v30 = vpop.f32.mrb[7].mxu1  ;;  %v837_v31 = vsel %vm790_vm2, %v832_v27, -inf }
 0x269   : > { %838 = vmax.xlane.f32.xlu1 %v837_v31 }
 0x26d   : > { %v942_v32 = vpop.f32.mrb[8].mxu1 }
 0x26e   : > { %v943_v33 = vadd.f32 %v942_v32, %v718_v25  ;;  %v2433_v34 = vpop.f32.mrb[9].mxu1 }
 0x26f   : > { %v945_v35 = vpop.f32.mrb[10].mxu1 }
 0x270   : > { %v2434_v36 = vpop.f32.mrb[11].mxu1  ;;  %v948_v37 = vsel %vm790_vm2, %v943_v33, -inf }
 0x271   : > { %949 = vmax.xlane.f32.xlu0 %v948_v37 }
 0x275   : > { %v1052_v38 = vpop.f32.mrb[12].mxu1 }
 0x276   : > { %v1053_v39 = vadd.f32 %v1052_v38, %v718_v25  ;;  %v2445_v40 = vpop.f32.mrb[13].mxu1 }
 0x277   : > { %v1055_v41 = vpop.f32.mrb[14].mxu1 }
 0x278   : > { %v2446_v42 = vpop.f32.mrb[15].mxu1  ;;  %v1058_v43 = vsel %vm790_vm2, %v1053_v39, -inf }
 0x279   : > { %1059 = vmax.xlane.f32.xlu0 %v1058_v43 }
 0x27d   : > { %v1162_v44 = vpop.f32.mrb[16].mxu1 }
 0x27e   : > { %v1163_v45 = vadd.f32 %v1162_v44, %v718_v25  ;;  %v2457_v46 = vpop.f32.mrb[17].mxu1 }
 0x27f   : > { %v1165_v47 = vpop.f32.mrb[18].mxu1 }
 0x280   : > { %v2458_v48 = vpop.f32.mrb[19].mxu1  ;;  %v1168_v49 = vsel %vm790_vm2, %v1163_v45, -inf }
 0x281   : > { %1169 = vmax.xlane.f32.xlu1 %v1168_v49 }
 0x2f6   : > { %v839_v50 = vpop.xlane.xlu1 %838 }
 0x2f7   : > { %v840_v51 = vsub.f32 %v832_v27, %v839_v50 }
 0x2f9   : > { %v841_v52 = vmul.f32 1.442695, %v840_v51 }
 0x2fb   : > { %2616 = vpow2.f32 %v841_v52 }
 0x2fe   : > { %v950_v53 = vpop.xlane.xlu0 %949 }
 0x2ff   : > { %v951_v54 = vsub.f32 %v943_v33, %v950_v53 }
 0x301   : > { %v952_v55 = vmul.f32 1.442695, %v951_v54 }
 0x303   : > { %2618 = vpow2.f32 %v952_v55 }
 0x305   : > { %v2617_v56 = vpop.eup %2616 }
 0x306   : > { %v1060_v57 = vpop.xlane.xlu0 %1059  ;;  %v843_v58 = vsel %vm790_vm2, %v2617_v56, 0.0 }
 0x307   : > { %v1061_v59 = vsub.f32 %v1053_v39, %v1060_v57  ;;  %844 = vadd.xlane.f32.xlu0 %v843_v58  ;;  %v711_v58 = vunpack.c.l.bf16 %v2892_v3  ;;  %v2604_v3 = vld [vmem:[%s3185_s10] sm:$0xff]  }
 0x309   : > { %v1062_v60 = vmul.f32 1.442695, %v1061_v59 }
 0x30b   : > { %2620 = vpow2.f32 %v1062_v60 }
 0x30d   : > { %v2619_v61 = vpop.eup %2618 }
 0x30e   : > { %v954_v62 = vsel %vm790_vm2, %v2619_v61, 0.0  ;;  %v1170_v2 = vpop.xlane.xlu1 %1169 }
 0x30f   : > { %955 = vadd.xlane.f32.xlu1 %v954_v62  ;;  %v1171_v4 = vsub.f32 %v1163_v45, %v1170_v2 }
 0x311   : > { %v1172_v5 = vmul.f32 1.442695, %v1171_v4 }
 0x313   : > { %2622 = vpow2.f32 %v1172_v5 }
 0x315   : > { %v2621_v63 = vpop.eup %2620 }
 0x316   : > { %v1064_v1 = vsel %vm790_vm2, %v2621_v63, 0.0 }
 0x317   : > { %1065 = vadd.xlane.f32.xlu0 %v1064_v1 }
 0x31d   : > { %v2623_v6 = vpop.eup %2622 }
 0x31e   : > { %v1174_v7 = vsel %vm790_vm2, %v2623_v6, 0.0 }
 0x320   : > { %960 = vrot.lane.b32.xlu1 %v2902_v9, %s2704_s26  ;;  %s3204_s26 = smov 24  }
 0x32d   : > { %849 = vrot.lane.b32.xlu0 %v2902_v9, %s2705_s2 }
 0x331   : > { %1180 = vrot.lane.b32.xlu0 %v2902_v9, %s2706_s28  ;;  %s3224_s28 = sld [smem:[#allocation9_spill]] }
 0x337   : > { %v2602_v40 = vld [vmem:[%s3224_s28] sm:$0xff]   ;;  %v2603_v41 = vld [vmem:[%s3224_s28 + $0x8] sm:$0xff]  }
 0x338   : > { %2466 = vmatpush3.bf16.msra.mxu1 %v2602_v40 }
 0x339   : > { %2467 = vmatprep.subr.bf16.mxu1 %v2695_v0 }
 0x33c   : > { %2468 = vmatpush3.bf16.msra.mxu1 %v2603_v41 }
 0x33d   : > { %2481 = vmatprep.subr.bf16.mxu1 %v2695_v0 }
 0x344   : > { %1175 = vadd.xlane.f32.xlu1 %v1174_v7 }
 0x355   : > { %1070 = vrot.lane.b32.xlu1 %v2902_v9, %s2707_s27  ;;  %s3225_s27 = sld [smem:[#allocation10_spill]] }
 0x35b   : > { %v2312_v57 = vld [vmem:[%s3225_s27] ss:$0 sm:$0xff]  ;;  %s3233_s27 = smov 16  }
 0x394   : > { %v845_v8 = vpop.xlane.xlu0 %844 }
 0x395   : > { %2624 = vrcp.f32 %v845_v8 }
 0x39c   : > { %v956_v10 = vpop.xlane.xlu1 %955 }
 0x39d   : > { %2626 = vrcp.f32 %v956_v10  ;;  %v2605_v10 = vld [vmem:[%s3185_s10 + $0x8] sm:$0xff]  }
 0x39f   : > { %v2625_v11 = vpop.eup %2624 }
 0x3a0   : > { %v847_v13 = vmul.f32 %v2625_v11, %v2617_v56  ;;  %v961_v16 = vpop.permute.xlu1 %960  ;;  %v712_v11 = vld [vmem:[%s704_s4] sm:$0xf]  ;;  %s3234_s4 = smov 24  }
 0x3a1   : > { %v966_v19 = vsel %vm854_vm4, %v961_v16, 0 }
 0x3a2   : > { %v848_v17 = vpack.c.bf16 %v847_v13, %v847_v13  ;;  %v2607_v13 = vld [vmem:[%s3183_s8 + $0x8] sm:$0xff]  }
 0x3a4   : > { %v1066_v12 = vpop.xlane.xlu0 %1065 }
 0x3a5   : > { %2628 = vrcp.f32 %v1066_v12  ;;  %v2606_v12 = vld [vmem:[%s3183_s8] sm:$0xff]  }
 0x3a7   : > { %v2627_v18 = vpop.eup %2626 }
 0x3a8   : > { %v850_v14 = vpop.permute.xlu0 %849  ;;  %v958_v9 = vmul.f32 %v2627_v18, %v2619_v61 }
 0x3a9   : > { %v856_v15 = vsel %vm854_vm4, %v850_v14, 0 }
 0x3aa   : > { %2424 = vmatpush3.bf16.msra.mxu0 %v856_v15  ;;  %v959_v20 = vpack.c.bf16 %v958_v9, %v958_v9  ;;  %v2317_v9 = vld [vmem:[%s3182_s7] ss:$0 sm:$0xff] }
 0x3ab   : > { %2435 = vmatprep.subr.bf16.mxu0 %v2695_v0 }
 0x3ac   : > { %v1181_v26 = vpop.permute.xlu0 %1180 }
 0x3ad   : > { %2426 = vmatmul.mubr.msk.bf16.vlgmr.msra.gmra.mrb[0].mxu0 %vm790_vm2, %v848_v17  ;;  %v1186_v28 = vsel %vm854_vm4, %v1181_v26, 0 }
 0x3ae   : > { %2436 = vmatpush3.bf16.msra.mxu0 %v966_v19  ;;  %2437 = vmatprep.mubr.msk.bf16.mxu0 %vm2696_vm0, %v2695_v0 }
 0x3af   : > { %2447 = vmatprep.subr.bf16.mxu0 %v2695_v0  ;;  %v2629_v21 = vpop.eup %2628 }
 0x3b0   : > { %v1068_v23 = vmul.f32 %v2629_v21, %v2621_v63 }
 0x3b2   : > { %v1069_v27 = vpack.c.bf16 %v1068_v23, %v1068_v23  ;;  %v2322_v23 = vld [vmem:[%s3186_s11] ss:$0 sm:$0xff] }
 0x3b5   : > { %2438 = vmatmul.mubr.msk.bf16.vlgmr.msra.gmra.mrb[4].mxu0 %vm790_vm2, %v959_v20 }
 0x3b6   : > { %2449 = vmatprep.mubr.msk.bf16.mxu0 %vm2696_vm0, %v2695_v0 }
 0x3d1   : > { %v1176_v22 = vpop.xlane.xlu1 %1175 }
 0x3d2   : > { %2630 = vrcp.f32 %v1176_v22 }
 0x3d5   : > { %v1071_v24 = vpop.permute.xlu1 %1070 }
 0x3d6   : > { %v1076_v25 = vsel %vm854_vm4, %v1071_v24, 0 }
 0x3d7   : > { %2448 = vmatpush3.bf16.msra.mxu0 %v1076_v25 }
 0x3d8   : > { %2459 = vmatprep.subr.bf16.mxu0 %v2695_v0 }
 0x3da   : > { %2450 = vmatmul.mubr.msk.bf16.vlgmr.msra.gmra.mrb[8].mxu0 %vm790_vm2, %v1069_v27 }
 0x3db   : > { %2460 = vmatpush3.bf16.msra.mxu0 %v1186_v28  ;;  %2461 = vmatprep.mubr.msk.bf16.mxu0 %vm2696_vm0, %v2695_v0 }
 0x3dc   : > { %v2631_v29 = vpop.eup %2630  ;;  %2473 = vmatprep.subr.bf16.mxu0 %v2695_v0 }
 0x3dd   : > { %v1178_v30 = vmul.f32 %v2631_v29, %v2623_v6 }
 0x3df   : > { %v1179_v31 = vpack.c.bf16 %v1178_v30, %v1178_v30 }
 0x3e2   : > { %2462 = vmatmul.mubr.msk.bf16.vlgmr.msra.gmra.mrb[12].mxu0 %vm790_vm2, %v1179_v31  ;;  %v2318_v31 = vld [vmem:[%s3184_s9] ss:$0 sm:$0xff] }
 0x3e3   : > { %2477 = vmatprep.mubr.msk.bf16.mxu0 %vm2696_vm0, %v2695_v0  ;;  %2474 = vmatpush3.bf16.msra.mxu0 %v2606_v12 }
 0x3e4   : > { %2475 = vmatprep.subr.bf16.mxu0 %v2695_v0 }
 0x3e7   : > { %2476 = vmatpush3.bf16.msra.mxu0 %v2607_v13 }
 0x3e8   : > { %2489 = vmatprep.subr.bf16.mxu0 %v2695_v0 }
 0x480   : > { %v892_v32 = vpop.f32.mrb[0].mxu0 }
 0x481   : > { %v2427_v33 = vpop.f32.mrb[1].mxu0 }
 0x482   : > { %v895_v34 = vpop.f32.mrb[2].mxu0 }
 0x483   : > { %v2428_v35 = vpop.f32.mrb[3].mxu0 }
 0x488   : > { %v1002_v36 = vpop.f32.mrb[4].mxu0 }
 0x489   : > { %1229 = vrot.lane.b32.xlu1 %v1002_v36, %s3206_s30  ;;  %v2439_v37 = vpop.f32.mrb[5].mxu0 }
 0x48a   : > { %v1005_v38 = vpop.f32.mrb[6].mxu0 }
 0x48b   : > { %v2440_v39 = vpop.f32.mrb[7].mxu0 }
 0x4ad   : > { %v1112_v42 = vpop.f32.mrb[8].mxu0 }
 0x4ae   : > { %1233 = vrot.lane.b32.xlu0 %v1112_v42, %s3205_s24  ;;  %v2451_v43 = vpop.f32.mrb[9].mxu0  ;;  %s3227_s24 = sld [smem:[#allocation11_spill]] }
 0x4af   : > { %v1115_v44 = vpop.f32.mrb[10].mxu0 }
 0x4b0   : > { %v2452_v45 = vpop.f32.mrb[11].mxu0 }
 0x4b4   : > { %v2316_v18 = vld [vmem:[%s3227_s24] ss:$0 sm:$0xff]  ;;  %s708_s24 = scalar_lea.vmem %s3197_s22, %s2879_s29 }
 0x4b5   : > { %v1222_v46 = vpop.f32.mrb[12].mxu0 }
 0x4b6   : > { %1237 = vrot.lane.b32.xlu1 %v1222_v46, %s3204_s26  ;;  %v2463_v47 = vpop.f32.mrb[13].mxu0 }
 0x4b7   : > { %v1225_v48 = vpop.f32.mrb[14].mxu0 }
 0x4b8   : > { %v2464_v49 = vpop.f32.mrb[15].mxu0 }
 0x4fb   : > { %v1230_v50 = vpop.permute.xlu1 %1229 }
 0x4fc   : > { %v1240_v52 = vsel %vm790_vm2, %v892_v32, %v1230_v50 }
 0x520   : > { %v1234_v51 = vpop.permute.xlu0 %1233 }
 0x521   : > { %v1242_v53 = vsel %vm1241_vm5, %v1240_v52, %v1234_v51 }
 0x528   : > { %v1238_v54 = vpop.permute.xlu1 %1237 }
 0x529   : > { %v1244_v55 = vsel %vm1243_vm6, %v1242_v53, %v1238_v54 }
 0x52a   : > { %v1245_v56 = vpack.c.bf16 %v1244_v55, %v1244_v55 }
 0x52c   : > { %2470 = vmatmul.mubr.msk.bf16.vlgmr.msra.gmra.mrb[20].mxu1 %vm742_vm1, %v1245_v56 }
 0x52d   : > { %2485 = vmatprep.mubr.msk.bf16.mxu1 %vm2696_vm0, %v2695_v0  ;;  %2482 = vmatpush3.bf16.msra.mxu1 %v2604_v3 }
 0x52e   : > { %2483 = vmatprep.subr.bf16.mxu1 %v2695_v0 }
 0x531   : > { %2484 = vmatpush3.bf16.msra.mxu1 %v2605_v10 }
 0x532   : > { %2495 = vmatprep.subr.bf16.mxu1 %v2695_v0 }
 0x534   : > { %2486 = vmatmul.mubr.msk.bf16.vlgmr.msra.gmra.mrb[24].mxu1 %vm742_vm1, %v712_v11 }
 0x535   : > { %2497 = vmatprep.mubr.msk.bf16.mxu1 %vm2696_vm0, %v2695_v0 }
 0x5ff   : > { %v1306_v59 = vpop.f32.mrb[20].mxu1 }
 0x600   : > { %v1307_v60 = vadd.f32 %v2312_v57, %v1306_v59  ;;  %v2471_v61 = vpop.f32.mrb[21].mxu1 }
 0x601   : > { %v1309_v62 = vpop.f32.mrb[22].mxu1 }
 0x602   : > { %v2472_v63 = vpop.f32.mrb[23].mxu1  ;;  %v1312_v1 = vadd.f32 %v1307_v60, %v711_v58 }
 0x604   : > { %v1315_v2 = vsel %vm742_vm1, %v1312_v1, 0.0 }
 0x605   : > { %1316 = vadd.xlane.f32.xlu0 %v1315_v2 }
 0x607   : > { %v1470_v24 = vpop.f32.mrb[24].mxu1 }
 0x608   : > { %v1471_v25 = vadd.f32 %v2322_v23, %v1470_v24  ;;  %v2487_v26 = vpop.f32.mrb[25].mxu1 }
 0x609   : > { %v1473_v27 = vpop.f32.mrb[26].mxu1 }
 0x60a   : > { %v3034_v28 = vpack.c.bf16 %v1471_v25, %v1471_v25  ;;  %v2488_v29 = vpop.f32.mrb[27].mxu1 }
 0x60c   : > { %v1482_v30 = vsel %vm790_vm2, %v3034_v28, 0 }
 0x61b   : > { %1588 = vrot.lane.b32.xlu0 %v3034_v28, %s2697_s23 }
 0x61f   : > { %1698 = vrot.lane.b32.xlu0 %v3034_v28, %s2702_s6 }
 0x623   : > { %1808 = vrot.lane.b32.xlu0 %v3034_v28, %s2703_s25 }
 0x692   : > { %v1317_v4 = vpop.xlane.xlu0 %1316 }
 0x693   : > { %v1319_v5 = vmul.f32 0.03125, %v1317_v4 }
 0x695   : > { %v1320_v6 = vsub.f32 %v1312_v1, %v1319_v5 }
 0x696   : > { %v1589_v36 = vpop.permute.xlu0 %1588 }
 0x697   : > { %v1321_v7 = vmul.f32 %v1320_v6, %v1320_v6  ;;  %v1594_v39 = vsel %vm790_vm2, %v1589_v36, 0 }
 0x699   : > { %v1322_v8 = vsel %vm742_vm1, %v1321_v7, 0.0 }
 0x69a   : > { %1323 = vadd.xlane.f32.xlu1 %v1322_v8  ;;  %v1699_v40 = vpop.permute.xlu0 %1698 }
 0x69b   : > { %v1704_v42 = vsel %vm790_vm2, %v1699_v40, 0 }
 0x69e   : > { %v1809_v43 = vpop.permute.xlu0 %1808 }
 0x69f   : > { %v1814_v45 = vsel %vm790_vm2, %v1809_v43, 0 }
 0x727   : > { %v1324_v14 = vpop.xlane.xlu1 %1323 }
 0x728   : > { %v1325_v15 = vmul.f32 0.03125, %v1324_v14 }
 0x72a   : > { %v1326_v16 = vadd.f32 1e-05, %v1325_v15 }
 0x72c   : > { %2632 = vrsqrt.f32 %v1326_v16 }
 0x736   : > { %v2633_v17 = vpop.eup %2632 }
 0x737   : > { %v1328_v19 = vmul.f32 %v2633_v17, %v1320_v6 }
 0x739   : > { %v1335_v20 = vmul.f32 %v2316_v18, %v1328_v19 }
 0x73b   : > { %v3024_v21 = vadd.f32 %v2317_v9, %v1335_v20 }
 0x73d   : > { %v1343_v22 = vpack.c.bf16 %v3024_v21, %v3024_v21 }
 0x73f   : > { %2478 = vmatmul.mubr.msk.bf16.vlgmr.msra.gmra.mrb[16].mxu0 %vm742_vm1, %v1343_v22 }
 0x740   : > { %2491 = vmatprep.mubr.msk.bf16.mxu0 %vm2696_vm0, %v2695_v0  ;;  %2490 = vmatpush3.bf16.xpose.msra.mxu0 %v1482_v30 }
 0x741   : > { %2501 = vmatprep.subr.bf16.mxu0 %v2695_v0 }
 0x812   : > { %v1404_v32 = vpop.f32.mrb[16].mxu0 }
 0x813   : > { %v1405_v33 = vadd.f32 %v2318_v31, %v1404_v32  ;;  %v2479_v34 = vpop.f32.mrb[17].mxu0 }
 0x814   : > { %v1407_v35 = vpop.f32.mrb[18].mxu0 }
 0x815   : > { %v1476_v37 = vpack.c.bf16 %v1405_v33, %v1405_v33  ;;  %v2480_v38 = vpop.f32.mrb[19].mxu0 }
 0x817   : > { %1586 = vrot.lane.b32.xlu1 %v1476_v37, %s2697_s23  ;;  %2492 = vmatmul.mubr.msk.bf16.vlgmr.msra.gmra.mrb[20].mxu0 %vm790_vm2, %v1476_v37  ;;  %s3228_s23 = smov 96  }
 0x818   : > { %2502 = vmatpush3.bf16.xpose.msra.mxu0 %v1594_v39  ;;  %2503 = vmatprep.mubr.msk.bf16.mxu0 %vm2696_vm0, %v2695_v0 }
 0x819   : > { %2513 = vmatprep.subr.bf16.mxu0 %v2695_v0 }
 0x81b   : > { %1696 = vrot.lane.b32.xlu1 %v1476_v37, %s2702_s6  ;;  %s3229_s6 = smov 80  }
 0x81f   : > { %1806 = vrot.lane.b32.xlu1 %v1476_v37, %s2703_s25  ;;  %s3230_s25 = smov 72  }
 0x889   : > { %v1587_v41 = vpop.permute.xlu1 %1586 }
 0x88a   : > { %2504 = vmatmul.mubr.msk.bf16.vlgmr.msra.gmra.mrb[24].mxu0 %vm790_vm2, %v1587_v41 }
 0x88b   : > { %2514 = vmatpush3.bf16.xpose.msra.mxu0 %v1704_v42  ;;  %2515 = vmatprep.mubr.msk.bf16.mxu0 %vm2696_vm0, %v2695_v0 }
 0x88c   : > { %2525 = vmatprep.subr.bf16.mxu0 %v2695_v0 }
 0x88d   : > { %v1697_v44 = vpop.permute.xlu1 %1696 }
 0x891   : > { %v1807_v46 = vpop.permute.xlu1 %1806 }
 0x892   : > { %2516 = vmatmul.mubr.msk.bf16.vlgmr.msra.gmra.mrb[28].mxu0 %vm790_vm2, %v1697_v44 }
 0x893   : > { %2526 = vmatpush3.bf16.xpose.msra.mxu0 %v1814_v45  ;;  %2527 = vmatprep.mubr.msk.bf16.mxu0 %vm2696_vm0, %v2695_v0 }
 0x894   : > { %2537 = vmatprep.subr.bf16.mxu0 %v2695_v0 }
 0x89a   : > { %2528 = vmatmul.mubr.msk.bf16.vlgmr.msra.gmra.mrb[32].mxu0 %vm790_vm2, %v1807_v46 }
 0x89b   : > { %2541 = vmatprep.mubr.msk.bf16.mxu0 %vm2696_vm0, %v2695_v0 }
 0x8ea   : > { %v1518_v47 = vpop.f32.mrb[20].mxu0 }
 0x8eb   : > { %v2493_v48 = vpop.f32.mrb[21].mxu0  ;;  %v1524_v49 = vsel %vm790_vm2, %v1518_v47, -inf }
 0x8ec   : > { %1525 = vmax.xlane.f32.xlu0 %v1524_v49  ;;  %v1521_v50 = vpop.f32.mrb[22].mxu0 }
 0x8ed   : > { %v2494_v51 = vpop.f32.mrb[23].mxu0 }
 0x95d   : > { %v1630_v52 = vpop.f32.mrb[24].mxu0 }
 0x95e   : > { %v2505_v53 = vpop.f32.mrb[25].mxu0  ;;  %v1636_v54 = vsel %vm790_vm2, %v1630_v52, -inf }
 0x95f   : > { %1637 = vmax.xlane.f32.xlu1 %v1636_v54  ;;  %v1633_v55 = vpop.f32.mrb[26].mxu0  ;;  %v2608_v53 = vld [vmem:[%s3187_s12] sm:$0xff]  }
 0x960   : > { %v2506_v56 = vpop.f32.mrb[27].mxu0  ;;  %2538 = vmatpush3.bf16.msra.mxu0 %v2608_v53 }
 0x961   : > { %2539 = vmatprep.subr.bf16.mxu0 %v2695_v0 }
 0x965   : > { %v1740_v57 = vpop.f32.mrb[28].mxu0 }
 0x966   : > { %v2517_v58 = vpop.f32.mrb[29].mxu0  ;;  %v1746_v59 = vsel %vm790_vm2, %v1740_v57, -inf }
 0x967   : > { %1747 = vmax.xlane.f32.xlu0 %v1746_v59  ;;  %v1743_v60 = vpop.f32.mrb[30].mxu0  ;;  %v2609_v58 = vld [vmem:[%s3187_s12 + $0x8] sm:$0xff]  }
 0x968   : > { %v2518_v61 = vpop.f32.mrb[31].mxu0  ;;  %2540 = vmatpush3.bf16.msra.mxu0 %v2609_v58 }
 0x969   : > { %2553 = vmatprep.subr.bf16.mxu0 %v2695_v0 }
 0x96d   : > { %v1850_v62 = vpop.f32.mrb[32].mxu0 }
 0x96e   : > { %v2529_v63 = vpop.f32.mrb[33].mxu0  ;;  %v1856_v1 = vsel %vm790_vm2, %v1850_v62, -inf }
 0x96f   : > { %1857 = vmax.xlane.f32.xlu0 %v1856_v1  ;;  %v1853_v2 = vpop.f32.mrb[34].mxu0 }
 0x970   : > { %v2530_v4 = vpop.f32.mrb[35].mxu0 }
 0x979   : > { %v1526_v5 = vpop.xlane.xlu0 %1525 }
 0x97a   : > { %v1527_v6 = vsub.f32 %v1518_v47, %v1526_v5 }
 0x97c   : > { %v1528_v7 = vmul.f32 1.442695, %v1527_v6 }
 0x97e   : > { %2634 = vpow2.f32 %v1528_v7 }
 0x988   : > { %v2635_v8 = vpop.eup %2634 }
 0x989   : > { %v1530_v3 = vsel %vm790_vm2, %v2635_v8, 0.0 }
 0x98a   : > { %1531 = vadd.xlane.f32.xlu1 %v1530_v3 }
 0x99b   : > { %1537 = vrot.lane.b32.xlu1 %v3034_v28, %s3228_s23 }
 0x9ec   : > { %v1638_v10 = vpop.xlane.xlu1 %1637 }
 0x9ed   : > { %v1639_v11 = vsub.f32 %v1630_v52, %v1638_v10 }
 0x9ef   : > { %v1640_v12 = vmul.f32 1.442695, %v1639_v11 }
 0x9f1   : > { %2636 = vpow2.f32 %v1640_v12  ;;  %v2334_v12 = vld [vmem:[%s3188_s13] ss:$0 sm:$0xff] }
 0x9f4   : > { %v1748_v13 = vpop.xlane.xlu0 %1747 }
 0x9f5   : > { %v1749_v14 = vsub.f32 %v1740_v57, %v1748_v13 }
 0x9f7   : > { %v1750_v15 = vmul.f32 1.442695, %v1749_v14 }
 0x9f9   : > { %2638 = vpow2.f32 %v1750_v15 }
 0x9fb   : > { %v2637_v16 = vpop.eup %2636 }
 0x9fc   : > { %v1858_v17 = vpop.xlane.xlu0 %1857  ;;  %v1642_v18 = vsel %vm790_vm2, %v2637_v16, 0.0 }
 0x9fd   : > { %v1859_v19 = vsub.f32 %v1850_v62, %v1858_v17  ;;  %1643 = vadd.xlane.f32.xlu0 %v1642_v18 }
 0x9ff   : > { %v1860_v9 = vmul.f32 1.442695, %v1859_v19 }
 0xa01   : > { %2640 = vpow2.f32 %v1860_v9 }
 0xa03   : > { %v2639_v20 = vpop.eup %2638 }
 0xa04   : > { %v1752_v22 = vsel %vm790_vm2, %v2639_v20, 0.0 }
 0xa05   : > { %1753 = vadd.xlane.f32.xlu1 %v1752_v22 }
 0xa0b   : > { %v2641_v23 = vpop.eup %2640 }
 0xa0c   : > { %v1862_v24 = vsel %vm790_vm2, %v2641_v23, 0.0 }
 0xa0d   : > { %1863 = vadd.xlane.f32.xlu0 %v1862_v24 }
 0xa16   : > { %1758 = vrot.lane.b32.xlu1 %v3034_v28, %s3229_s6 }
 0xa17   : > { %v1532_v25 = vpop.xlane.xlu1 %1531 }
 0xa18   : > { %2642 = vrcp.f32 %v1532_v25  ;;  %v2610_v25 = vld [vmem:[%s3191_s16] sm:$0xff]  }
 0xa1a   : > { %1868 = vrot.lane.b32.xlu1 %v3034_v28, %s3230_s25 }
 0xa1b   : > { %v1538_v26 = vpop.permute.xlu1 %1537 }
 0xa1c   : > { %v1543_v27 = vsel %vm854_vm4, %v1538_v26, 0  ;;  %v2611_v26 = vld [vmem:[%s3191_s16 + $0x8] sm:$0xff]  }
 0xa1d   : > { %2496 = vmatpush3.bf16.msra.mxu1 %v1543_v27  ;;  %v2613_v27 = vld [vmem:[%s3193_s18 + $0x8] sm:$0xff]  }
 0xa1e   : > { %2507 = vmatprep.subr.bf16.mxu1 %v2695_v0 }
 0xa22   : > { %v2643_v29 = vpop.eup %2642 }
 0xa23   : > { %v1534_v30 = vmul.f32 %v2643_v29, %v2635_v8  ;;  %1648 = vrot.lane.b32.xlu0 %v3034_v28, %s3231_s0 }
 0xa25   : > { %v1535_v31 = vpack.c.bf16 %v1534_v30, %v1534_v30 }
 0xa27   : > { %2498 = vmatmul.mubr.msk.bf16.vlgmr.msra.gmra.mrb[28].mxu1 %vm790_vm2, %v1535_v31 }
 0xa28   : > { %2509 = vmatprep.mubr.msk.bf16.mxu1 %vm2696_vm0, %v2695_v0 }
 0xa8a   : > { %v1644_v32 = vpop.xlane.xlu0 %1643 }
 0xa8b   : > { %2644 = vrcp.f32 %v1644_v32 }
 0xa92   : > { %v1754_v33 = vpop.xlane.xlu1 %1753 }
 0xa93   : > { %2646 = vrcp.f32 %v1754_v33  ;;  %v2338_v33 = vld [vmem:[%s3189_s14] ss:$0 sm:$0xff] }
 0xa95   : > { %v2645_v34 = vpop.eup %2644 }
 0xa96   : > { %v1646_v36 = vmul.f32 %v2645_v34, %v2637_v16  ;;  %v1759_v39 = vpop.permute.xlu1 %1758 }
 0xa97   : > { %v1764_v41 = vsel %vm854_vm4, %v1759_v39, 0  ;;  %v2614_v39 = vld [vmem:[%s3193_s18 + $0x10] sm:$0xff]  }
 0xa98   : > { %v1647_v28 = vpack.c.bf16 %v1646_v36, %v1646_v36 }
 0xa9a   : > { %v1864_v35 = vpop.xlane.xlu0 %1863  ;;  %v1869_v43 = vpop.permute.xlu1 %1868 }
 0xa9b   : > { %2648 = vrcp.f32 %v1864_v35  ;;  %v1874_v46 = vsel %vm854_vm4, %v1869_v43, 0  ;;  %v2339_v35 = vld [vmem:[%s3190_s15] ss:$0 sm:$0xff] }
 0xa9d   : > { %v2647_v40 = vpop.eup %2646 }
 0xa9e   : > { %v1649_v37 = vpop.permute.xlu0 %1648  ;;  %v1756_v42 = vmul.f32 %v2647_v40, %v2639_v20  ;;  %v2340_v40 = vld [vmem:[%s3192_s17] ss:$0 sm:$0xff] }
 0xa9f   : > { %v1654_v38 = vsel %vm854_vm4, %v1649_v37, 0 }
 0xaa0   : > { %2508 = vmatpush3.bf16.msra.mxu1 %v1654_v38  ;;  %v1757_v44 = vpack.c.bf16 %v1756_v42, %v1756_v42 }
 0xaa1   : > { %2519 = vmatprep.subr.bf16.mxu1 %v2695_v0 }
 0xaa3   : > { %2510 = vmatmul.mubr.msk.bf16.vlgmr.msra.gmra.mrb[32].mxu1 %vm790_vm2, %v1647_v28  ;;  %v2615_v28 = vld [vmem:[%s3193_s18 + $0x18] sm:$0xff]  }
 0xaa4   : > { %2520 = vmatpush3.bf16.msra.mxu1 %v1764_v41  ;;  %2521 = vmatprep.mubr.msk.bf16.mxu1 %vm2696_vm0, %v2695_v0 }
 0xaa5   : > { %2531 = vmatprep.subr.bf16.mxu1 %v2695_v0  ;;  %v2649_v45 = vpop.eup %2648 }
 0xaa6   : > { %v1866_v47 = vmul.f32 %v2649_v45, %v2641_v23 }
 0xaa8   : > { %v1867_v48 = vpack.c.bf16 %v1866_v47, %v1866_v47 }
 0xaab   : > { %2522 = vmatmul.mubr.msk.bf16.vlgmr.msra.gmra.mrb[36].mxu1 %vm790_vm2, %v1757_v44 }
 0xaac   : > { %2532 = vmatpush3.bf16.msra.mxu1 %v1874_v46  ;;  %2533 = vmatprep.mubr.msk.bf16.mxu1 %vm2696_vm0, %v2695_v0 }
 0xaad   : > { %2545 = vmatprep.subr.bf16.mxu1 %v2695_v0 }
 0xab3   : > { %2534 = vmatmul.mubr.msk.bf16.vlgmr.msra.gmra.mrb[40].mxu1 %vm790_vm2, %v1867_v48 }
 0xab4   : > { %2549 = vmatprep.mubr.msk.bf16.mxu1 %vm2696_vm0, %v2695_v0  ;;  %2546 = vmatpush3.bf16.msra.mxu1 %v2610_v25 }
 0xab5   : > { %2547 = vmatprep.subr.bf16.mxu1 %v2695_v0 }
 0xab8   : > { %2548 = vmatpush3.bf16.msra.mxu1 %v2611_v26 }
 0xafa   : > { %v1579_v49 = vpop.f32.mrb[28].mxu1 }
 0xafb   : > { %v2499_v50 = vpop.f32.mrb[29].mxu1 }
 0xafc   : > { %v1582_v51 = vpop.f32.mrb[30].mxu1 }
 0xafd   : > { %v2500_v52 = vpop.f32.mrb[31].mxu1 }
 0xb76   : > { %v1690_v54 = vpop.f32.mrb[32].mxu1 }
 0xb77   : > { %1917 = vrot.lane.b32.xlu0 %v1690_v54, %s3232_s5  ;;  %v2511_v55 = vpop.f32.mrb[33].mxu1 }
 0xb78   : > { %v1693_v56 = vpop.f32.mrb[34].mxu1 }
 0xb79   : > { %v2512_v57 = vpop.f32.mrb[35].mxu1 }
 0xb7e   : > { %v1800_v59 = vpop.f32.mrb[36].mxu1 }
 0xb7f   : > { %1921 = vrot.lane.b32.xlu1 %v1800_v59, %s3233_s27  ;;  %v2523_v60 = vpop.f32.mrb[37].mxu1 }
 0xb80   : > { %v1803_v61 = vpop.f32.mrb[38].mxu1 }
 0xb81   : > { %v2524_v62 = vpop.f32.mrb[39].mxu1 }
 0xb86   : > { %v1910_v63 = vpop.f32.mrb[40].mxu1 }
 0xb87   : > { %1925 = vrot.lane.b32.xlu0 %v1910_v63, %s3234_s4  ;;  %v2535_v1 = vpop.f32.mrb[41].mxu1 }
 0xb88   : > { %v1913_v2 = vpop.f32.mrb[42].mxu1  ;;  %v2350_v1 = vld [vmem:[%s3195_s20] ss:$0 sm:$0xff] }
 0xb89   : > { %v2536_v4 = vpop.f32.mrb[43].mxu1 }
 0xb8a   : > { %v2351_v4 = vld [vmem:[#allocation2] ss:$0 sm:$0xff] }
 0xbe9   : > { %v1918_v5 = vpop.permute.xlu0 %1917 }
 0xbea   : > { %v1928_v7 = vsel %vm790_vm2, %v1579_v49, %v1918_v5 }
 0xbf1   : > { %v1922_v6 = vpop.permute.xlu1 %1921 }
 0xbf2   : > { %v1929_v8 = vsel %vm1241_vm5, %v1928_v7, %v1922_v6 }
 0xbf9   : > { %v1926_v3 = vpop.permute.xlu0 %1925 }
 0xbfa   : > { %v1930_v10 = vsel %vm1243_vm6, %v1929_v8, %v1926_v3 }
 0xbfb   : > { %v1931_v11 = vpack.c.bf16 %v1930_v10, %v1930_v10 }
 0xbfd   : > { %2542 = vmatmul.mubr.msk.bf16.vlgmr.msra.gmra.mrb[36].mxu0 %vm742_vm1, %v1931_v11 }
 0xbfe   : > { %2561 = vmatprep.mubr.msk.bf16.mxu0 %vm2696_vm0, %v2695_v0 }
 0xcd0   : > { %v1992_v13 = vpop.f32.mrb[36].mxu0 }
 0xcd1   : > { %v1993_v14 = vadd.f32 %v2334_v12, %v1992_v13  ;;  %v2543_v15 = vpop.f32.mrb[37].mxu0 }
 0xcd2   : > { %v1995_v16 = vpop.f32.mrb[38].mxu0 }
 0xcd3   : > { %v2544_v17 = vpop.f32.mrb[39].mxu0  ;;  %v1998_v18 = vadd.f32 %v1993_v14, %v3024_v21  ;;  %v2612_v21 = vld [vmem:[%s3193_s18] sm:$0xff]  }
 0xcd4   : > { %2554 = vmatpush3.bf16.msra.mxu0 %v2612_v21 }
 0xcd5   : > { %v2001_v19 = vsel %vm742_vm1, %v1998_v18, 0.0  ;;  %2555 = vmatprep.subr.bf16.mxu0 %v2695_v0 }
 0xcd6   : > { %2002 = vadd.xlane.f32.xlu1 %v2001_v19 }
 0xcd8   : > { %2556 = vmatpush3.bf16.msra.mxu0 %v2613_v27 }
 0xcd9   : > { %2557 = vmatprep.subr.bf16.mxu0 %v2695_v0 }
 0xcdc   : > { %2558 = vmatpush3.bf16.msra.mxu0 %v2614_v39 }
 0xcdd   : > { %2559 = vmatprep.subr.bf16.mxu0 %v2695_v0  ;;  %v2344_v0 = vld [vmem:[%s3194_s19] ss:$0 sm:$0xff] }
 0xce0   : > { %2560 = vmatpush3.bf16.msra.mxu0 %v2615_v28 }
 0xd63   : > { %v2003_v9 = vpop.xlane.xlu1 %2002 }
 0xd64   : > { %v2004_v20 = vmul.f32 0.03125, %v2003_v9 }
 0xd66   : > { %v2005_v22 = vsub.f32 %v1998_v18, %v2004_v20 }
 0xd68   : > { %v2006_v23 = vmul.f32 %v2005_v22, %v2005_v22 }
 0xd6a   : > { %v2007_v24 = vsel %vm742_vm1, %v2006_v23, 0.0 }
 0xd6b   : > { %2008 = vadd.xlane.f32.xlu0 %v2007_v24 }
 0xdf8   : > { %v2009_v29 = vpop.xlane.xlu0 %2008 }
 0xdf9   : > { %v2010_v30 = vmul.f32 0.03125, %v2009_v29 }
 0xdfb   : > { %v2011_v31 = vadd.f32 1e-05, %v2010_v30 }
 0xdfd   : > { %2650 = vrsqrt.f32 %v2011_v31 }
 0xe07   : > { %v2651_v32 = vpop.eup %2650 }
 0xe08   : > { %v2013_v34 = vmul.f32 %v2651_v32, %v2005_v22 }
 0xe0a   : > { %v2020_v36 = vmul.f32 %v2338_v33, %v2013_v34 }
 0xe0c   : > { %v2027_v37 = vadd.f32 %v2339_v35, %v2020_v36 }
 0xe0e   : > { %v2028_v38 = vpack.c.bf16 %v2027_v37, %v2027_v37 }
 0xe10   : > { %2550 = vmatmul.mubr.msk.bf16.vlgmr.msra.gmra.mrb[44].mxu1 %vm742_vm1, %v2028_v38 }
 0xee3   : > { %v2089_v41 = vpop.f32.mrb[44].mxu1 }
 0xee4   : > { %v2090_v42 = vadd.f32 %v2340_v40, %v2089_v41  ;;  %v2551_v43 = vpop.f32.mrb[45].mxu1 }
 0xee5   : > { %v2092_v44 = vpop.f32.mrb[46].mxu1 }
 0xee6   : > { %v2095_v45 = vmax.f32 %v2090_v42, 0.0  ;;  %v2552_v46 = vpop.f32.mrb[47].mxu1 }
 0xee8   : > { %v2096_v47 = vpack.c.bf16 %v2095_v45, %v2095_v45 }
 0xeea   : > { %2562 = vmatmul.mubr.msk.bf16.vlgmr.msra.gmra.mrb[40].mxu0 %vm2136_vm7, %v2096_v47 }
 0xfbd   : > { %v2174_v48 = vpop.f32.mrb[40].mxu0 }
 0xfbe   : > { %v2175_v49 = vadd.f32 %v2344_v0, %v2174_v48  ;;  %v2563_v50 = vpop.f32.mrb[41].mxu0 }
 0xfbf   : > { %v2177_v51 = vpop.f32.mrb[42].mxu0 }
 0xfc0   : > { %v2564_v52 = vpop.f32.mrb[43].mxu0  ;;  %v2180_v53 = vadd.f32 %v2175_v49, %v2027_v37 }
 0xfc2   : > { %v2183_v54 = vsel %vm742_vm1, %v2180_v53, 0.0 }
 0xfc3   : > { %2184 = vadd.xlane.f32.xlu0 %v2183_v54 }
0x1050   : > { %v2185_v55 = vpop.xlane.xlu0 %2184 }
0x1051   : > { %v2186_v56 = vmul.f32 0.03125, %v2185_v55 }
0x1053   : > { %v2187_v57 = vsub.f32 %v2180_v53, %v2186_v56 }
0x1055   : > { %v2188_v58 = vmul.f32 %v2187_v57, %v2187_v57 }
0x1057   : > { %v2189_v59 = vsel %vm742_vm1, %v2188_v58, 0.0 }
0x1058   : > { %2190 = vadd.xlane.f32.xlu1 %v2189_v59 }
0x10e5   : > { %v2191_v60 = vpop.xlane.xlu1 %2190 }
0x10e6   : > { %v2192_v61 = vmul.f32 0.03125, %v2191_v60 }
0x10e8   : > { %v2193_v62 = vadd.f32 1e-05, %v2192_v61 }
0x10ea   : > { %2652 = vrsqrt.f32 %v2193_v62 }
0x10f4   : > { %v2653_v63 = vpop.eup %2652 }
0x10f5   : > { %v2195_v2 = vmul.f32 %v2653_v63, %v2187_v57 }
0x10f7   : > { %v2202_v5 = vmul.f32 %v2350_v1, %v2195_v2 }
0x10f9   : > { %v2209_v6 = vadd.f32 %v2351_v4, %v2202_v5 }
0x10fb   : > { %v2210_v7 = vpack.c.bf16 %v2209_v6, %v2209_v6 }
0x10fd   : > { %2212 = vst.msk [vmem:[%s708_s24] sm:$0xf] %vm2211_vm8, %v2210_v7 }
0x10fe PF: > { %s33_s3 = sadd.s32 1, %s2692_s3  }
0x10ff   : > { %p30_p2 = scmp.ge.s32.totalorder %s33_s3, 4  }
0x1101   :  { %32 = sbr.rel (!%p30_p2) target bundleno = 9 (0x9), region = 146 }
0x1108   :  { %2232 = vsyncpa [#allocation3], 1 }
0x1109   :  { %2234 = vsyncpa [#allocation3 + $0x1], 1 }

// kernel: transformer_forward.7
= control target key start
LH: loop header
LB: loop body
LE: loop exit
PB: predicated region body
PF: predicated region fallthrough
CT: control target
= control target key end

     0   :  { %s3072_s0 = inlined_call_operand.vmem [shape: f32[2,8,32], index: 0, kind: input, shape index: {}]   ;;  %s3073_s1 = inlined_call_operand.vmem [shape: bf16[2,8,32], index: 1, kind: input, shape index: {}]   ;;  %s3074_s2 = inlined_call_operand.vmem [shape: bf16[32,96], index: 2, kind: input, shape index: {}]   ;;  %s3075_s3 = inlined_call_operand.vmem [shape: f32[1,96], index: 3, kind: input, shape index: {}]   ;;  %s3076_s4 = inlined_call_operand.vmem [shape: bf16[32,32], index: 4, kind: input, shape index: {}]   ;;  %s3077_s5 = inlined_call_operand.vmem [shape: f32[1,32], index: 5, kind: input, shape index: {}]   ;;  %s3078_s6 = inlined_call_operand.vmem [shape: f32[1,32], index: 6, kind: input, shape index: {}]   ;;  %s3079_s7 = inlined_call_operand.vmem [shape: f32[1,32], index: 7, kind: input, shape index: {}]   ;;  %s3080_s8 = inlined_call_operand.vmem [shape: bf16[32,32], index: 8, kind: input, shape index: {}]   ;;  %s3081_s9 = inlined_call_operand.vmem [shape: f32[1,32], index: 9, kind: input, shape index: {}]   ;;  %s3082_s10 = inlined_call_operand.vmem [shape: bf16[32,64], index: 10, kind: input, shape index: {}]   ;;  %s3083_s11 = inlined_call_operand.vmem [shape: f32[1,64], index: 11, kind: input, shape index: {}]   ;;  %s3084_s12 = inlined_call_operand.vmem [shape: bf16[32,32], index: 12, kind: input, shape index: {}]   ;;  %s3085_s13 = inlined_call_operand.vmem [shape: f32[1,32], index: 13, kind: input, shape index: {}]   ;;  %s3086_s14 = inlined_call_operand.vmem [shape: f32[1,32], index: 14, kind: input, shape index: {}]   ;;  %s3087_s15 = inlined_call_operand.vmem [shape: f32[1,32], index: 15, kind: input, shape index: {}]   ;;  %s3088_s16 = inlined_call_operand.vmem [shape: bf16[32,64], index: 16, kind: input, shape index: {}]   ;;  %s3089_s17 = inlined_call_operand.vmem [shape: f32[1,64], index: 17, kind: input, shape index: {}]   ;;  %s3090_s18 = inlined_call_operand.vmem [shape: bf16[64,32], index: 18, kind: input, shape index: {}]   ;;  %s3091_s19 = inlined_call_operand.vmem [shape: f32[1,32], index: 19, kind: input, shape index: {}]   ;;  %s3092_s20 = inlined_call_operand.vmem [shape: f32[1,32], index: 20, kind: input, shape index: {}]   ;;  %s3093_s21 = inlined_call_operand.vmem [shape: f32[1,32], index: 21, kind: input, shape index: {}]   ;;  %s3094_s22 = inlined_call_operand.vmem [shape: bf16[2,8,32], index: 22, kind: output, shape index: {}]  }
   0x1   :  { %3106 = sst [smem:[#allocation2_spill]] %s3072_s0 }
   0x2   :  { %3107 = sst [smem:[#allocation3_spill]] %s3073_s1 }
   0x3   :  { %3108 = sst [smem:[#allocation4_spill]] %s3074_s2 }
   0x4   :  { %3109 = sst [smem:[#allocation5_spill]] %s3075_s3  ;;  %s2755_s3 = smov 0  }
   0x5   :  { %3110 = sst [smem:[#allocation6_spill]] %s3076_s4 }
   0x6   :  { %3111 = sst [smem:[#allocation7_spill]] %s3077_s5 }
   0x7   :  { %3112 = sst [smem:[#allocation8_spill]] %s3078_s6 }
   0x8 LB: > { %s2265_s28 = sadd.s32 4294967295, %s2622_s3   ;;  %p2269_p0 = scmp.ge.s32.totalorder %s2622_s3, 1  ;;  %s2622_s3 = sphi %s2755_s3, %s32_s3  }
   0x9   : > { %p620_p1 = scmp.lt.s32.totalorder %s2622_s3, 3 }
   0xb   : > { %p621_p2 = pnand %p2269_p0, %p620_p1 }
   0xc   : > { %s3113_s4 = sld [smem:[#allocation4_spill]] (!%p621_p2)  ;;  %v2624_v1 = vmov (!%p621_p2), 0.0   ;;  %vm2625_vm0 = vmmov (!%p621_p2), 0   ;;  %p684_p3 = scmp.lt.s32.totalorder (!%p621_p2), %s2265_s28, 1  ;;  %vm729_vm1 = vcmask (!%p621_p2), 261120   ;;  %vm777_vm2 = vcmask (!%p621_p2), 64512  }
   0xd   : > { %624 = sbr.rel (%p621_p2) target bundleno = 4313 (0x10d9), region = 108  ;;  %2382 = vmatprep.subr.bf16.mxu1 (!%p621_p2), %v2624_v1  ;;  %2396 = vmatprep.subr.bf16.mxu0 (!%p621_p2), %v2624_v1  ;;  %s3114_s6 = sld [smem:[#allocation2_spill]] (!%p621_p2)  ;;  %v700_v23 = vlaneseq (!%p621_p2)  ;;  %vm841_vm4 = vcmask (!%p621_p2), 1043456   ;;  %vm1228_vm5 = vcmask (!%p621_p2), 130048   ;;  %vm1230_vm6 = vcmask (!%p621_p2), 195584  }
   0xe   : > { %2386 = vmatprep.mubr.msk.bf16.mxu1 (!%p621_p2), %vm2625_vm0, %v2624_v1  ;;  %2398 = vmatprep.mubr.msk.bf16.mxu0 (!%p621_p2), %vm2625_vm0, %v2624_v1  ;;  %s3115_s27 = sld [smem:[#allocation5_spill]] (!%p621_p2)  ;;  %s2626_s29 = smov (!%p621_p2), 120   ;;  %vm2123_vm7 = vcmask (!%p621_p2), 523264   ;;  %vm2198_vm8 = vcmask (!%p621_p2), 257024  }
   0xf   : > { %s3103_s30 = smov (!%p621_p2), 96   ;;  %s3102_s0 = smov (!%p621_p2), 80   ;;  %v701_v24 = vshrl.u32 (!%p621_p2), %v700_v23, 7  ;;  %v703_v25 = vand.u32 (!%p621_p2), 127, %v700_v23 }
  0x10   : > { %s3097_s23 = smov (!%p621_p2), 88   ;;  %s2631_s5 = smov (!%p621_p2), 112  }
  0x11   : > { %s3104_s24 = smov (!%p621_p2), 104   ;;  %vm704_vm3 = vcmp.gt.s32.totalorder (!%p621_p2), %v703_v25, %v701_v24  ;;  %s2635_s26 = smov (!%p621_p2), 40  }
  0x12   : > { %v2562_v0 = vld [vmem:[%s3113_s4] sm:$0xff] (!%p621_p2)   ;;  %v2563_v2 = vld [vmem:[%s3113_s4 + $0x8] sm:$0xff] (!%p621_p2)   ;;  %v705_v26 = vsel (!%p621_p2), %vm704_vm3, -1e+09, %v2624_v1  ;;  %s2636_s2 = smov (!%p621_p2), 48  }
  0x13   : > { %2383 = vmatpush3.bf16.msra.mxu1 (!%p621_p2), %v2562_v0 }
  0x14   : > { %2384 = vmatprep.subr.bf16.mxu1 %v2624_v1  ;;  %s3129_s28 = smov (!%p684_p3, %s2265_s28), 1  ;;  %v2273_v5 = vld [vmem:[%s3115_s27] ss:$0 sm:$0xff]  ;;  %s3101_s27 = smov 8  }
  0x15   : > { %s2270_s1 = sshll.u32 %s3129_s28, 3 }
  0x16   : > { %s687_s25 = scalar_lea.vmem %s3114_s6, %s2270_s1  ;;  %s3098_s1 = smov 72  }
  0x17   : > { %2385 = vmatpush3.bf16.msra.mxu1 %v2563_v2  ;;  %v2783_v3 = vld [vmem:[%s687_s25] sm:$0xff]  ;;  %s2633_s6 = smov 56   ;;  %s2634_s25 = smov 64  }
  0x18   : > { %2390 = vmatprep.subr.bf16.mxu1 %v2624_v1  ;;  %v698_v4 = vpack.c.bf16 %v2783_v3, %v2783_v3 }
  0x1a   : > { %2387 = vmatmul.mubr.msk.bf16.vlgmr.msra.gmra.mrb[0].mxu1 %vm729_vm1, %v698_v4 }
  0x1b   : > { %2392 = vmatprep.mubr.msk.bf16.mxu1 %vm2625_vm0, %v2624_v1 }
  0xed   : > { %v767_v6 = vpop.f32.mrb[0].mxu1 }
  0xee   : > { %v768_v7 = vadd.f32 %v2273_v5, %v767_v6  ;;  %v2388_v8 = vpop.f32.mrb[1].mxu1 }
  0xef   : > { %v770_v9 = vpop.f32.mrb[2].mxu1 }
  0xf0   : > { %v2793_v10 = vpack.c.bf16 %v768_v7, %v768_v7  ;;  %v2389_v11 = vpop.f32.mrb[3].mxu1 }
  0xf2   : > { %885 = vrot.lane.b32.xlu1 %v2793_v10, %s2626_s29  ;;  %775 = vrot.lane.b32.xlu0 %v2793_v10, %s3103_s30  ;;  %s3118_s30 = sld [smem:[#allocation3_spill]] }
  0xf6   : > { %997 = vrot.lane.b32.xlu1 %v2793_v10, %s3102_s0  ;;  %887 = vrot.lane.b32.xlu0 %v2793_v10, %s3097_s23  ;;  %s3126_s0 = smov 16  }
  0xfa   : > { %1107 = vrot.lane.b32.xlu1 %v2793_v10, %s3098_s1  ;;  %995 = vrot.lane.b32.xlu0 %v2793_v10, %s2631_s5  ;;  %s3100_s1 = smov 16  }
  0xfe   : > { %1105 = vrot.lane.b32.xlu0 %v2793_v10, %s3104_s24 }
 0x164   : > { %v776_v12 = vpop.permute.xlu0 %775  ;;  %v886_v15 = vpop.permute.xlu1 %885 }
 0x165   : > { %v782_v13 = vsel %vm777_vm2, %v776_v12, 0 }
 0x166   : > { %2391 = vmatpush3.bf16.xpose.msra.mxu1 %v782_v13 }
 0x167   : > { %2402 = vmatprep.subr.bf16.mxu1 %v2624_v1 }
 0x168   : > { %v888_v14 = vpop.permute.xlu0 %887  ;;  %v998_v17 = vpop.permute.xlu1 %997 }
 0x169   : > { %v893_v16 = vsel %vm777_vm2, %v888_v14, 0  ;;  %v1003_v18 = vsel %vm777_vm2, %v998_v17, 0 }
 0x16c   : > { %v1108_v19 = vpop.permute.xlu1 %1107  ;;  %v996_v20 = vpop.permute.xlu0 %995 }
 0x16d   : > { %2393 = vmatmul.mubr.msk.bf16.vlgmr.msra.gmra.mrb[4].mxu1 %vm777_vm2, %v2793_v10  ;;  %v1113_v21 = vsel %vm777_vm2, %v1108_v19, 0 }
 0x16e   : > { %2403 = vmatpush3.bf16.xpose.msra.mxu1 %v893_v16  ;;  %2404 = vmatprep.mubr.msk.bf16.mxu1 %vm2625_vm0, %v2624_v1 }
 0x16f   : > { %2414 = vmatprep.subr.bf16.mxu1 %v2624_v1 }
 0x170   : > { %v1106_v22 = vpop.permute.xlu0 %1105 }
 0x175   : > { %2405 = vmatmul.mubr.msk.bf16.vlgmr.msra.gmra.mrb[8].mxu1 %vm777_vm2, %v886_v15 }
 0x176   : > { %2415 = vmatpush3.bf16.xpose.msra.mxu1 %v1003_v18  ;;  %2416 = vmatprep.mubr.msk.bf16.mxu1 %vm2625_vm0, %v2624_v1 }
 0x177   : > { %2426 = vmatprep.subr.bf16.mxu1 %v2624_v1 }
 0x17d   : > { %2417 = vmatmul.mubr.msk.bf16.vlgmr.msra.gmra.mrb[12].mxu1 %vm777_vm2, %v996_v20 }
 0x17e   : > { %2427 = vmatpush3.bf16.xpose.msra.mxu1 %v1113_v21  ;;  %2428 = vmatprep.mubr.msk.bf16.mxu1 %vm2625_vm0, %v2624_v1 }
 0x17f   : > { %2438 = vmatprep.subr.bf16.mxu1 %v2624_v1 }
 0x185   : > { %2429 = vmatmul.mubr.msk.bf16.vlgmr.msra.gmra.mrb[16].mxu1 %vm777_vm2, %v1106_v22 }
 0x186   : > { %2442 = vmatprep.mubr.msk.bf16.mxu1 %vm2625_vm0, %v2624_v1 }
 0x240   : > { %v818_v27 = vpop.f32.mrb[4].mxu1 }
 0x241   : > { %v819_v28 = vadd.f32 %v818_v27, %v705_v26  ;;  %v2394_v29 = vpop.f32.mrb[5].mxu1 }
 0x242   : > { %v821_v30 = vpop.f32.mrb[6].mxu1 }
 0x243   : > { %v2395_v31 = vpop.f32.mrb[7].mxu1  ;;  %v824_v32 = vsel %vm777_vm2, %v819_v28, -inf }
 0x244   : > { %825 = vmax.xlane.f32.xlu1 %v824_v32 }
 0x248   : > { %v929_v33 = vpop.f32.mrb[8].mxu1 }
 0x249   : > { %v930_v34 = vadd.f32 %v929_v33, %v705_v26  ;;  %v2406_v35 = vpop.f32.mrb[9].mxu1 }
 0x24a   : > { %v932_v36 = vpop.f32.mrb[10].mxu1 }
 0x24b   : > { %v2407_v37 = vpop.f32.mrb[11].mxu1  ;;  %v935_v38 = vsel %vm777_vm2, %v930_v34, -inf }
 0x24c   : > { %936 = vmax.xlane.f32.xlu0 %v935_v38 }
 0x250   : > { %v1039_v39 = vpop.f32.mrb[12].mxu1 }
 0x251   : > { %v1040_v40 = vadd.f32 %v1039_v39, %v705_v26  ;;  %v2418_v41 = vpop.f32.mrb[13].mxu1 }
 0x252   : > { %v1042_v42 = vpop.f32.mrb[14].mxu1 }
 0x253   : > { %v2419_v43 = vpop.f32.mrb[15].mxu1  ;;  %v1045_v44 = vsel %vm777_vm2, %v1040_v40, -inf }
 0x254   : > { %1046 = vmax.xlane.f32.xlu0 %v1045_v44 }
 0x258   : > { %v1149_v45 = vpop.f32.mrb[16].mxu1 }
 0x259   : > { %v1150_v46 = vadd.f32 %v1149_v45, %v705_v26  ;;  %v2430_v47 = vpop.f32.mrb[17].mxu1 }
 0x25a   : > { %v1152_v48 = vpop.f32.mrb[18].mxu1 }
 0x25b   : > { %v2431_v49 = vpop.f32.mrb[19].mxu1  ;;  %v1155_v50 = vsel %vm777_vm2, %v1150_v46, -inf }
 0x25c   : > { %1156 = vmax.xlane.f32.xlu1 %v1155_v50 }
 0x2d1   : > { %v826_v51 = vpop.xlane.xlu1 %825 }
 0x2d2   : > { %v827_v52 = vsub.f32 %v819_v28, %v826_v51 }
 0x2d4   : > { %v828_v53 = vmul.f32 1.442695, %v827_v52 }
 0x2d6   : > { %2578 = vpow2.f32 %v828_v53 }
 0x2d9   : > { %v937_v54 = vpop.xlane.xlu0 %936 }
 0x2da   : > { %v938_v55 = vsub.f32 %v930_v34, %v937_v54 }
 0x2dc   : > { %v939_v56 = vmul.f32 1.442695, %v938_v55 }
 0x2de   : > { %2580 = vpow2.f32 %v939_v56 }
 0x2e0   : > { %v2579_v57 = vpop.eup %2578 }
 0x2e1   : > { %v1047_v58 = vpop.xlane.xlu0 %1046  ;;  %v830_v59 = vsel %vm777_vm2, %v2579_v57, 0.0 }
 0x2e2   : > { %v1048_v60 = vsub.f32 %v1040_v40, %v1047_v58  ;;  %831 = vadd.xlane.f32.xlu0 %v830_v59 }
 0x2e4   : > { %v1049_v61 = vmul.f32 1.442695, %v1048_v60 }
 0x2e6   : > { %2582 = vpow2.f32 %v1049_v61 }
 0x2e8   : > { %v2581_v62 = vpop.eup %2580 }
 0x2e9   : > { %v941_v63 = vsel %vm777_vm2, %v2581_v62, 0.0  ;;  %v1157_v4 = vpop.xlane.xlu1 %1156 }
 0x2ea   : > { %942 = vadd.xlane.f32.xlu1 %v941_v63  ;;  %v1158_v5 = vsub.f32 %v1150_v46, %v1157_v4 }
 0x2ec   : > { %v1159_v6 = vmul.f32 1.442695, %v1158_v5 }
 0x2ee   : > { %2584 = vpow2.f32 %v1159_v6 }
 0x2f0   : > { %v2583_v0 = vpop.eup %2582 }
 0x2f1   : > { %v1051_v2 = vsel %vm777_vm2, %v2583_v0, 0.0 }
 0x2f2   : > { %1052 = vadd.xlane.f32.xlu0 %v1051_v2 }
 0x2f8   : > { %v2585_v7 = vpop.eup %2584 }
 0x2f9   : > { %v1161_v8 = vsel %vm777_vm2, %v2585_v7, 0.0 }
 0x2fb   : > { %947 = vrot.lane.b32.xlu1 %v2793_v10, %s2633_s6  ;;  %s3099_s6 = smov 24  }
 0x308   : > { %836 = vrot.lane.b32.xlu0 %v2793_v10, %s2634_s25 }
 0x30c   : > { %1167 = vrot.lane.b32.xlu0 %v2793_v10, %s2635_s26  ;;  %s3116_s26 = sld [smem:[#allocation6_spill]] }
 0x312   : > { %v2564_v41 = vld [vmem:[%s3116_s26] sm:$0xff]   ;;  %v2565_v42 = vld [vmem:[%s3116_s26 + $0x8] sm:$0xff]  }
 0x313   : > { %2439 = vmatpush3.bf16.msra.mxu1 %v2564_v41 }
 0x314   : > { %2440 = vmatprep.subr.bf16.mxu1 %v2624_v1 }
 0x317   : > { %2441 = vmatpush3.bf16.msra.mxu1 %v2565_v42 }
 0x318   : > { %2454 = vmatprep.subr.bf16.mxu1 %v2624_v1 }
 0x31f   : > { %1162 = vadd.xlane.f32.xlu1 %v1161_v8 }
 0x330   : > { %1057 = vrot.lane.b32.xlu1 %v2793_v10, %s2636_s2  ;;  %s3117_s2 = sld [smem:[#allocation7_spill]] }
 0x336   : > { %v2285_v58 = vld [vmem:[%s3117_s2] ss:$0 sm:$0xff]  ;;  %s3120_s2 = smov 104  }
 0x36f   : > { %v832_v9 = vpop.xlane.xlu0 %831 }
 0x370   : > { %2586 = vrcp.f32 %v832_v9  ;;  %v2566_v9 = vld [vmem:[%s3082_s10] sm:$0xff]  }
 0x377   : > { %v943_v11 = vpop.xlane.xlu1 %942 }
 0x378   : > { %2588 = vrcp.f32 %v943_v11 }
 0x37a   : > { %v2587_v12 = vpop.eup %2586 }
 0x37b   : > { %v834_v14 = vmul.f32 %v2587_v12, %v2579_v57  ;;  %v948_v17 = vpop.permute.xlu1 %947  ;;  %v2568_v12 = vld [vmem:[%s3080_s8] sm:$0xff]  }
 0x37c   : > { %v953_v20 = vsel %vm841_vm4, %v948_v17, 0 }
 0x37d   : > { %v835_v18 = vpack.c.bf16 %v834_v14, %v834_v14 }
 0x37f   : > { %v1053_v13 = vpop.xlane.xlu0 %1052 }
 0x380   : > { %2590 = vrcp.f32 %v1053_v13  ;;  %v2569_v13 = vld [vmem:[%s3080_s8 + $0x8] sm:$0xff]  }
 0x382   : > { %v2589_v19 = vpop.eup %2588 }
 0x383   : > { %v837_v15 = vpop.permute.xlu0 %836  ;;  %v945_v10 = vmul.f32 %v2589_v19, %v2581_v62 }
 0x384   : > { %v843_v16 = vsel %vm841_vm4, %v837_v15, 0 }
 0x385   : > { %2397 = vmatpush3.bf16.msra.mxu0 %v843_v16  ;;  %v946_v21 = vpack.c.bf16 %v945_v10, %v945_v10 }
 0x386   : > { %2408 = vmatprep.subr.bf16.mxu0 %v2624_v1 }
 0x387   : > { %v1168_v27 = vpop.permute.xlu0 %1167 }
 0x388   : > { %2399 = vmatmul.mubr.msk.bf16.vlgmr.msra.gmra.mrb[0].mxu0 %vm777_vm2, %v835_v18  ;;  %v1173_v29 = vsel %vm841_vm4, %v1168_v27, 0 }
 0x389   : > { %2409 = vmatpush3.bf16.msra.mxu0 %v953_v20  ;;  %2410 = vmatprep.mubr.msk.bf16.mxu0 %vm2625_vm0, %v2624_v1  ;;  %v2290_v20 = vld [vmem:[%s3079_s7] ss:$0 sm:$0xff] }
 0x38a   : > { %2420 = vmatprep.subr.bf16.mxu0 %v2624_v1  ;;  %v2591_v22 = vpop.eup %2590 }
 0x38b   : > { %v1055_v24 = vmul.f32 %v2591_v22, %v2583_v0 }
 0x38d   : > { %v1056_v28 = vpack.c.bf16 %v1055_v24, %v1055_v24 }
 0x390   : > { %2411 = vmatmul.mubr.msk.bf16.vlgmr.msra.gmra.mrb[4].mxu0 %vm777_vm2, %v946_v21 }
 0x391   : > { %2422 = vmatprep.mubr.msk.bf16.mxu0 %vm2625_vm0, %v2624_v1 }
 0x3ac   : > { %v1163_v23 = vpop.xlane.xlu1 %1162 }
 0x3ad   : > { %2592 = vrcp.f32 %v1163_v23  ;;  %v2295_v23 = vld [vmem:[%s3083_s11] ss:$0 sm:$0xff] }
 0x3b0   : > { %v1058_v25 = vpop.permute.xlu1 %1057 }
 0x3b1   : > { %v1063_v26 = vsel %vm841_vm4, %v1058_v25, 0 }
 0x3b2   : > { %2421 = vmatpush3.bf16.msra.mxu0 %v1063_v26 }
 0x3b3   : > { %2432 = vmatprep.subr.bf16.mxu0 %v2624_v1 }
 0x3b5   : > { %2423 = vmatmul.mubr.msk.bf16.vlgmr.msra.gmra.mrb[8].mxu0 %vm777_vm2, %v1056_v28 }
 0x3b6   : > { %2433 = vmatpush3.bf16.msra.mxu0 %v1173_v29  ;;  %2434 = vmatprep.mubr.msk.bf16.mxu0 %vm2625_vm0, %v2624_v1 }
 0x3b7   : > { %v2593_v30 = vpop.eup %2592  ;;  %2446 = vmatprep.subr.bf16.mxu0 %v2624_v1 }
 0x3b8   : > { %v1165_v31 = vmul.f32 %v2593_v30, %v2585_v7 }
 0x3ba   : > { %v1166_v32 = vpack.c.bf16 %v1165_v31, %v1165_v31  ;;  %v2291_v31 = vld [vmem:[%s3081_s9] ss:$0 sm:$0xff] }
 0x3bd   : > { %2435 = vmatmul.mubr.msk.bf16.vlgmr.msra.gmra.mrb[12].mxu0 %vm777_vm2, %v1166_v32 }
 0x3be   : > { %2450 = vmatprep.mubr.msk.bf16.mxu0 %vm2625_vm0, %v2624_v1  ;;  %2447 = vmatpush3.bf16.msra.mxu0 %v2568_v12 }
 0x3bf   : > { %2448 = vmatprep.subr.bf16.mxu0 %v2624_v1 }
 0x3c2   : > { %2449 = vmatpush3.bf16.msra.mxu0 %v2569_v13 }
 0x3c3   : > { %2462 = vmatprep.subr.bf16.mxu0 %v2624_v1 }
 0x45b   : > { %v879_v33 = vpop.f32.mrb[0].mxu0 }
 0x45c   : > { %v2400_v34 = vpop.f32.mrb[1].mxu0 }
 0x45d   : > { %v882_v35 = vpop.f32.mrb[2].mxu0 }
 0x45e   : > { %v2401_v36 = vpop.f32.mrb[3].mxu0 }
 0x463   : > { %v989_v37 = vpop.f32.mrb[4].mxu0 }
 0x464   : > { %1216 = vrot.lane.b32.xlu1 %v989_v37, %s3101_s27  ;;  %v2412_v38 = vpop.f32.mrb[5].mxu0  ;;  %s3124_s27 = smov 88  }
 0x465   : > { %v992_v39 = vpop.f32.mrb[6].mxu0 }
 0x466   : > { %v2413_v40 = vpop.f32.mrb[7].mxu0 }
 0x488   : > { %v1099_v43 = vpop.f32.mrb[8].mxu0 }
 0x489   : > { %1220 = vrot.lane.b32.xlu0 %v1099_v43, %s3100_s1  ;;  %v2424_v44 = vpop.f32.mrb[9].mxu0  ;;  %s2271_s1 = sshll.u32 %s3129_s28, 2 }
 0x48a   : > { %v1102_v45 = vpop.f32.mrb[10].mxu0  ;;  %s691_s24 = scalar_lea.vmem %s3118_s30, %s2271_s1 }
 0x48b   : > { %v2425_v46 = vpop.f32.mrb[11].mxu0  ;;  %v699_v11 = vld [vmem:[%s691_s24] sm:$0xf]  ;;  %s3119_s24 = sld [smem:[#allocation8_spill]] }
 0x490   : > { %v1209_v47 = vpop.f32.mrb[12].mxu0 }
 0x491   : > { %1224 = vrot.lane.b32.xlu1 %v1209_v47, %s3099_s6  ;;  %v2436_v48 = vpop.f32.mrb[13].mxu0  ;;  %v2289_v18 = vld [vmem:[%s3119_s24] ss:$0 sm:$0xff]  ;;  %s3123_s24 = smov 72   ;;  %s3125_s6 = smov 8  }
 0x492   : > { %v1212_v49 = vpop.f32.mrb[14].mxu0 }
 0x493   : > { %v2437_v50 = vpop.f32.mrb[15].mxu0 }
 0x4d6   : > { %v1217_v51 = vpop.permute.xlu1 %1216 }
 0x4d7   : > { %v1227_v53 = vsel %vm777_vm2, %v879_v33, %v1217_v51 }
 0x4fb   : > { %v1221_v52 = vpop.permute.xlu0 %1220 }
 0x4fc   : > { %v1229_v54 = vsel %vm1228_vm5, %v1227_v53, %v1221_v52 }
 0x503   : > { %v1225_v55 = vpop.permute.xlu1 %1224 }
 0x504   : > { %v1231_v56 = vsel %vm1230_vm6, %v1229_v54, %v1225_v55 }
 0x505   : > { %v1232_v57 = vpack.c.bf16 %v1231_v56, %v1231_v56 }
 0x507   : > { %2443 = vmatmul.mubr.msk.bf16.vlgmr.msra.gmra.mrb[20].mxu1 %vm729_vm1, %v1232_v57 }
 0x508   : > { %2458 = vmatprep.mubr.msk.bf16.mxu1 %vm2625_vm0, %v2624_v1  ;;  %2455 = vmatpush3.bf16.msra.mxu1 %v2566_v9 }
 0x509   : > { %2456 = vmatprep.subr.bf16.mxu1 %v2624_v1 }
 0x5da   : > { %v1293_v59 = vpop.f32.mrb[20].mxu1 }
 0x5db   : > { %v1294_v60 = vadd.f32 %v2285_v58, %v1293_v59  ;;  %v2444_v61 = vpop.f32.mrb[21].mxu1 }
 0x5dc   : > { %v1296_v62 = vpop.f32.mrb[22].mxu1 }
 0x5dd   : > { %v2445_v63 = vpop.f32.mrb[23].mxu1  ;;  %v1299_v0 = vadd.f32 %v1294_v60, %v2783_v3  ;;  %v2567_v3 = vld [vmem:[%s3082_s10 + $0x8] sm:$0xff]  }
 0x5de   : > { %2457 = vmatpush3.bf16.msra.mxu1 %v2567_v3 }
 0x5df   : > { %v1302_v2 = vsel %vm729_vm1, %v1299_v0, 0.0  ;;  %2468 = vmatprep.subr.bf16.mxu1 %v2624_v1 }
 0x5e0   : > { %1303 = vadd.xlane.f32.xlu0 %v1302_v2 }
 0x5e1   : > { %2459 = vmatmul.mubr.msk.bf16.vlgmr.msra.gmra.mrb[24].mxu1 %vm729_vm1, %v699_v11 }
 0x5e2   : > { %2470 = vmatprep.mubr.msk.bf16.mxu1 %vm2625_vm0, %v2624_v1 }
 0x66d   : > { %v1304_v4 = vpop.xlane.xlu0 %1303 }
 0x66e   : > { %v1306_v5 = vmul.f32 0.03125, %v1304_v4 }
 0x670   : > { %v1307_v6 = vsub.f32 %v1299_v0, %v1306_v5 }
 0x672   : > { %v1308_v7 = vmul.f32 %v1307_v6, %v1307_v6 }
 0x674   : > { %v1309_v8 = vsel %vm729_vm1, %v1308_v7, 0.0 }
 0x675   : > { %1310 = vadd.xlane.f32.xlu1 %v1309_v8 }
 0x6b4   : > { %v1457_v24 = vpop.f32.mrb[24].mxu1 }
 0x6b5   : > { %v1458_v25 = vadd.f32 %v2295_v23, %v1457_v24  ;;  %v2460_v26 = vpop.f32.mrb[25].mxu1 }
 0x6b6   : > { %v1460_v27 = vpop.f32.mrb[26].mxu1 }
 0x6b7   : > { %v2927_v28 = vpack.c.bf16 %v1458_v25, %v1458_v25  ;;  %v2461_v29 = vpop.f32.mrb[27].mxu1 }
 0x6b9   : > { %1575 = vrot.lane.b32.xlu0 %v2927_v28, %s2626_s29  ;;  %v1469_v30 = vsel %vm777_vm2, %v2927_v28, 0 }
 0x6bd   : > { %1685 = vrot.lane.b32.xlu0 %v2927_v28, %s2631_s5 }
 0x6c1   : > { %1795 = vrot.lane.b32.xlu0 %v2927_v28, %s3120_s2 }
 0x702   : > { %v1311_v14 = vpop.xlane.xlu1 %1310 }
 0x703   : > { %v1312_v15 = vmul.f32 0.03125, %v1311_v14 }
 0x705   : > { %v1313_v16 = vadd.f32 1e-05, %v1312_v15 }
 0x707   : > { %2594 = vrsqrt.f32 %v1313_v16 }
 0x711   : > { %v2595_v17 = vpop.eup %2594 }
 0x712   : > { %v1315_v19 = vmul.f32 %v2595_v17, %v1307_v6 }
 0x714   : > { %v1322_v10 = vmul.f32 %v2289_v18, %v1315_v19 }
 0x716   : > { %v2917_v21 = vadd.f32 %v2290_v20, %v1322_v10 }
 0x718   : > { %v1330_v22 = vpack.c.bf16 %v2917_v21, %v2917_v21 }
 0x71a   : > { %2451 = vmatmul.mubr.msk.bf16.vlgmr.msra.gmra.mrb[16].mxu0 %vm729_vm1, %v1330_v22 }
 0x71b   : > { %2464 = vmatprep.mubr.msk.bf16.mxu0 %vm2625_vm0, %v2624_v1  ;;  %2463 = vmatpush3.bf16.xpose.msra.mxu0 %v1469_v30 }
 0x71c   : > { %2474 = vmatprep.subr.bf16.mxu0 %v2624_v1 }
 0x72b   : > { %v1576_v36 = vpop.permute.xlu0 %1575 }
 0x72c   : > { %v1581_v39 = vsel %vm777_vm2, %v1576_v36, 0 }
 0x72f   : > { %v1686_v40 = vpop.permute.xlu0 %1685 }
 0x730   : > { %v1691_v42 = vsel %vm777_vm2, %v1686_v40, 0 }
 0x733   : > { %v1796_v43 = vpop.permute.xlu0 %1795 }
 0x734   : > { %v1801_v45 = vsel %vm777_vm2, %v1796_v43, 0 }
 0x7ed   : > { %v1391_v32 = vpop.f32.mrb[16].mxu0 }
 0x7ee   : > { %v1392_v33 = vadd.f32 %v2291_v31, %v1391_v32  ;;  %v2452_v34 = vpop.f32.mrb[17].mxu0 }
 0x7ef   : > { %v1394_v35 = vpop.f32.mrb[18].mxu0 }
 0x7f0   : > { %v1463_v37 = vpack.c.bf16 %v1392_v33, %v1392_v33  ;;  %v2453_v38 = vpop.f32.mrb[19].mxu0 }
 0x7f2   : > { %1573 = vrot.lane.b32.xlu1 %v1463_v37, %s2626_s29  ;;  %2465 = vmatmul.mubr.msk.bf16.vlgmr.msra.gmra.mrb[20].mxu0 %vm777_vm2, %v1463_v37  ;;  %s3121_s29 = smov 96  }
 0x7f3   : > { %2475 = vmatpush3.bf16.xpose.msra.mxu0 %v1581_v39  ;;  %2476 = vmatprep.mubr.msk.bf16.mxu0 %vm2625_vm0, %v2624_v1 }
 0x7f4   : > { %2486 = vmatprep.subr.bf16.mxu0 %v2624_v1 }
 0x7f6   : > { %1683 = vrot.lane.b32.xlu1 %v1463_v37, %s2631_s5  ;;  %s3122_s5 = smov 80  }
 0x7fa   : > { %1793 = vrot.lane.b32.xlu1 %v1463_v37, %s3120_s2 }
 0x864   : > { %v1574_v41 = vpop.permute.xlu1 %1573 }
 0x865   : > { %2477 = vmatmul.mubr.msk.bf16.vlgmr.msra.gmra.mrb[24].mxu0 %vm777_vm2, %v1574_v41 }
 0x866   : > { %2487 = vmatpush3.bf16.xpose.msra.mxu0 %v1691_v42  ;;  %2488 = vmatprep.mubr.msk.bf16.mxu0 %vm2625_vm0, %v2624_v1 }
 0x867   : > { %2498 = vmatprep.subr.bf16.mxu0 %v2624_v1 }
 0x868   : > { %v1684_v44 = vpop.permute.xlu1 %1683 }
 0x86c   : > { %v1794_v46 = vpop.permute.xlu1 %1793 }
 0x86d   : > { %2489 = vmatmul.mubr.msk.bf16.vlgmr.msra.gmra.mrb[28].mxu0 %vm777_vm2, %v1684_v44 }
 0x86e   : > { %2499 = vmatpush3.bf16.xpose.msra.mxu0 %v1801_v45  ;;  %2500 = vmatprep.mubr.msk.bf16.mxu0 %vm2625_vm0, %v2624_v1 }
 0x86f   : > { %2510 = vmatprep.subr.bf16.mxu0 %v2624_v1 }
 0x875   : > { %2501 = vmatmul.mubr.msk.bf16.vlgmr.msra.gmra.mrb[32].mxu0 %vm777_vm2, %v1794_v46 }
 0x876   : > { %2514 = vmatprep.mubr.msk.bf16.mxu0 %vm2625_vm0, %v2624_v1 }
 0x8c5   : > { %v1505_v47 = vpop.f32.mrb[20].mxu0 }
 0x8c6   : > { %v2466_v48 = vpop.f32.mrb[21].mxu0  ;;  %v1511_v49 = vsel %vm777_vm2, %v1505_v47, -inf }
 0x8c7   : > { %1512 = vmax.xlane.f32.xlu0 %v1511_v49  ;;  %v1508_v50 = vpop.f32.mrb[22].mxu0 }
 0x8c8   : > { %v2467_v51 = vpop.f32.mrb[23].mxu0 }
 0x938   : > { %v1617_v52 = vpop.f32.mrb[24].mxu0 }
 0x939   : > { %v2478_v53 = vpop.f32.mrb[25].mxu0  ;;  %v1623_v54 = vsel %vm777_vm2, %v1617_v52, -inf }
 0x93a   : > { %1624 = vmax.xlane.f32.xlu1 %v1623_v54  ;;  %v1620_v55 = vpop.f32.mrb[26].mxu0  ;;  %v2570_v53 = vld [vmem:[%s3084_s12] sm:$0xff]  }
 0x93b   : > { %v2479_v56 = vpop.f32.mrb[27].mxu0  ;;  %2511 = vmatpush3.bf16.msra.mxu0 %v2570_v53 }
 0x93c   : > { %2512 = vmatprep.subr.bf16.mxu0 %v2624_v1 }
 0x940   : > { %v1727_v57 = vpop.f32.mrb[28].mxu0 }
 0x941   : > { %v2490_v58 = vpop.f32.mrb[29].mxu0  ;;  %v1733_v59 = vsel %vm777_vm2, %v1727_v57, -inf }
 0x942   : > { %1734 = vmax.xlane.f32.xlu0 %v1733_v59  ;;  %v1730_v60 = vpop.f32.mrb[30].mxu0  ;;  %v2571_v58 = vld [vmem:[%s3084_s12 + $0x8] sm:$0xff]  }
 0x943   : > { %v2491_v61 = vpop.f32.mrb[31].mxu0  ;;  %2513 = vmatpush3.bf16.msra.mxu0 %v2571_v58 }
 0x944   : > { %2526 = vmatprep.subr.bf16.mxu0 %v2624_v1 }
 0x948   : > { %v1837_v62 = vpop.f32.mrb[32].mxu0 }
 0x949   : > { %v2502_v63 = vpop.f32.mrb[33].mxu0  ;;  %v1843_v0 = vsel %vm777_vm2, %v1837_v62, -inf }
 0x94a   : > { %1844 = vmax.xlane.f32.xlu0 %v1843_v0  ;;  %v1840_v2 = vpop.f32.mrb[34].mxu0 }
 0x94b   : > { %v2503_v4 = vpop.f32.mrb[35].mxu0 }
 0x954   : > { %v1513_v5 = vpop.xlane.xlu0 %1512 }
 0x955   : > { %v1514_v6 = vsub.f32 %v1505_v47, %v1513_v5 }
 0x957   : > { %v1515_v7 = vmul.f32 1.442695, %v1514_v6 }
 0x959   : > { %2596 = vpow2.f32 %v1515_v7 }
 0x963   : > { %v2597_v8 = vpop.eup %2596 }
 0x964   : > { %v1517_v9 = vsel %vm777_vm2, %v2597_v8, 0.0 }
 0x965   : > { %1518 = vadd.xlane.f32.xlu1 %v1517_v9 }
 0x976   : > { %1524 = vrot.lane.b32.xlu1 %v2927_v28, %s3121_s29  ;;  %s3127_s29 = smov 24  }
 0x9c7   : > { %v1625_v3 = vpop.xlane.xlu1 %1624 }
 0x9c8   : > { %v1626_v11 = vsub.f32 %v1617_v52, %v1625_v3 }
 0x9ca   : > { %v1627_v12 = vmul.f32 1.442695, %v1626_v11 }
 0x9cc   : > { %2598 = vpow2.f32 %v1627_v12  ;;  %v2307_v12 = vld [vmem:[%s3085_s13] ss:$0 sm:$0xff] }
 0x9cf   : > { %v1735_v13 = vpop.xlane.xlu0 %1734 }
 0x9d0   : > { %v1736_v14 = vsub.f32 %v1727_v57, %v1735_v13 }
 0x9d2   : > { %v1737_v15 = vmul.f32 1.442695, %v1736_v14 }
 0x9d4   : > { %2600 = vpow2.f32 %v1737_v15 }
 0x9d6   : > { %v2599_v16 = vpop.eup %2598 }
 0x9d7   : > { %v1845_v17 = vpop.xlane.xlu0 %1844  ;;  %v1629_v18 = vsel %vm777_vm2, %v2599_v16, 0.0 }
 0x9d8   : > { %v1846_v19 = vsub.f32 %v1837_v62, %v1845_v17  ;;  %1630 = vadd.xlane.f32.xlu0 %v1629_v18 }
 0x9da   : > { %v1847_v20 = vmul.f32 1.442695, %v1846_v19 }
 0x9dc   : > { %2602 = vpow2.f32 %v1847_v20 }
 0x9de   : > { %v2601_v10 = vpop.eup %2600 }
 0x9df   : > { %v1739_v22 = vsel %vm777_vm2, %v2601_v10, 0.0 }
 0x9e0   : > { %1740 = vadd.xlane.f32.xlu1 %v1739_v22 }
 0x9e6   : > { %v2603_v23 = vpop.eup %2602 }
 0x9e7   : > { %v1849_v24 = vsel %vm777_vm2, %v2603_v23, 0.0 }
 0x9e8   : > { %1850 = vadd.xlane.f32.xlu0 %v1849_v24 }
 0x9f1   : > { %1745 = vrot.lane.b32.xlu1 %v2927_v28, %s3122_s5 }
 0x9f2   : > { %v1519_v25 = vpop.xlane.xlu1 %1518 }
 0x9f3   : > { %2604 = vrcp.f32 %v1519_v25  ;;  %v2572_v25 = vld [vmem:[%s3088_s16] sm:$0xff]  }
 0x9f5   : > { %1855 = vrot.lane.b32.xlu1 %v2927_v28, %s3123_s24 }
 0x9f6   : > { %v1525_v26 = vpop.permute.xlu1 %1524 }
 0x9f7   : > { %v1530_v27 = vsel %vm841_vm4, %v1525_v26, 0  ;;  %v2573_v26 = vld [vmem:[%s3088_s16 + $0x8] sm:$0xff]  }
 0x9f8   : > { %2469 = vmatpush3.bf16.msra.mxu1 %v1530_v27  ;;  %v2575_v27 = vld [vmem:[%s3090_s18 + $0x8] sm:$0xff]  }
 0x9f9   : > { %2480 = vmatprep.subr.bf16.mxu1 %v2624_v1 }
 0x9fd   : > { %v2605_v29 = vpop.eup %2604 }
 0x9fe   : > { %v1521_v30 = vmul.f32 %v2605_v29, %v2597_v8  ;;  %1635 = vrot.lane.b32.xlu0 %v2927_v28, %s3124_s27 }
 0xa00   : > { %v1522_v31 = vpack.c.bf16 %v1521_v30, %v1521_v30 }
 0xa02   : > { %2471 = vmatmul.mubr.msk.bf16.vlgmr.msra.gmra.mrb[28].mxu1 %vm777_vm2, %v1522_v31 }
 0xa03   : > { %2482 = vmatprep.mubr.msk.bf16.mxu1 %vm2625_vm0, %v2624_v1 }
 0xa65   : > { %v1631_v32 = vpop.xlane.xlu0 %1630 }
 0xa66   : > { %2606 = vrcp.f32 %v1631_v32 }
 0xa6d   : > { %v1741_v33 = vpop.xlane.xlu1 %1740 }
 0xa6e   : > { %2608 = vrcp.f32 %v1741_v33  ;;  %v2311_v33 = vld [vmem:[%s3086_s14] ss:$0 sm:$0xff] }
 0xa70   : > { %v2607_v34 = vpop.eup %2606 }
 0xa71   : > { %v1633_v36 = vmul.f32 %v2607_v34, %v2599_v16  ;;  %v1746_v39 = vpop.permute.xlu1 %1745 }
 0xa72   : > { %v1751_v41 = vsel %vm841_vm4, %v1746_v39, 0  ;;  %v2576_v39 = vld [vmem:[%s3090_s18 + $0x10] sm:$0xff]  }
 0xa73   : > { %v1634_v28 = vpack.c.bf16 %v1633_v36, %v1633_v36 }
 0xa75   : > { %v1851_v35 = vpop.xlane.xlu0 %1850  ;;  %v1856_v43 = vpop.permute.xlu1 %1855 }
 0xa76   : > { %2610 = vrcp.f32 %v1851_v35  ;;  %v1861_v46 = vsel %vm841_vm4, %v1856_v43, 0  ;;  %v2312_v35 = vld [vmem:[%s3087_s15] ss:$0 sm:$0xff] }
 0xa78   : > { %v2609_v40 = vpop.eup %2608 }
 0xa79   : > { %v1636_v37 = vpop.permute.xlu0 %1635  ;;  %v1743_v42 = vmul.f32 %v2609_v40, %v2601_v10  ;;  %v2313_v40 = vld [vmem:[%s3089_s17] ss:$0 sm:$0xff] }
 0xa7a   : > { %v1641_v38 = vsel %vm841_vm4, %v1636_v37, 0 }
 0xa7b   : > { %2481 = vmatpush3.bf16.msra.mxu1 %v1641_v38  ;;  %v1744_v44 = vpack.c.bf16 %v1743_v42, %v1743_v42 }
 0xa7c   : > { %2492 = vmatprep.subr.bf16.mxu1 %v2624_v1 }
 0xa7e   : > { %2483 = vmatmul.mubr.msk.bf16.vlgmr.msra.gmra.mrb[32].mxu1 %vm777_vm2, %v1634_v28  ;;  %v2577_v28 = vld [vmem:[%s3090_s18 + $0x18] sm:$0xff]  }
 0xa7f   : > { %2493 = vmatpush3.bf16.msra.mxu1 %v1751_v41  ;;  %2494 = vmatprep.mubr.msk.bf16.mxu1 %vm2625_vm0, %v2624_v1 }
 0xa80   : > { %2504 = vmatprep.subr.bf16.mxu1 %v2624_v1  ;;  %v2611_v45 = vpop.eup %2610 }
 0xa81   : > { %v1853_v47 = vmul.f32 %v2611_v45, %v2603_v23 }
 0xa83   : > { %v1854_v48 = vpack.c.bf16 %v1853_v47, %v1853_v47 }
 0xa86   : > { %2495 = vmatmul.mubr.msk.bf16.vlgmr.msra.gmra.mrb[36].mxu1 %vm777_vm2, %v1744_v44 }
 0xa87   : > { %2505 = vmatpush3.bf16.msra.mxu1 %v1861_v46  ;;  %2506 = vmatprep.mubr.msk.bf16.mxu1 %vm2625_vm0, %v2624_v1 }
 0xa88   : > { %2518 = vmatprep.subr.bf16.mxu1 %v2624_v1 }
 0xa8e   : > { %2507 = vmatmul.mubr.msk.bf16.vlgmr.msra.gmra.mrb[40].mxu1 %vm777_vm2, %v1854_v48 }
 0xa8f   : > { %2522 = vmatprep.mubr.msk.bf16.mxu1 %vm2625_vm0, %v2624_v1  ;;  %2519 = vmatpush3.bf16.msra.mxu1 %v2572_v25 }
 0xa90   : > { %2520 = vmatprep.subr.bf16.mxu1 %v2624_v1 }
 0xa93   : > { %2521 = vmatpush3.bf16.msra.mxu1 %v2573_v26 }
 0xad5   : > { %v1566_v49 = vpop.f32.mrb[28].mxu1 }
 0xad6   : > { %v2472_v50 = vpop.f32.mrb[29].mxu1 }
 0xad7   : > { %v1569_v51 = vpop.f32.mrb[30].mxu1 }
 0xad8   : > { %v2473_v52 = vpop.f32.mrb[31].mxu1 }
 0xb51   : > { %v1677_v54 = vpop.f32.mrb[32].mxu1 }
 0xb52   : > { %1904 = vrot.lane.b32.xlu0 %v1677_v54, %s3125_s6  ;;  %v2484_v55 = vpop.f32.mrb[33].mxu1 }
 0xb53   : > { %v1680_v56 = vpop.f32.mrb[34].mxu1 }
 0xb54   : > { %v2485_v57 = vpop.f32.mrb[35].mxu1 }
 0xb59   : > { %v1787_v59 = vpop.f32.mrb[36].mxu1 }
 0xb5a   : > { %1908 = vrot.lane.b32.xlu1 %v1787_v59, %s3126_s0  ;;  %v2496_v60 = vpop.f32.mrb[37].mxu1  ;;  %s695_s0 = scalar_lea.vmem %s3094_s22, %s2271_s1 }
 0xb5b   : > { %v1790_v61 = vpop.f32.mrb[38].mxu1 }
 0xb5c   : > { %v2497_v62 = vpop.f32.mrb[39].mxu1 }
 0xb61   : > { %v1897_v63 = vpop.f32.mrb[40].mxu1 }
 0xb62   : > { %1912 = vrot.lane.b32.xlu0 %v1897_v63, %s3127_s29  ;;  %v2508_v0 = vpop.f32.mrb[41].mxu1 }
 0xb63   : > { %v1900_v2 = vpop.f32.mrb[42].mxu1  ;;  %v2323_v0 = vld [vmem:[%s3092_s20] ss:$0 sm:$0xff] }
 0xb64   : > { %v2509_v4 = vpop.f32.mrb[43].mxu1 }
 0xb65   : > { %v2324_v4 = vld [vmem:[%s3093_s21] ss:$0 sm:$0xff] }
 0xbc4   : > { %v1905_v5 = vpop.permute.xlu0 %1904 }
 0xbc5   : > { %v1915_v7 = vsel %vm777_vm2, %v1566_v49, %v1905_v5 }
 0xbcc   : > { %v1909_v6 = vpop.permute.xlu1 %1908 }
 0xbcd   : > { %v1916_v8 = vsel %vm1228_vm5, %v1915_v7, %v1909_v6 }
 0xbd4   : > { %v1913_v9 = vpop.permute.xlu0 %1912 }
 0xbd5   : > { %v1917_v3 = vsel %vm1230_vm6, %v1916_v8, %v1913_v9 }
 0xbd6   : > { %v1918_v11 = vpack.c.bf16 %v1917_v3, %v1917_v3 }
 0xbd8   : > { %2515 = vmatmul.mubr.msk.bf16.vlgmr.msra.gmra.mrb[36].mxu0 %vm729_vm1, %v1918_v11 }
 0xbd9   : > { %2534 = vmatprep.mubr.msk.bf16.mxu0 %vm2625_vm0, %v2624_v1 }
 0xcab   : > { %v1979_v13 = vpop.f32.mrb[36].mxu0 }
 0xcac   : > { %v1980_v14 = vadd.f32 %v2307_v12, %v1979_v13  ;;  %v2516_v15 = vpop.f32.mrb[37].mxu0 }
 0xcad   : > { %v1982_v16 = vpop.f32.mrb[38].mxu0 }
 0xcae   : > { %v2517_v17 = vpop.f32.mrb[39].mxu0  ;;  %v1985_v18 = vadd.f32 %v1980_v14, %v2917_v21  ;;  %v2574_v21 = vld [vmem:[%s3090_s18] sm:$0xff]  }
 0xcaf   : > { %2527 = vmatpush3.bf16.msra.mxu0 %v2574_v21 }
 0xcb0   : > { %v1988_v19 = vsel %vm729_vm1, %v1985_v18, 0.0  ;;  %2528 = vmatprep.subr.bf16.mxu0 %v2624_v1 }
 0xcb1   : > { %1989 = vadd.xlane.f32.xlu1 %v1988_v19 }
 0xcb3   : > { %2529 = vmatpush3.bf16.msra.mxu0 %v2575_v27 }
 0xcb4   : > { %2530 = vmatprep.subr.bf16.mxu0 %v2624_v1 }
 0xcb7   : > { %2531 = vmatpush3.bf16.msra.mxu0 %v2576_v39 }
 0xcb8   : > { %2532 = vmatprep.subr.bf16.mxu0 %v2624_v1  ;;  %v2317_v1 = vld [vmem:[%s3091_s19] ss:$0 sm:$0xff] }
 0xcbb   : > { %2533 = vmatpush3.bf16.msra.mxu0 %v2577_v28 }
 0xd3e   : > { %v1990_v20 = vpop.xlane.xlu1 %1989 }
 0xd3f   : > { %v1991_v10 = vmul.f32 0.03125, %v1990_v20 }
 0xd41   : > { %v1992_v22 = vsub.f32 %v1985_v18, %v1991_v10 }
 0xd43   : > { %v1993_v23 = vmul.f32 %v1992_v22, %v1992_v22 }
 0xd45   : > { %v1994_v24 = vsel %vm729_vm1, %v1993_v23, 0.0 }
 0xd46   : > { %1995 = vadd.xlane.f32.xlu0 %v1994_v24 }
 0xdd3   : > { %v1996_v29 = vpop.xlane.xlu0 %1995 }
 0xdd4   : > { %v1997_v30 = vmul.f32 0.03125, %v1996_v29 }
 0xdd6   : > { %v1998_v31 = vadd.f32 1e-05, %v1997_v30 }
 0xdd8   : > { %2612 = vrsqrt.f32 %v1998_v31 }
 0xde2   : > { %v2613_v32 = vpop.eup %2612 }
 0xde3   : > { %v2000_v34 = vmul.f32 %v2613_v32, %v1992_v22 }
 0xde5   : > { %v2007_v36 = vmul.f32 %v2311_v33, %v2000_v34 }
 0xde7   : > { %v2014_v37 = vadd.f32 %v2312_v35, %v2007_v36 }
 0xde9   : > { %v2015_v38 = vpack.c.bf16 %v2014_v37, %v2014_v37 }
 0xdeb   : > { %2523 = vmatmul.mubr.msk.bf16.vlgmr.msra.gmra.mrb[44].mxu1 %vm729_vm1, %v2015_v38 }
 0xebe   : > { %v2076_v41 = vpop.f32.mrb[44].mxu1 }
 0xebf   : > { %v2077_v42 = vadd.f32 %v2313_v40, %v2076_v41  ;;  %v2524_v43 = vpop.f32.mrb[45].mxu1 }
 0xec0   : > { %v2079_v44 = vpop.f32.mrb[46].mxu1 }
 0xec1   : > { %v2082_v45 = vmax.f32 %v2077_v42, 0.0  ;;  %v2525_v46 = vpop.f32.mrb[47].mxu1 }
 0xec3   : > { %v2083_v47 = vpack.c.bf16 %v2082_v45, %v2082_v45 }
 0xec5   : > { %2535 = vmatmul.mubr.msk.bf16.vlgmr.msra.gmra.mrb[40].mxu0 %vm2123_vm7, %v2083_v47 }
 0xf98   : > { %v2161_v48 = vpop.f32.mrb[40].mxu0 }
 0xf99   : > { %v2162_v49 = vadd.f32 %v2317_v1, %v2161_v48  ;;  %v2536_v50 = vpop.f32.mrb[41].mxu0 }
 0xf9a   : > { %v2164_v51 = vpop.f32.mrb[42].mxu0 }
 0xf9b   : > { %v2537_v52 = vpop.f32.mrb[43].mxu0  ;;  %v2167_v53 = vadd.f32 %v2162_v49, %v2014_v37 }
 0xf9d   : > { %v2170_v54 = vsel %vm729_vm1, %v2167_v53, 0.0 }
 0xf9e   : > { %2171 = vadd.xlane.f32.xlu0 %v2170_v54 }
0x102b   : > { %v2172_v55 = vpop.xlane.xlu0 %2171 }
0x102c   : > { %v2173_v56 = vmul.f32 0.03125, %v2172_v55 }
0x102e   : > { %v2174_v57 = vsub.f32 %v2167_v53, %v2173_v56 }
0x1030   : > { %v2175_v58 = vmul.f32 %v2174_v57, %v2174_v57 }
0x1032   : > { %v2176_v59 = vsel %vm729_vm1, %v2175_v58, 0.0 }
0x1033   : > { %2177 = vadd.xlane.f32.xlu1 %v2176_v59 }
0x10c0   : > { %v2178_v60 = vpop.xlane.xlu1 %2177 }
0x10c1   : > { %v2179_v61 = vmul.f32 0.03125, %v2178_v60 }
0x10c3   : > { %v2180_v62 = vadd.f32 1e-05, %v2179_v61 }
0x10c5   : > { %2614 = vrsqrt.f32 %v2180_v62 }
0x10cf   : > { %v2615_v63 = vpop.eup %2614 }
0x10d0   : > { %v2182_v2 = vmul.f32 %v2615_v63, %v2174_v57 }
0x10d2   : > { %v2189_v5 = vmul.f32 %v2323_v0, %v2182_v2 }
0x10d4   : > { %v2196_v6 = vadd.f32 %v2324_v4, %v2189_v5 }
0x10d6   : > { %v2197_v7 = vpack.c.bf16 %v2196_v6, %v2196_v6 }
0x10d8   : > { %2199 = vst.msk [vmem:[%s695_s0] sm:$0xf] %vm2198_vm8, %v2197_v7 }
0x10d9 PF: > { %s32_s3 = sadd.s32 1, %s2622_s3  }
0x10da   : > { %p29_p4 = scmp.ge.s32.totalorder %s32_s3, 4  }
0x10dc   :  { %31 = sbr.rel (!%p29_p4) target bundleno = 8 (0x8), region = 141 }

// kernel: transformer_forward.9
= control target key start
LH: loop header
LB: loop body
LE: loop exit
PB: predicated region body
PF: predicated region fallthrough
CT: control target
= control target key end

     0   :  { %8 = vsyncpa [#allocation3], 0  ;;  %s575_s0 = inlined_call_operand.vmem [shape: bf16[16,32], index: 0, kind: input, shape index: {}]   ;;  %s576_s1 = inlined_call_operand.vmem [shape: bf16[32,32], index: 1, kind: input, shape index: {}]   ;;  %s577_s2 = inlined_call_operand.vmem [shape: f32[1,32], index: 2, kind: input, shape index: {}]   ;;  %s578_s3 = inlined_call_operand.hbm [shape: f32[16,32], index: 3, kind: output, shape index: {}]  }
   0x1   :  { %10 = vsyncpa [#allocation3 + $0x1], 0  ;;  %s464_s12 = smov 0   ;;  %s466_s13 = smov 0  }
   0x2   :  { %s468_s14 = smov 0   ;;  %s470_s15 = smov 0  }
   0x3 LB: > { %s485_s16 = sadd.s32 4294967295, %s439_s15   ;;  %s309_s17 = sadd.s32 4294967294, %s439_s15   ;;  %s439_s15 = sphi %s470_s15, %s584_s15   ;;  %s435_s14 = sphi %s468_s14, %s583_s14   ;;  %s431_s13 = sphi %s466_s13, %s582_s13   ;;  %s427_s12 = sphi %s464_s12, %s581_s12  }
   0x4   : > { %s489_s18 = sadd.s32 1, %s439_s15   ;;  %s91_s19 = sadd.s32 1, %s435_s14 }
   0x5   : > { %s88_s20 = ssub.s32 %s439_s15, %s489_s18  ;;  %p101_p0 = scmp.ne.s32.totalorder %s435_s14, %s431_s13 }
   0x6   : > { %p89_p1 = scmp.eq.s32.totalorder %s88_s20, 0  ;;  %p102_p2 = scmp.eq.s32.totalorder %s485_s16, 1 }
   0x7   : > { %p107_p3 = scmp.ne.s32.totalorder %s431_s13, %s427_s12  ;;  %p108_p4 = scmp.eq.s32.totalorder %s309_s17, 1 }
   0x8   : > { %s500_s21 = scalar_select %p89_p1, %s435_s14, %s91_s19  }
   0x9   : > { %p502_p5 = por %p102_p2, %p101_p0  ;;  %p506_p6 = por %p108_p4, %p107_p3 }
   0xa   : > { %p312_p7 = scmp.ge.s32.totalorder %s439_s15, 1  ;;  %p139_p8 = scmp.lt.s32.totalorder %s439_s15, 3 }
   0xc   : > { %p140_p9 = pnand %p312_p7, %p139_p8 }
   0xd   : > { %v375_v0 = vld [vmem:[%s576_s1] sm:$0xff] (!%p140_p9)   ;;  %v441_v1 = vmov (!%p140_p9), 0.0   ;;  %v376_v2 = vld [vmem:[%s576_s1 + $0x8] sm:$0xff] (!%p140_p9)   ;;  %vm442_vm0 = vmmov (!%p140_p9), 0   ;;  %p162_p10 = scmp.lt.s32.totalorder (!%p140_p9), %s485_s16, 1  ;;  %vm191_vm1 = vcmask (!%p140_p9), 261120  }
   0xe   : > { %143 = sbr.rel (%p140_p9) target bundleno = 254 (0xfe), region = 32  ;;  %326 = vmatprep.subr.bf16.mxu0 (!%p140_p9), %v441_v1  ;;  %330 = vmatprep.mubr.msk.bf16.mxu0 (!%p140_p9), %vm442_vm0, %v441_v1  ;;  %s159_s6 = sand.u32 (!%p140_p9), 1, %s431_s13   ;;  %v315_v4 = vld [vmem:[%s577_s2] ss:$0 sm:$0xff] (!%p140_p9) }
   0xf   : > { %327 = vmatpush3.bf16.msra.mxu0 (!%p140_p9), %v375_v0  ;;  %s313_s7 = sshll.u32 (!%p140_p9), %s159_s6, 3  ;;  %s320_s10 = sshll.u32 (!%p140_p9), %s485_s16, 7 }
  0x10   : > { %328 = vmatprep.subr.bf16.mxu0 (!%p140_p9), %v441_v1  ;;  %s161_s11 = scalar_lea.vmem (!%p140_p9), [#allocation2], %s313_s7  ;;  %s532_s24 = scalar_lea.hbm (!%p140_p9), %s578_s3, %s320_s10 }
  0x11   : > { %s250_s17 = sshll.u32 (!%p140_p9), %s161_s11, 4  ;;  %s443_s26 = smov (!%p140_p9), [#allocation2]   ;;  %s534_s17 = int_to_ptr.vmem [resolvable:$true] %s250_s17 }
  0x12   : > { %s377_s25 = scalar_lea.vmem (!%p140_p9), %s534_s17, 128  ;;  %s381_s27 = sshll.u32 (!%p140_p9), %s443_s26, 4  ;;  %s382_s27 = int_to_ptr.vmem [resolvable:$false] %s381_s27 }
  0x13   : > { %329 = vmatpush3.bf16.msra.mxu0 (!%p140_p9), %v376_v2  ;;  %p378_p11 = scmp.ne.s32.totalorder (!%p140_p9), %s534_s17, %s377_s25  ;;  %p384_p0 = scmp.lt.s32.totalorder (!%p140_p9), %s534_s17, %s382_s27 }
  0x15   : > { %s163_s28 = scalar_select %p162_p10, %s485_s16, 1 }
  0x16   : > { %s237_s16 = scalar_lea.sflag [#allocation3], %s159_s6  ;;  %p379_p12 = pnand %p378_p11, %p502_p5 }
  0x17   : > { %s314_s29 = sshll.u32 %s163_s28, 2  ;;  %s383_s28 = scalar_lea.vmem %s382_s27, 256 }
  0x18   : > { %s165_s5 = scalar_lea.vmem %s575_s0, %s314_s29  ;;  %p380_p13 = pneg %p379_p12 }
  0x19   : > { %v167_v3 = vld [vmem:[%s165_s5] sm:$0xf]  ;;  %p385_p1 = scmp.lt.s32.totalorder %s383_s28, %s377_s25 }
  0x1a   : > { %331 = vmatmul.mubr.msk.bf16.vlgmr.msra.gmra.mrb[0].mxu0 %vm191_vm1, %v167_v3 }
  0x1b   : > { %p386_p2 = por %p385_p1, %p384_p0 }
  0x1d   : > { %p387_p3 = pnand %p386_p2, %p380_p13 }
  0xed   : > { %v229_v5 = vpop.f32.mrb[0].mxu0 }
  0xee   : > { %v230_v6 = vadd.f32 %v315_v4, %v229_v5  ;;  %v332_v7 = vpop.f32.mrb[1].mxu0 }
  0xef   : > { %v232_v8 = vpop.f32.mrb[2].mxu0 }
  0xf0   : > { %v333_v9 = vpop.f32.mrb[3].mxu0  ;;  %235 = vst.msk [vmem:[%s161_s11] sm:$0xff] %vm191_vm1, %v230_v6 }
  0xf1   : > { %390 = shalt.err (!%p387_p3)
}
  0xf2   : > { %s391_s29 = scalar_lea.hbm %s532_s24, 128  ;;  %s395_s5 = scalar_lea.hbm %s578_s3, 256 }
  0xf3   : > { %p392_p4 = scmp.ne.s32.totalorder %s532_s24, %s391_s29  ;;  %p396_p9 = scmp.lt.u32.totalorder %s532_s24, %s578_s3 }
  0xf4   : > { %p397_p10 = scmp.lt.u32.totalorder %s395_s5, %s391_s29  ;;  %p399_p12 = scmp.lt.u32.totalorder %s391_s29, %s532_s24 }
  0xf5   : > { %p393_p7 = pnand %p392_p4, %p502_p5 }
  0xf6   : > { %p398_p11 = por %p397_p10, %p396_p9 }
  0xf7   : > { %p394_p8 = pneg %p393_p7 }
  0xf8   : > { %p400_p13 = por %p399_p12, %p398_p11 }
  0xfa   : > { %p401_p0 = pnand %p400_p13, %p394_p8 }
  0xfc   : > { %404 = shalt.err (!%p401_p0)
}
  0xfd   : > { %334 = dma.vmem_to_hbm [thread:$0]  (%p502_p5), %s534_s17, 128, %s532_s24, %s237_s16  }
  0xfe PF: > { %p340_p1 = scmp.ge.s32.totalorder %s439_s15, 2  ;;  %s262_s8 = sand.u32 1, %s427_s12  }
  0xff   : > { %s263_s9 = scalar_lea.sflag [#allocation3], %s262_s8 }
 0x100   : > { %p337_p2 = pnand %p340_p1, %p506_p6 }
 0x102   : > { %422 = dma.done.wait (!%p337_p2), %s263_s9, 128  }
 0x103   : > { %424 = vsyncadd (!%p337_p2), %s263_s9, 4294967168  ;;  %p13_p3 = scmp.ge.s32.totalorder %s489_s18, 4   ;;  %s581_s12 = smov %s431_s13 }
 0x104   : > { %s582_s13 = smov %s435_s14  ;;  %s583_s14 = smov %s500_s21 }
 0x105   : > { %s584_s15 = smov %s489_s18  ;;  %15 = sbr.rel (!%p13_p3) target bundleno = 3 (0x3), region = 67 }
 0x10c   :  { %268 = vsyncpa [#allocation3], 1 }
 0x10d   :  { %270 = vsyncpa [#allocation3 + $0x1], 1 }

</bundles_post_ra>
